<compile_context>
chip_gen: v5e
topology: v5e:2x2
jax: 0.10.0
libtpu: 0.0.40
codegen_flags: <defaults>
</compile_context>

<pallas_src>
import functools

import jax
import jax.numpy as jnp
from jax.experimental import pallas as pl
from jax.experimental.pallas import tpu as pltpu

LANE = 128
SUBLANE = 8


# ---------------------------------------------------------------------------
# small helpers
# ---------------------------------------------------------------------------
def _round_up(x, m):
    return (x + m - 1) // m * m


def _vmem_phys_bytes():
    # Generation-aware VMEM capacity (v5e/v6e 128 MiB, v7x 64 MiB); safe fallback.
    try:
        return int(pltpu.get_tpu_info().vmem_capacity_bytes)
    except Exception:
        return 64 * 1024 * 1024


def _vmem_limit_bytes():
    # Scoped VMEM we ask the compiler for: half of physical leaves headroom for
    # compiler-internal scratch on every generation.
    return _vmem_phys_bytes() // 2


def _mosaic_params():
    return pltpu.CompilerParams(
        dimension_semantics=("parallel",),
        vmem_limit_bytes=_vmem_limit_bytes(),
    )


def _pick_tile_m(m, kp, np_, n_lhs, out_bytes):
    """Pick an M-tile so (double-buffered streams + resident weights) fits within half
    of the scoped-VMEM limit we request.  Returns (tile_m, padded_M)."""
    budget = _vmem_limit_bytes() // 2
    resident = 2 * (kp * np_ * 2 + np_ * 4)     # bf16 weights + f32 bias (x2 for safety)
    tm = SUBLANE
    for cand in (4096, 2048, 1024, 512, 256, 128, 64, 32, 16, 8):
        stream = 2 * cand * (n_lhs * kp * 2 + np_ * out_bytes)   # 2x-buffered A tiles + out
        if resident + stream <= budget:
            tm = cand
            break
    m8 = _round_up(max(m, 1), SUBLANE)
    if m8 <= tm:
        return m8, m8            # single block covers all rows
    return tm, _round_up(m8, tm)


# ---------------------------------------------------------------------------
# Pallas kernels
# ---------------------------------------------------------------------------
def _matmul_bias_kernel(a_ref, w_ref, b_ref, o_ref, *, relu):
    # a: (TM, Kp) bf16, w: (Kp, Np) bf16 (resident), b: (1, Np) f32 -> o: (TM, Np)
    acc = jnp.dot(a_ref[...], w_ref[...], preferred_element_type=jnp.float32)
    acc = acc + b_ref[...]
    if relu:
        acc = jnp.maximum(acc, 0.0)
    o_ref[...] = acc.astype(o_ref.dtype)


def _conv_pool_kernel(p00_ref, p01_ref, p10_ref, p11_ref, w_ref, b_ref, o_ref):
    # Fused conv(+bias)+ReLU+2x2-maxpool: four corner patch matrices -> four MXU
    # matmuls against the resident weight block, elementwise max, bias, ReLU.
    w = w_ref[...]
    a0 = jnp.dot(p00_ref[...], w, preferred_element_type=jnp.float32)
    a1 = jnp.dot(p01_ref[...], w, preferred_element_type=jnp.float32)
    a2 = jnp.dot(p10_ref[...], w, preferred_element_type=jnp.float32)
    a3 = jnp.dot(p11_ref[...], w, preferred_element_type=jnp.float32)
    m = jnp.maximum(jnp.maximum(a0, a1), jnp.maximum(a2, a3))
    o_ref[...] = jnp.maximum(m + b_ref[...], 0.0).astype(o_ref.dtype)


# ---------------------------------------------------------------------------
# gridded matmul + bias (+ReLU):  out = relu?(a @ w + b)
# ---------------------------------------------------------------------------
def matmul_bias(a, w, b, *, relu, out_dtype=jnp.bfloat16):
    M, K = a.shape
    Kw, N = w.shape
    assert K == Kw
    Kp = _round_up(K, LANE)
    Np = _round_up(N, LANE)
    out_bytes = jnp.dtype(out_dtype).itemsize
    tm, Mp = _pick_tile_m(M, Kp, Np, n_lhs=1, out_bytes=out_bytes)

    a_p = jnp.pad(a.astype(jnp.bfloat16), ((0, Mp - M), (0, Kp - K)))
    w_p = jnp.pad(w.astype(jnp.bfloat16), ((0, Kp - K), (0, Np - N)))
    b_p = jnp.pad(b.astype(jnp.float32), (0, Np - N)).reshape(1, Np)

    grid = (Mp // tm,)
    flops = 2 * Mp * Kp * Np
    bytes_acc = Mp * Kp * 2 + Kp * Np * 2 + Np * 4 + Mp * Np * out_bytes

    out = pl.pallas_call(
        functools.partial(_matmul_bias_kernel, relu=relu),
        out_shape=jax.ShapeDtypeStruct((Mp, Np), out_dtype),
        grid=grid,
        in_specs=[
            pl.BlockSpec((tm, Kp), lambda i: (i, 0)),
            pl.BlockSpec((Kp, Np), lambda i: (0, 0)),   # weight resident across steps
            pl.BlockSpec((1, Np), lambda i: (0, 0)),
        ],
        out_specs=pl.BlockSpec((tm, Np), lambda i: (i, 0)),
        compiler_params=_mosaic_params(),
        cost_estimate=pl.CostEstimate(flops=flops, transcendentals=0,
                                      bytes_accessed=bytes_acc),
    )(a_p, w_p, b_p)
    return out[:M, :N]


# ---------------------------------------------------------------------------
# conv 5x5 (stride 1, pad 2) + ReLU, optionally fused 2x2 maxpool.  NHWC.
# ---------------------------------------------------------------------------
def _conv_patches_nhwc(x, k, pad):
    # x: (N, H, W, C) -> (N, H, W, k*k*C), column order (ky, kx, c)
    N, H, W, C = x.shape
    xp = jnp.pad(x, ((0, 0), (pad, pad), (pad, pad), (0, 0)))
    taps = [xp[:, ky:ky + H, kx:kx + W, :] for ky in range(k) for kx in range(k)]
    pat = jnp.stack(taps, axis=3)                 # (N, H, W, k*k, C)
    return pat.reshape(N, H, W, k * k * C)


def conv5x5(x, w, b, *, pool):
    # x: (N, H, W, Cin); w: torch layout (Cout, Cin, 5, 5); b: (Cout,)
    N, H, W, Cin = x.shape
    Cout, Cin_w, k, _ = w.shape
    assert Cin == Cin_w and k == 5
    K = k * k * Cin
    wmat = jnp.transpose(w, (2, 3, 1, 0)).reshape(K, Cout)   # matches (ky,kx,c) columns
    pat = _conv_patches_nhwc(x, k, pad=k // 2)               # (N, H, W, K)

    if not pool:
        out = matmul_bias(pat.reshape(N * H * W, K), wmat, b, relu=True,
                          out_dtype=jnp.bfloat16)
        return out.reshape(N, H, W, Cout)

    # Fused conv + bias + ReLU + 2x2 maxpool.
    Ho, Wo = H // 2, W // 2
    M = N * Ho * Wo
    Kp = _round_up(K, LANE)
    Cp = _round_up(Cout, LANE)
    tm, Mp = _pick_tile_m(M, Kp, Cp, n_lhs=4, out_bytes=2)

    corners = [
        jnp.pad(pat[:, dy::2, dx::2, :].reshape(M, K).astype(jnp.bfloat16),
                ((0, Mp - M), (0, Kp - K)))
        for dy in range(2) for dx in range(2)
    ]
    w_p = jnp.pad(wmat.astype(jnp.bfloat16), ((0, Kp - K), (0, Cp - Cout)))
    b_p = jnp.pad(b.astype(jnp.float32), (0, Cp - Cout)).reshape(1, Cp)

    grid = (Mp // tm,)
    flops = 2 * Mp * Kp * Cp * 4
    bytes_acc = 4 * Mp * Kp * 2 + Kp * Cp * 2 + Cp * 4 + Mp * Cp * 2

    a_specs = [pl.BlockSpec((tm, Kp), lambda i: (i, 0)) for _ in range(4)]
    out = pl.pallas_call(
        _conv_pool_kernel,
        out_shape=jax.ShapeDtypeStruct((Mp, Cp), jnp.bfloat16),
        grid=grid,
        in_specs=a_specs + [
            pl.BlockSpec((Kp, Cp), lambda i: (0, 0)),    # weight resident
            pl.BlockSpec((1, Cp), lambda i: (0, 0)),
        ],
        out_specs=pl.BlockSpec((tm, Cp), lambda i: (i, 0)),
        compiler_params=_mosaic_params(),
        cost_estimate=pl.CostEstimate(flops=flops, transcendentals=0,
                                      bytes_accessed=bytes_acc),
    )(*corners, w_p, b_p)
    return out[:M, :Cout].reshape(N, Ho, Wo, Cout)


# ---------------------------------------------------------------------------
# CNN forward (mirrors the PyTorch module)
# ---------------------------------------------------------------------------
def init_params(key):
    ks = jax.random.split(key, 8)
    return {
        "w1": jax.random.normal(ks[0], (16, 1, 5, 5), jnp.float32) * 0.1,
        "b1": jax.random.normal(ks[1], (16,), jnp.float32) * 0.1,
        "w2": jax.random.normal(ks[2], (32, 16, 5, 5), jnp.float32) * 0.05,
        "b2": jax.random.normal(ks[3], (32,), jnp.float32) * 0.05,
        "w3": jax.random.normal(ks[4], (64, 32, 5, 5), jnp.float32) * 0.05,
        "b3": jax.random.normal(ks[5], (64,), jnp.float32) * 0.05,
        "wout": jax.random.normal(ks[6], (10, 64 * 7 * 7), jnp.float32) * 0.02,
        "bout": jax.random.normal(ks[7], (10,), jnp.float32) * 0.02,
    }


def cnn_forward(x_nchw, p):
    # Single NCHW->NHWC conversion at the boundary; everything downstream is
    # channels-last so channels sit on the lane axis.
    x = jnp.transpose(x_nchw, (0, 2, 3, 1)).astype(jnp.bfloat16)
    # conv1: Conv(1->16,5,1,2)+ReLU+MaxPool(2): (N,28,28,1) -> (N,14,14,16)
    x = conv5x5(x, p["w1"], p["b1"], pool=True)
    # conv2: Conv(16->32,5,1,2)+ReLU+MaxPool(2): -> (N,7,7,32)
    x = conv5x5(x, p["w2"], p["b2"], pool=True)
    # conv3: Conv(32->64,5,1,2)+ReLU+ReLU (idempotent -> single ReLU): -> (N,7,7,64)
    x = conv5x5(x, p["w3"], p["b3"], pool=False)
    # Final linear.  torch flattens NCHW (c,h,w); we flatten NHWC (h,w,c) and
    # permute the Linear weight columns once to match — activations stay NHWC.
    N, Ho, Wo, C = x.shape
    x_flat = x.reshape(N, Ho * Wo * C)
    wout = (p["wout"].reshape(10, C, Ho, Wo)
            .transpose(2, 3, 1, 0)
            .reshape(Ho * Wo * C, 10))
    return matmul_bias(x_flat, wout, p["bout"], relu=False, out_dtype=jnp.float32)


# ---------------------------------------------------------------------------
# pure-JAX reference (f32) for validation
# ---------------------------------------------------------------------------
def cnn_reference(x_nchw, p):
    x = x_nchw.astype(jnp.float32)

    def conv(x, w, b):
        y = jax.lax.conv_general_dilated(
            x, w, window_strides=(1, 1), padding=((2, 2), (2, 2)),
            dimension_numbers=("NCHW", "OIHW", "NCHW"))
        return jax.nn.relu(y + b[None, :, None, None])

    def pool(x):
        return jax.lax.reduce_window(x, -jnp.inf, jax.lax.max,
                                     (1, 1, 2, 2), (1, 1, 2, 2), "VALID")

    x = pool(conv(x, p["w1"], p["b1"]))
    x = pool(conv(x, p["w2"], p["b2"]))
    x = conv(x, p["w3"], p["b3"])
    x = x.reshape(x.shape[0], -1)
    return x @ p["wout"].T + p["bout"]


if __name__ == "__main__":
    key = jax.random.PRNGKey(0)
    pkey, xkey = jax.random.split(key)
    params = init_params(pkey)
    # MNIST-shaped input implied by Linear(64*7*7, 10): (batch, 1, 28, 28)
    x = jax.random.normal(xkey, (2, 1, 28, 28), jnp.float32)

    fwd = jax.jit(cnn_forward)
    out = jax.block_until_ready(fwd(x, params))
    ref = jax.block_until_ready(jax.jit(cnn_reference)(x, params))

    assert out.shape == (2, 10), out.shape
    assert bool(jnp.all(jnp.isfinite(out)))
    # bf16 inputs / f32 accumulation -> loose tolerance vs the f32 reference.
    max_err = float(jnp.max(jnp.abs(out - ref)))
    assert max_err < 0.15, f"mismatch vs reference: max abs err {max_err}"
    print("KERNEL_OK")
</pallas_src>

<mosaic_0001>
module attributes {stable_mosaic.version = 11 : i64} {
  func.func @_conv_pool_kernel(%arg0: i32, %arg1: memref<392x128xbf16, #tpu.memory_space<vmem>>, %arg2: memref<392x128xbf16, #tpu.memory_space<vmem>>, %arg3: memref<392x128xbf16, #tpu.memory_space<vmem>>, %arg4: memref<392x128xbf16, #tpu.memory_space<vmem>>, %arg5: memref<128x128xbf16, #tpu.memory_space<vmem>>, %arg6: memref<1x128xf32, #tpu.memory_space<vmem>>, %arg7: memref<392x128xbf16, #tpu.memory_space<vmem>>) attributes {dimension_semantics = [#tpu.dimension_semantics<parallel>], iteration_bounds = array<i64: 1>, scalar_prefetch = 0 : i64, scratch_operands = 0 : i64, tpu.core_type = #tpu.core_type<tc>, window_params = [{transform_indices = @transform_0, window_bounds = array<i64: 392, 128>}, {transform_indices = @transform_1, window_bounds = array<i64: 392, 128>}, {transform_indices = @transform_2, window_bounds = array<i64: 392, 128>}, {transform_indices = @transform_3, window_bounds = array<i64: 392, 128>}, {pipeline_mode = #tpu.pipeline_mode<synchronous>, transform_indices = @transform_4, window_bounds = array<i64: 128, 128>}, {pipeline_mode = #tpu.pipeline_mode<synchronous>, transform_indices = @transform_5, window_bounds = array<i64: 1, 128>}, {transform_indices = @transform_6, window_bounds = array<i64: 392, 128>}]} {
    %c0 = arith.constant 0 : index
    %c0_0 = arith.constant 0 : index
    %0 = vector.load %arg5[%c0, %c0_0] : memref<128x128xbf16, #tpu.memory_space<vmem>>, vector<128x128xbf16>
    %c0_1 = arith.constant 0 : index
    %c0_2 = arith.constant 0 : index
    %1 = vector.load %arg1[%c0_1, %c0_2] : memref<392x128xbf16, #tpu.memory_space<vmem>>, vector<392x128xbf16>
    %cst = arith.constant dense<0.000000e+00> : vector<392x128xf32>
    %2 = tpu.matmul %1, %0, %cst {dimension_numbers = #tpu.dot_dimension_numbers<[1], [0], [0], [1], [0, 0, 1, 1], [], []>} : vector<392x128xbf16>, vector<128x128xbf16>, vector<392x128xf32> -> vector<392x128xf32>
    %c0_3 = arith.constant 0 : index
    %c0_4 = arith.constant 0 : index
    %3 = vector.load %arg2[%c0_3, %c0_4] : memref<392x128xbf16, #tpu.memory_space<vmem>>, vector<392x128xbf16>
    %cst_5 = arith.constant dense<0.000000e+00> : vector<392x128xf32>
    %4 = tpu.matmul %3, %0, %cst_5 {dimension_numbers = #tpu.dot_dimension_numbers<[1], [0], [0], [1], [0, 0, 1, 1], [], []>} : vector<392x128xbf16>, vector<128x128xbf16>, vector<392x128xf32> -> vector<392x128xf32>
    %c0_6 = arith.constant 0 : index
    %c0_7 = arith.constant 0 : index
    %5 = vector.load %arg3[%c0_6, %c0_7] : memref<392x128xbf16, #tpu.memory_space<vmem>>, vector<392x128xbf16>
    %cst_8 = arith.constant dense<0.000000e+00> : vector<392x128xf32>
    %6 = tpu.matmul %5, %0, %cst_8 {dimension_numbers = #tpu.dot_dimension_numbers<[1], [0], [0], [1], [0, 0, 1, 1], [], []>} : vector<392x128xbf16>, vector<128x128xbf16>, vector<392x128xf32> -> vector<392x128xf32>
    %c0_9 = arith.constant 0 : index
    %c0_10 = arith.constant 0 : index
    %7 = vector.load %arg4[%c0_9, %c0_10] : memref<392x128xbf16, #tpu.memory_space<vmem>>, vector<392x128xbf16>
    %cst_11 = arith.constant dense<0.000000e+00> : vector<392x128xf32>
    %8 = tpu.matmul %7, %0, %cst_11 {dimension_numbers = #tpu.dot_dimension_numbers<[1], [0], [0], [1], [0, 0, 1, 1], [], []>} : vector<392x128xbf16>, vector<128x128xbf16>, vector<392x128xf32> -> vector<392x128xf32>
    %9 = arith.maximumf %2, %4 : vector<392x128xf32>
    %10 = arith.maximumf %6, %8 : vector<392x128xf32>
    %11 = arith.maximumf %9, %10 : vector<392x128xf32>
    %c0_12 = arith.constant 0 : index
    %c0_13 = arith.constant 0 : index
    %12 = vector.load %arg6[%c0_12, %c0_13] : memref<1x128xf32, #tpu.memory_space<vmem>>, vector<1x128xf32>
    %13 = vector.broadcast %12 : vector<1x128xf32> to vector<392x128xf32>
    %14 = arith.addf %11, %13 : vector<392x128xf32>
    %cst_14 = arith.constant 0.000000e+00 : f32
    %15 = vector.broadcast %cst_14 : f32 to vector<392x128xf32>
    %16 = arith.maximumf %14, %15 : vector<392x128xf32>
    %17 = arith.truncf %16 : vector<392x128xf32> to vector<392x128xbf16>
    %c0_15 = arith.constant 0 : index
    %c0_16 = arith.constant 0 : index
    %18 = vector.load %arg7[%c0_15, %c0_16] : memref<392x128xbf16, #tpu.memory_space<vmem>>, vector<392x128xbf16>
    tpu.vector_store %arg7[%c0_15, %c0_16], %17 {strides = array<i32>} : memref<392x128xbf16, #tpu.memory_space<vmem>>, vector<392x128xbf16>,
    return
  }
  func.func @transform_0(%arg0: i32) -> (i32, i32) {
    %c0_i32 = arith.constant 0 : i32
    %c0_i32_0 = arith.constant 0 : i32
    return %arg0, %c0_i32 : i32, i32
  }
  func.func @transform_1(%arg0: i32) -> (i32, i32) {
    %c0_i32 = arith.constant 0 : i32
    %c0_i32_0 = arith.constant 0 : i32
    return %arg0, %c0_i32 : i32, i32
  }
  func.func @transform_2(%arg0: i32) -> (i32, i32) {
    %c0_i32 = arith.constant 0 : i32
    %c0_i32_0 = arith.constant 0 : i32
    return %arg0, %c0_i32 : i32, i32
  }
  func.func @transform_3(%arg0: i32) -> (i32, i32) {
    %c0_i32 = arith.constant 0 : i32
    %c0_i32_0 = arith.constant 0 : i32
    return %arg0, %c0_i32 : i32, i32
  }
  func.func @transform_4(%arg0: i32) -> (i32, i32) {
    %c0_i32 = arith.constant 0 : i32
    %c0_i32_0 = arith.constant 0 : i32
    %c0_i32_1 = arith.constant 0 : i32
    return %c0_i32, %c0_i32_0 : i32, i32
  }
  func.func @transform_5(%arg0: i32) -> (i32, i32) {
    %c0_i32 = arith.constant 0 : i32
    %c0_i32_0 = arith.constant 0 : i32
    %c0_i32_1 = arith.constant 0 : i32
    return %c0_i32, %c0_i32_0 : i32, i32
  }
  func.func @transform_6(%arg0: i32) -> (i32, i32) {
    %c0_i32 = arith.constant 0 : i32
    %c0_i32_0 = arith.constant 0 : i32
    return %arg0, %c0_i32 : i32, i32
  }
}

module attributes {stable_mosaic.version = 11 : i64} {
  func.func @_conv_pool_kernel(%arg0: i32, %arg1: memref<104x512xbf16, #tpu.memory_space<vmem>>, %arg2: memref<104x512xbf16, #tpu.memory_space<vmem>>, %arg3: memref<104x512xbf16, #tpu.memory_space<vmem>>, %arg4: memref<104x512xbf16, #tpu.memory_space<vmem>>, %arg5: memref<512x128xbf16, #tpu.memory_space<vmem>>, %arg6: memref<1x128xf32, #tpu.memory_space<vmem>>, %arg7: memref<104x128xbf16, #tpu.memory_space<vmem>>) attributes {dimension_semantics = [#tpu.dimension_semantics<parallel>], iteration_bounds = array<i64: 1>, scalar_prefetch = 0 : i64, scratch_operands = 0 : i64, tpu.core_type = #tpu.core_type<tc>, window_params = [{transform_indices = @transform_0, window_bounds = array<i64: 104, 512>}, {transform_indices = @transform_1, window_bounds = array<i64: 104, 512>}, {transform_indices = @transform_2, window_bounds = array<i64: 104, 512>}, {transform_indices = @transform_3, window_bounds = array<i64: 104, 512>}, {pipeline_mode = #tpu.pipeline_mode<synchronous>, transform_indices = @transform_4, window_bounds = array<i64: 512, 128>}, {pipeline_mode = #tpu.pipeline_mode<synchronous>, transform_indices = @transform_5, window_bounds = array<i64: 1, 128>}, {transform_indices = @transform_6, window_bounds = array<i64: 104, 128>}]} {
    %c0 = arith.constant 0 : index
    %c0_0 = arith.constant 0 : index
    %0 = vector.load %arg5[%c0, %c0_0] : memref<512x128xbf16, #tpu.memory_space<vmem>>, vector<512x128xbf16>
    %c0_1 = arith.constant 0 : index
    %c0_2 = arith.constant 0 : index
    %1 = vector.load %arg1[%c0_1, %c0_2] : memref<104x512xbf16, #tpu.memory_space<vmem>>, vector<104x512xbf16>
    %cst = arith.constant dense<0.000000e+00> : vector<104x128xf32>
    %2 = tpu.matmul %1, %0, %cst {dimension_numbers = #tpu.dot_dimension_numbers<[1], [0], [0], [1], [0, 0, 1, 1], [], []>} : vector<104x512xbf16>, vector<512x128xbf16>, vector<104x128xf32> -> vector<104x128xf32>
    %c0_3 = arith.constant 0 : index
    %c0_4 = arith.constant 0 : index
    %3 = vector.load %arg2[%c0_3, %c0_4] : memref<104x512xbf16, #tpu.memory_space<vmem>>, vector<104x512xbf16>
    %cst_5 = arith.constant dense<0.000000e+00> : vector<104x128xf32>
    %4 = tpu.matmul %3, %0, %cst_5 {dimension_numbers = #tpu.dot_dimension_numbers<[1], [0], [0], [1], [0, 0, 1, 1], [], []>} : vector<104x512xbf16>, vector<512x128xbf16>, vector<104x128xf32> -> vector<104x128xf32>
    %c0_6 = arith.constant 0 : index
    %c0_7 = arith.constant 0 : index
    %5 = vector.load %arg3[%c0_6, %c0_7] : memref<104x512xbf16, #tpu.memory_space<vmem>>, vector<104x512xbf16>
    %cst_8 = arith.constant dense<0.000000e+00> : vector<104x128xf32>
    %6 = tpu.matmul %5, %0, %cst_8 {dimension_numbers = #tpu.dot_dimension_numbers<[1], [0], [0], [1], [0, 0, 1, 1], [], []>} : vector<104x512xbf16>, vector<512x128xbf16>, vector<104x128xf32> -> vector<104x128xf32>
    %c0_9 = arith.constant 0 : index
    %c0_10 = arith.constant 0 : index
    %7 = vector.load %arg4[%c0_9, %c0_10] : memref<104x512xbf16, #tpu.memory_space<vmem>>, vector<104x512xbf16>
    %cst_11 = arith.constant dense<0.000000e+00> : vector<104x128xf32>
    %8 = tpu.matmul %7, %0, %cst_11 {dimension_numbers = #tpu.dot_dimension_numbers<[1], [0], [0], [1], [0, 0, 1, 1], [], []>} : vector<104x512xbf16>, vector<512x128xbf16>, vector<104x128xf32> -> vector<104x128xf32>
    %9 = arith.maximumf %2, %4 : vector<104x128xf32>
    %10 = arith.maximumf %6, %8 : vector<104x128xf32>
    %11 = arith.maximumf %9, %10 : vector<104x128xf32>
    %c0_12 = arith.constant 0 : index
    %c0_13 = arith.constant 0 : index
    %12 = vector.load %arg6[%c0_12, %c0_13] : memref<1x128xf32, #tpu.memory_space<vmem>>, vector<1x128xf32>
    %13 = vector.broadcast %12 : vector<1x128xf32> to vector<104x128xf32>
    %14 = arith.addf %11, %13 : vector<104x128xf32>
    %cst_14 = arith.constant 0.000000e+00 : f32
    %15 = vector.broadcast %cst_14 : f32 to vector<104x128xf32>
    %16 = arith.maximumf %14, %15 : vector<104x128xf32>
    %17 = arith.truncf %16 : vector<104x128xf32> to vector<104x128xbf16>
    %c0_15 = arith.constant 0 : index
    %c0_16 = arith.constant 0 : index
    %18 = vector.load %arg7[%c0_15, %c0_16] : memref<104x128xbf16, #tpu.memory_space<vmem>>, vector<104x128xbf16>
    tpu.vector_store %arg7[%c0_15, %c0_16], %17 {strides = array<i32>} : memref<104x128xbf16, #tpu.memory_space<vmem>>, vector<104x128xbf16>,
    return
  }
  func.func @transform_0(%arg0: i32) -> (i32, i32) {
    %c0_i32 = arith.constant 0 : i32
    %c0_i32_0 = arith.constant 0 : i32
    return %arg0, %c0_i32 : i32, i32
  }
  func.func @transform_1(%arg0: i32) -> (i32, i32) {
    %c0_i32 = arith.constant 0 : i32
    %c0_i32_0 = arith.constant 0 : i32
    return %arg0, %c0_i32 : i32, i32
  }
  func.func @transform_2(%arg0: i32) -> (i32, i32) {
    %c0_i32 = arith.constant 0 : i32
    %c0_i32_0 = arith.constant 0 : i32
    return %arg0, %c0_i32 : i32, i32
  }
  func.func @transform_3(%arg0: i32) -> (i32, i32) {
    %c0_i32 = arith.constant 0 : i32
    %c0_i32_0 = arith.constant 0 : i32
    return %arg0, %c0_i32 : i32, i32
  }
  func.func @transform_4(%arg0: i32) -> (i32, i32) {
    %c0_i32 = arith.constant 0 : i32
    %c0_i32_0 = arith.constant 0 : i32
    %c0_i32_1 = arith.constant 0 : i32
    return %c0_i32, %c0_i32_0 : i32, i32
  }
  func.func @transform_5(%arg0: i32) -> (i32, i32) {
    %c0_i32 = arith.constant 0 : i32
    %c0_i32_0 = arith.constant 0 : i32
    %c0_i32_1 = arith.constant 0 : i32
    return %c0_i32, %c0_i32_0 : i32, i32
  }
  func.func @transform_6(%arg0: i32) -> (i32, i32) {
    %c0_i32 = arith.constant 0 : i32
    %c0_i32_0 = arith.constant 0 : i32
    return %arg0, %c0_i32 : i32, i32
  }
}

module attributes {stable_mosaic.version = 11 : i64} {
  func.func @_matmul_bias_kernel(%arg0: i32, %arg1: memref<104x896xbf16, #tpu.memory_space<vmem>>, %arg2: memref<896x128xbf16, #tpu.memory_space<vmem>>, %arg3: memref<1x128xf32, #tpu.memory_space<vmem>>, %arg4: memref<104x128xbf16, #tpu.memory_space<vmem>>) attributes {dimension_semantics = [#tpu.dimension_semantics<parallel>], iteration_bounds = array<i64: 1>, scalar_prefetch = 0 : i64, scratch_operands = 0 : i64, tpu.core_type = #tpu.core_type<tc>, window_params = [{transform_indices = @transform_0, window_bounds = array<i64: 104, 896>}, {pipeline_mode = #tpu.pipeline_mode<synchronous>, transform_indices = @transform_1, window_bounds = array<i64: 896, 128>}, {pipeline_mode = #tpu.pipeline_mode<synchronous>, transform_indices = @transform_2, window_bounds = array<i64: 1, 128>}, {transform_indices = @transform_3, window_bounds = array<i64: 104, 128>}]} {
    %c0 = arith.constant 0 : index
    %c0_0 = arith.constant 0 : index
    %0 = vector.load %arg1[%c0, %c0_0] : memref<104x896xbf16, #tpu.memory_space<vmem>>, vector<104x896xbf16>
    %c0_1 = arith.constant 0 : index
    %c0_2 = arith.constant 0 : index
    %1 = vector.load %arg2[%c0_1, %c0_2] : memref<896x128xbf16, #tpu.memory_space<vmem>>, vector<896x128xbf16>
    %cst = arith.constant dense<0.000000e+00> : vector<104x128xf32>
    %2 = tpu.matmul %0, %1, %cst {dimension_numbers = #tpu.dot_dimension_numbers<[1], [0], [0], [1], [0, 0, 1, 1], [], []>} : vector<104x896xbf16>, vector<896x128xbf16>, vector<104x128xf32> -> vector<104x128xf32>
    %c0_3 = arith.constant 0 : index
    %c0_4 = arith.constant 0 : index
    %3 = vector.load %arg3[%c0_3, %c0_4] : memref<1x128xf32, #tpu.memory_space<vmem>>, vector<1x128xf32>
    %4 = vector.broadcast %3 : vector<1x128xf32> to vector<104x128xf32>
    %5 = arith.addf %2, %4 : vector<104x128xf32>
    %cst_5 = arith.constant 0.000000e+00 : f32
    %6 = vector.broadcast %cst_5 : f32 to vector<104x128xf32>
    %7 = arith.maximumf %5, %6 : vector<104x128xf32>
    %8 = arith.truncf %7 : vector<104x128xf32> to vector<104x128xbf16>
    %c0_6 = arith.constant 0 : index
    %c0_7 = arith.constant 0 : index
    %9 = vector.load %arg4[%c0_6, %c0_7] : memref<104x128xbf16, #tpu.memory_space<vmem>>, vector<104x128xbf16>
    tpu.vector_store %arg4[%c0_6, %c0_7], %8 {strides = array<i32>} : memref<104x128xbf16, #tpu.memory_space<vmem>>, vector<104x128xbf16>,
    return
  }
  func.func @transform_0(%arg0: i32) -> (i32, i32) {
    %c0_i32 = arith.constant 0 : i32
    %c0_i32_0 = arith.constant 0 : i32
    return %arg0, %c0_i32 : i32, i32
  }
  func.func @transform_1(%arg0: i32) -> (i32, i32) {
    %c0_i32 = arith.constant 0 : i32
    %c0_i32_0 = arith.constant 0 : i32
    %c0_i32_1 = arith.constant 0 : i32
    return %c0_i32, %c0_i32_0 : i32, i32
  }
  func.func @transform_2(%arg0: i32) -> (i32, i32) {
    %c0_i32 = arith.constant 0 : i32
    %c0_i32_0 = arith.constant 0 : i32
    %c0_i32_1 = arith.constant 0 : i32
    return %c0_i32, %c0_i32_0 : i32, i32
  }
  func.func @transform_3(%arg0: i32) -> (i32, i32) {
    %c0_i32 = arith.constant 0 : i32
    %c0_i32_0 = arith.constant 0 : i32
    return %arg0, %c0_i32 : i32, i32
  }
}

module attributes {stable_mosaic.version = 11 : i64} {
  func.func @_matmul_bias_kernel(%arg0: i32, %arg1: memref<8x3200xbf16, #tpu.memory_space<vmem>>, %arg2: memref<3200x128xbf16, #tpu.memory_space<vmem>>, %arg3: memref<1x128xf32, #tpu.memory_space<vmem>>, %arg4: memref<8x128xf32, #tpu.memory_space<vmem>>) attributes {dimension_semantics = [#tpu.dimension_semantics<parallel>], iteration_bounds = array<i64: 1>, scalar_prefetch = 0 : i64, scratch_operands = 0 : i64, tpu.core_type = #tpu.core_type<tc>, window_params = [{transform_indices = @transform_0, window_bounds = array<i64: 8, 3200>}, {pipeline_mode = #tpu.pipeline_mode<synchronous>, transform_indices = @transform_1, window_bounds = array<i64: 3200, 128>}, {pipeline_mode = #tpu.pipeline_mode<synchronous>, transform_indices = @transform_2, window_bounds = array<i64: 1, 128>}, {transform_indices = @transform_3, window_bounds = array<i64: 8, 128>}]} {
    %c0 = arith.constant 0 : index
    %c0_0 = arith.constant 0 : index
    %0 = vector.load %arg1[%c0, %c0_0] : memref<8x3200xbf16, #tpu.memory_space<vmem>>, vector<8x3200xbf16>
    %c0_1 = arith.constant 0 : index
    %c0_2 = arith.constant 0 : index
    %1 = vector.load %arg2[%c0_1, %c0_2] : memref<3200x128xbf16, #tpu.memory_space<vmem>>, vector<3200x128xbf16>
    %cst = arith.constant dense<0.000000e+00> : vector<8x128xf32>
    %2 = tpu.matmul %0, %1, %cst {dimension_numbers = #tpu.dot_dimension_numbers<[1], [0], [0], [1], [0, 0, 1, 1], [], []>} : vector<8x3200xbf16>, vector<3200x128xbf16>, vector<8x128xf32> -> vector<8x128xf32>
    %c0_3 = arith.constant 0 : index
    %c0_4 = arith.constant 0 : index
    %3 = vector.load %arg3[%c0_3, %c0_4] : memref<1x128xf32, #tpu.memory_space<vmem>>, vector<1x128xf32>
    %4 = vector.broadcast %3 : vector<1x128xf32> to vector<8x128xf32>
    %5 = arith.addf %2, %4 : vector<8x128xf32>
    %c0_5 = arith.constant 0 : index
    %c0_6 = arith.constant 0 : index
    %6 = vector.load %arg4[%c0_5, %c0_6] : memref<8x128xf32, #tpu.memory_space<vmem>>, vector<8x128xf32>
    tpu.vector_store %arg4[%c0_5, %c0_6], %5 {strides = array<i32>} : memref<8x128xf32, #tpu.memory_space<vmem>>, vector<8x128xf32>,
    return
  }
  func.func @transform_0(%arg0: i32) -> (i32, i32) {
    %c0_i32 = arith.constant 0 : i32
    %c0_i32_0 = arith.constant 0 : i32
    return %arg0, %c0_i32 : i32, i32
  }
  func.func @transform_1(%arg0: i32) -> (i32, i32) {
    %c0_i32 = arith.constant 0 : i32
    %c0_i32_0 = arith.constant 0 : i32
    %c0_i32_1 = arith.constant 0 : i32
    return %c0_i32, %c0_i32_0 : i32, i32
  }
  func.func @transform_2(%arg0: i32) -> (i32, i32) {
    %c0_i32 = arith.constant 0 : i32
    %c0_i32_0 = arith.constant 0 : i32
    %c0_i32_1 = arith.constant 0 : i32
    return %c0_i32, %c0_i32_0 : i32, i32
  }
  func.func @transform_3(%arg0: i32) -> (i32, i32) {
    %c0_i32 = arith.constant 0 : i32
    %c0_i32_0 = arith.constant 0 : i32
    return %arg0, %c0_i32 : i32, i32
  }
}

</mosaic_0001>

<bundles_post_ra>
// kernel: cnn_forward.4
= control target key start
LH: loop header
LB: loop body
LE: loop exit
PB: predicated region body
PF: predicated region fallthrough
CT: control target
= control target key end

     0   :  { %s2916_s4 = inlined_call_operand.vmem [shape: bf16[128,128], index: 4, kind: input, shape index: {}]   ;;  %s2917_s0 = inlined_call_operand.vmem [shape: bf16[392,128], index: 0, kind: input, shape index: {}]   ;;  %s2918_s1 = inlined_call_operand.vmem [shape: bf16[392,128], index: 1, kind: input, shape index: {}]   ;;  %s2919_s2 = inlined_call_operand.vmem [shape: bf16[392,128], index: 2, kind: input, shape index: {}]   ;;  %s2920_s3 = inlined_call_operand.vmem [shape: bf16[392,128], index: 3, kind: input, shape index: {}]   ;;  %s2921_s5 = inlined_call_operand.vmem [shape: f32[1,128], index: 5, kind: input, shape index: {}]   ;;  %s2922_s6 = inlined_call_operand.vmem [shape: bf16[392,128], index: 6, kind: output, shape index: {}]  }
   0x1   :  { %v2181_v0 = vld [vmem:[%s2916_s4 + $0x38] sm:$0xff]  ;;  %v2180_v1 = vld [vmem:[%s2916_s4 + $0x30] sm:$0xff]  ;;  %v2179_v2 = vld [vmem:[%s2916_s4 + $0x28] sm:$0xff] }
   0x2   :  { %284 = vmatpush.bf16.msra.mxu0 %v2181_v0  ;;  %614 = vmatpush.bf16.msra.mxu1 %v2181_v0  ;;  %v2178_v3 = vld [vmem:[%s2916_s4 + $0x20] sm:$0xff]  ;;  %v2177_v4 = vld [vmem:[%s2916_s4 + $0x18] sm:$0xff]  ;;  %v2176_v5 = vld [vmem:[%s2916_s4 + $0x10] sm:$0xff] }
   0x3   :  { %944 = vmatpush.bf16.msra.mxu2 %v2181_v0  ;;  %1274 = vmatpush.bf16.msra.mxu3 %v2181_v0  ;;  %v2175_v6 = vld [vmem:[%s2916_s4 + $0x8] sm:$0xff]  ;;  %v2174_v7 = vld [vmem:[%s2916_s4] sm:$0xff]  ;;  %v2184_v16 = vld [vmem:[%s2917_s0 + $0x10] sm:$0xff] }
   0x4   :  { %v2182_v8 = vld [vmem:[%s2917_s0] sm:$0xff]  ;;  %v2183_v12 = vld [vmem:[%s2917_s0 + $0x8] sm:$0xff]  ;;  %v2208_v17 = vld [vmem:[%s2918_s1 + $0x10] sm:$0xff] }
   0x5   :  { %v2206_v9 = vld [vmem:[%s2918_s1] sm:$0xff]  ;;  %v2207_v13 = vld [vmem:[%s2918_s1 + $0x8] sm:$0xff]  ;;  %v2232_v18 = vld [vmem:[%s2919_s2 + $0x10] sm:$0xff] }
   0x6   :  { %285 = vmatpush.bf16.msra.mxu0 %v2180_v1  ;;  %615 = vmatpush.bf16.msra.mxu1 %v2180_v1  ;;  %v2230_v10 = vld [vmem:[%s2919_s2] sm:$0xff]  ;;  %v2231_v14 = vld [vmem:[%s2919_s2 + $0x8] sm:$0xff]  ;;  %v2256_v19 = vld [vmem:[%s2920_s3 + $0x10] sm:$0xff] }
   0x7   :  { %945 = vmatpush.bf16.msra.mxu2 %v2180_v1  ;;  %1275 = vmatpush.bf16.msra.mxu3 %v2180_v1  ;;  %v2254_v11 = vld [vmem:[%s2920_s3] sm:$0xff]  ;;  %v2255_v15 = vld [vmem:[%s2920_s3 + $0x8] sm:$0xff]  ;;  %v2185_v20 = vld [vmem:[%s2917_s0 + $0x18] sm:$0xff] }
   0x8   :  { %v2209_v21 = vld [vmem:[%s2918_s1 + $0x18] sm:$0xff]  ;;  %v2186_v24 = vld [vmem:[%s2917_s0 + $0x20] sm:$0xff]  ;;  %v2187_v28 = vld [vmem:[%s2917_s0 + $0x28] sm:$0xff] }
   0x9   :  { %v2233_v22 = vld [vmem:[%s2919_s2 + $0x18] sm:$0xff]  ;;  %v2210_v25 = vld [vmem:[%s2918_s1 + $0x20] sm:$0xff]  ;;  %v2211_v29 = vld [vmem:[%s2918_s1 + $0x28] sm:$0xff] }
   0xa   :  { %286 = vmatpush.bf16.msra.mxu0 %v2179_v2  ;;  %616 = vmatpush.bf16.msra.mxu1 %v2179_v2  ;;  %v2257_v23 = vld [vmem:[%s2920_s3 + $0x18] sm:$0xff]  ;;  %v2234_v26 = vld [vmem:[%s2919_s2 + $0x20] sm:$0xff]  ;;  %v2235_v30 = vld [vmem:[%s2919_s2 + $0x28] sm:$0xff] }
   0xb   :  { %946 = vmatpush.bf16.msra.mxu2 %v2179_v2  ;;  %1276 = vmatpush.bf16.msra.mxu3 %v2179_v2  ;;  %v2258_v27 = vld [vmem:[%s2920_s3 + $0x20] sm:$0xff]  ;;  %v2259_v31 = vld [vmem:[%s2920_s3 + $0x28] sm:$0xff]  ;;  %v2188_v32 = vld [vmem:[%s2917_s0 + $0x30] sm:$0xff] }
   0xc   :  { %v2212_v33 = vld [vmem:[%s2918_s1 + $0x30] sm:$0xff]  ;;  %v2189_v36 = vld [vmem:[%s2917_s0 + $0x38] sm:$0xff]  ;;  %v2190_v40 = vld [vmem:[%s2917_s0 + $0x40] sm:$0xff] }
   0xd   :  { %v2236_v34 = vld [vmem:[%s2919_s2 + $0x30] sm:$0xff]  ;;  %v2213_v37 = vld [vmem:[%s2918_s1 + $0x38] sm:$0xff]  ;;  %v2214_v41 = vld [vmem:[%s2918_s1 + $0x40] sm:$0xff] }
   0xe   :  { %287 = vmatpush.bf16.msra.mxu0 %v2178_v3  ;;  %617 = vmatpush.bf16.msra.mxu1 %v2178_v3  ;;  %v2260_v35 = vld [vmem:[%s2920_s3 + $0x30] sm:$0xff]  ;;  %v2237_v38 = vld [vmem:[%s2919_s2 + $0x38] sm:$0xff]  ;;  %v2238_v44 = vld [vmem:[%s2919_s2 + $0x40] sm:$0xff] }
   0xf   :  { %947 = vmatpush.bf16.msra.mxu2 %v2178_v3  ;;  %1277 = vmatpush.bf16.msra.mxu3 %v2178_v3  ;;  %v2261_v39 = vld [vmem:[%s2920_s3 + $0x38] sm:$0xff]  ;;  %v2262_v45 = vld [vmem:[%s2920_s3 + $0x40] sm:$0xff]  ;;  %v2191_v56 = vld [vmem:[%s2917_s0 + $0x48] sm:$0xff] }
  0x10   :  { %v2593_v53 = vld [vmem:[%s2921_s5] ss:$0 sm:$0xff]  ;;  %v2215_v57 = vld [vmem:[%s2918_s1 + $0x48] sm:$0xff] }
  0x11   :  { %v2239_v62 = vld [vmem:[%s2919_s2 + $0x48] sm:$0xff] }
  0x12   :  { %288 = vmatpush.bf16.msra.mxu0 %v2177_v4  ;;  %618 = vmatpush.bf16.msra.mxu1 %v2177_v4  ;;  %v2263_v63 = vld [vmem:[%s2920_s3 + $0x48] sm:$0xff] }
  0x13   :  { %948 = vmatpush.bf16.msra.mxu2 %v2177_v4  ;;  %1278 = vmatpush.bf16.msra.mxu3 %v2177_v4 }
  0x16   :  { %289 = vmatpush.bf16.msra.mxu0 %v2176_v5  ;;  %619 = vmatpush.bf16.msra.mxu1 %v2176_v5 }
  0x17   :  { %949 = vmatpush.bf16.msra.mxu2 %v2176_v5  ;;  %1279 = vmatpush.bf16.msra.mxu3 %v2176_v5 }
  0x1a   :  { %290 = vmatpush.bf16.msra.mxu0 %v2175_v6  ;;  %620 = vmatpush.bf16.msra.mxu1 %v2175_v6 }
  0x1b   :  { %950 = vmatpush.bf16.msra.mxu2 %v2175_v6  ;;  %1280 = vmatpush.bf16.msra.mxu3 %v2175_v6 }
  0x1e   :  { %291 = vmatpush.bf16.msra.mxu0 %v2174_v7  ;;  %621 = vmatpush.bf16.msra.mxu1 %v2174_v7 }
  0x1f   :  { %951 = vmatpush.bf16.msra.mxu2 %v2174_v7  ;;  %1281 = vmatpush.bf16.msra.mxu3 %v2174_v7 }
  0x21   :  { %292 = vmatmul.bf16.vlgmr.msra.gmra.mxu0 %v2182_v8  ;;  %622 = vmatmul.bf16.vlgmr.msra.gmra.mxu1 %v2206_v9 }
  0x22   :  { %952 = vmatmul.bf16.vlgmr.msra.gmra.mxu2 %v2230_v10  ;;  %1282 = vmatmul.bf16.vlgmr.msra.gmra.mxu3 %v2254_v11 }
  0x31   :  { %297 = vmatmul.bf16.gmra.mxu0 %v2183_v12  ;;  %627 = vmatmul.bf16.gmra.mxu1 %v2207_v13 }
  0x32   :  { %957 = vmatmul.bf16.gmra.mxu2 %v2231_v14  ;;  %1287 = vmatmul.bf16.gmra.mxu3 %v2255_v15  ;;  %v2192_v15 = vld [vmem:[%s2917_s0 + $0x50] sm:$0xff] }
  0x41   :  { %302 = vmatmul.bf16.gmra.mxu0 %v2184_v16  ;;  %632 = vmatmul.bf16.gmra.mxu1 %v2208_v17  ;;  %v2216_v16 = vld [vmem:[%s2918_s1 + $0x50] sm:$0xff] }
  0x42   :  { %962 = vmatmul.bf16.gmra.mxu2 %v2232_v18  ;;  %1292 = vmatmul.bf16.gmra.mxu3 %v2256_v19 }
  0x51   :  { %307 = vmatmul.bf16.gmra.mxu0 %v2185_v20  ;;  %637 = vmatmul.bf16.gmra.mxu1 %v2209_v21  ;;  %v2240_v21 = vld [vmem:[%s2919_s2 + $0x50] sm:$0xff] }
  0x52   :  { %967 = vmatmul.bf16.gmra.mxu2 %v2233_v22  ;;  %1297 = vmatmul.bf16.gmra.mxu3 %v2257_v23  ;;  %v2264_v22 = vld [vmem:[%s2920_s3 + $0x50] sm:$0xff] }
  0x61   :  { %312 = vmatmul.bf16.gmra.mxu0 %v2186_v24  ;;  %642 = vmatmul.bf16.gmra.mxu1 %v2210_v25 }
  0x62   :  { %972 = vmatmul.bf16.gmra.mxu2 %v2234_v26  ;;  %1302 = vmatmul.bf16.gmra.mxu3 %v2258_v27 }
  0x71   :  { %317 = vmatmul.bf16.gmra.mxu0 %v2187_v28  ;;  %647 = vmatmul.bf16.gmra.mxu1 %v2211_v29 }
  0x72   :  { %977 = vmatmul.bf16.gmra.mxu2 %v2235_v30  ;;  %1307 = vmatmul.bf16.gmra.mxu3 %v2259_v31 }
  0x81   :  { %322 = vmatmul.bf16.gmra.mxu0 %v2188_v32  ;;  %652 = vmatmul.bf16.gmra.mxu1 %v2212_v33 }
  0x82   :  { %982 = vmatmul.bf16.gmra.mxu2 %v2236_v34  ;;  %1312 = vmatmul.bf16.gmra.mxu3 %v2260_v35 }
  0x91   :  { %327 = vmatmul.bf16.gmra.mxu0 %v2189_v36  ;;  %657 = vmatmul.bf16.gmra.mxu1 %v2213_v37 }
  0x92   :  { %987 = vmatmul.bf16.gmra.mxu2 %v2237_v38  ;;  %1317 = vmatmul.bf16.gmra.mxu3 %v2261_v39  ;;  %v2193_v38 = vld [vmem:[%s2917_s0 + $0x58] sm:$0xff] }
  0x93   :  { %v2217_v39 = vld [vmem:[%s2918_s1 + $0x58] sm:$0xff] }
  0x9e   :  { %v293_v42 = vpop.f32.mrf.mxu0  ;;  %v623_v43 = vpop.f32.mrf.mxu1 }
  0x9f   :  { %v1407_v50 = vmax.f32 %v293_v42, %v623_v43 }
  0xa1   :  { %332 = vmatmul.bf16.gmra.mxu0 %v2190_v40  ;;  %662 = vmatmul.bf16.gmra.mxu1 %v2214_v41 }
  0xa2   :  { %992 = vmatmul.bf16.gmra.mxu2 %v2238_v44  ;;  %1322 = vmatmul.bf16.gmra.mxu3 %v2262_v45  ;;  %v2241_v44 = vld [vmem:[%s2919_s2 + $0x58] sm:$0xff] }
  0xa3   :  { %v2265_v45 = vld [vmem:[%s2920_s3 + $0x58] sm:$0xff] }
  0xa5   :  { %v953_v46 = vpop.f32.mrf.mxu2  ;;  %v1283_v47 = vpop.f32.mrf.mxu3 }
  0xa6   :  { %v295_v48 = vpop.f32.mrf.mxu0  ;;  %v625_v49 = vpop.f32.mrf.mxu1  ;;  %v1456_v51 = vmax.f32 %v953_v46, %v1283_v47 }
  0xa7   :  { %v1408_v58 = vmax.f32 %v295_v48, %v625_v49 }
  0xa8   :  { %v1505_v52 = vmax.f32 %v1407_v50, %v1456_v51 }
  0xaa   :  { %v1558_v0 = vadd.f32 %v2593_v53, %v1505_v52 }
  0xac   :  { %v1607_v3 = vmax.f32 %v1558_v0, 0.0 }
  0xad   :  { %v955_v54 = vpop.f32.mrf.mxu2  ;;  %v1285_v55 = vpop.f32.mrf.mxu3 }
  0xae   :  { %v1457_v59 = vmax.f32 %v955_v54, %v1285_v55  ;;  %v298_v60 = vpop.f32.mrf.mxu0  ;;  %v628_v61 = vpop.f32.mrf.mxu1 }
  0xaf   :  { %v1409_v10 = vmax.f32 %v298_v60, %v628_v61 }
  0xb0   :  { %v1506_v1 = vmax.f32 %v1408_v58, %v1457_v59 }
  0xb1   :  { %337 = vmatmul.bf16.gmra.mxu0 %v2191_v56  ;;  %667 = vmatmul.bf16.gmra.mxu1 %v2215_v57 }
  0xb2   :  { %v1559_v2 = vadd.f32 %v2593_v53, %v1506_v1  ;;  %997 = vmatmul.bf16.gmra.mxu2 %v2239_v62  ;;  %1327 = vmatmul.bf16.gmra.mxu3 %v2263_v63  ;;  %v2194_v62 = vld [vmem:[%s2917_s0 + $0x60] sm:$0xff] }
  0xb3   :  { %v2218_v63 = vld [vmem:[%s2918_s1 + $0x60] sm:$0xff] }
  0xb4   :  { %v1608_v4 = vmax.f32 %v1559_v2, 0.0 }
  0xb5   :  { %v958_v5 = vpop.f32.mrf.mxu2  ;;  %v1288_v6 = vpop.f32.mrf.mxu3 }
  0xb6   :  { %v2281_v7 = vpack.c.bf16 %v1608_v4, %v1607_v3  ;;  %v300_v8 = vpop.f32.mrf.mxu0  ;;  %v630_v9 = vpop.f32.mrf.mxu1  ;;  %v1458_v11 = vmax.f32 %v958_v5, %v1288_v6  ;;  %v2242_v4 = vld [vmem:[%s2919_s2 + $0x60] sm:$0xff] }
  0xb7   :  { %v1410_v17 = vmax.f32 %v300_v8, %v630_v9  ;;  %v2266_v5 = vld [vmem:[%s2920_s3 + $0x60] sm:$0xff] }
  0xb8   :  { %2282 = vst [vmem:[%s2922_s6] sm:$0xff] %v2281_v7   ;;  %v1507_v12 = vmax.f32 %v1409_v10, %v1458_v11 }
  0xba   :  { %v1560_v23 = vadd.f32 %v2593_v53, %v1507_v12 }
  0xbc   :  { %v1609_v26 = vmax.f32 %v1560_v23, 0.0 }
  0xbd   :  { %v960_v13 = vpop.f32.mrf.mxu2  ;;  %v1290_v14 = vpop.f32.mrf.mxu3 }
  0xbe   :  { %v1459_v18 = vmax.f32 %v960_v13, %v1290_v14  ;;  %v303_v19 = vpop.f32.mrf.mxu0  ;;  %v633_v20 = vpop.f32.mrf.mxu1 }
  0xbf   :  { %v1411_v33 = vmax.f32 %v303_v19, %v633_v20 }
  0xc0   :  { %v1508_v24 = vmax.f32 %v1410_v17, %v1459_v18 }
  0xc1   :  { %342 = vmatmul.bf16.gmra.mxu0 %v2192_v15  ;;  %672 = vmatmul.bf16.gmra.mxu1 %v2216_v16 }
  0xc2   :  { %v1561_v25 = vadd.f32 %v2593_v53, %v1508_v24  ;;  %1002 = vmatmul.bf16.gmra.mxu2 %v2240_v21  ;;  %1332 = vmatmul.bf16.gmra.mxu3 %v2264_v22  ;;  %v2195_v21 = vld [vmem:[%s2917_s0 + $0x68] sm:$0xff] }
  0xc3   :  { %v2219_v22 = vld [vmem:[%s2918_s1 + $0x68] sm:$0xff] }
  0xc4   :  { %v1610_v27 = vmax.f32 %v1561_v25, 0.0 }
  0xc5   :  { %v963_v28 = vpop.f32.mrf.mxu2  ;;  %v1293_v29 = vpop.f32.mrf.mxu3 }
  0xc6   :  { %v2286_v30 = vpack.c.bf16 %v1610_v27, %v1609_v26  ;;  %v305_v31 = vpop.f32.mrf.mxu0  ;;  %v635_v32 = vpop.f32.mrf.mxu1  ;;  %v1460_v34 = vmax.f32 %v963_v28, %v1293_v29  ;;  %v2243_v27 = vld [vmem:[%s2919_s2 + $0x68] sm:$0xff] }
  0xc7   :  { %v1412_v40 = vmax.f32 %v305_v31, %v635_v32  ;;  %v2267_v28 = vld [vmem:[%s2920_s3 + $0x68] sm:$0xff] }
  0xc8   :  { %2398 = vst [vmem:[%s2922_s6 + $0x8] sm:$0xff] %v2286_v30   ;;  %v1509_v35 = vmax.f32 %v1411_v33, %v1460_v34 }
  0xca   :  { %v1562_v46 = vadd.f32 %v2593_v53, %v1509_v35 }
  0xcc   :  { %v1611_v49 = vmax.f32 %v1562_v46, 0.0 }
  0xcd   :  { %v965_v36 = vpop.f32.mrf.mxu2  ;;  %v1295_v37 = vpop.f32.mrf.mxu3 }
  0xce   :  { %v1461_v41 = vmax.f32 %v965_v36, %v1295_v37  ;;  %v308_v42 = vpop.f32.mrf.mxu0  ;;  %v638_v43 = vpop.f32.mrf.mxu1 }
  0xcf   :  { %v1413_v57 = vmax.f32 %v308_v42, %v638_v43 }
  0xd0   :  { %v1510_v47 = vmax.f32 %v1412_v40, %v1461_v41 }
  0xd1   :  { %347 = vmatmul.bf16.gmra.mxu0 %v2193_v38  ;;  %677 = vmatmul.bf16.gmra.mxu1 %v2217_v39 }
  0xd2   :  { %v1563_v48 = vadd.f32 %v2593_v53, %v1510_v47  ;;  %1007 = vmatmul.bf16.gmra.mxu2 %v2241_v44  ;;  %1337 = vmatmul.bf16.gmra.mxu3 %v2265_v45  ;;  %v2196_v44 = vld [vmem:[%s2917_s0 + $0x70] sm:$0xff] }
  0xd3   :  { %v2220_v45 = vld [vmem:[%s2918_s1 + $0x70] sm:$0xff] }
  0xd4   :  { %v1612_v50 = vmax.f32 %v1563_v48, 0.0 }
  0xd5   :  { %v968_v51 = vpop.f32.mrf.mxu2  ;;  %v1298_v52 = vpop.f32.mrf.mxu3 }
  0xd6   :  { %v2291_v54 = vpack.c.bf16 %v1612_v50, %v1611_v49  ;;  %v310_v55 = vpop.f32.mrf.mxu0  ;;  %v640_v56 = vpop.f32.mrf.mxu1  ;;  %v1462_v58 = vmax.f32 %v968_v51, %v1298_v52  ;;  %v2244_v50 = vld [vmem:[%s2919_s2 + $0x70] sm:$0xff] }
  0xd7   :  { %v1414_v0 = vmax.f32 %v310_v55, %v640_v56  ;;  %v2268_v51 = vld [vmem:[%s2920_s3 + $0x70] sm:$0xff] }
  0xd8   :  { %2399 = vst [vmem:[%s2922_s6 + $0x10] sm:$0xff] %v2291_v54   ;;  %v1511_v59 = vmax.f32 %v1413_v57, %v1462_v58 }
  0xda   :  { %v1564_v6 = vadd.f32 %v2593_v53, %v1511_v59 }
  0xdc   :  { %v1613_v9 = vmax.f32 %v1564_v6, 0.0 }
  0xdd   :  { %v970_v60 = vpop.f32.mrf.mxu2  ;;  %v1300_v61 = vpop.f32.mrf.mxu3 }
  0xde   :  { %v1463_v1 = vmax.f32 %v970_v60, %v1300_v61  ;;  %v313_v2 = vpop.f32.mrf.mxu0  ;;  %v643_v3 = vpop.f32.mrf.mxu1 }
  0xdf   :  { %v1415_v16 = vmax.f32 %v313_v2, %v643_v3 }
  0xe0   :  { %v1512_v7 = vmax.f32 %v1414_v0, %v1463_v1 }
  0xe1   :  { %352 = vmatmul.bf16.gmra.mxu0 %v2194_v62  ;;  %682 = vmatmul.bf16.gmra.mxu1 %v2218_v63 }
  0xe2   :  { %v1565_v8 = vadd.f32 %v2593_v53, %v1512_v7  ;;  %1012 = vmatmul.bf16.gmra.mxu2 %v2242_v4  ;;  %1342 = vmatmul.bf16.gmra.mxu3 %v2266_v5  ;;  %v2197_v4 = vld [vmem:[%s2917_s0 + $0x78] sm:$0xff] }
  0xe3   :  { %v2221_v5 = vld [vmem:[%s2918_s1 + $0x78] sm:$0xff] }
  0xe4   :  { %v1614_v10 = vmax.f32 %v1565_v8, 0.0 }
  0xe5   :  { %v973_v11 = vpop.f32.mrf.mxu2  ;;  %v1303_v12 = vpop.f32.mrf.mxu3 }
  0xe6   :  { %v2296_v13 = vpack.c.bf16 %v1614_v10, %v1613_v9  ;;  %v315_v14 = vpop.f32.mrf.mxu0  ;;  %v645_v15 = vpop.f32.mrf.mxu1  ;;  %v1464_v17 = vmax.f32 %v973_v11, %v1303_v12  ;;  %v2245_v10 = vld [vmem:[%s2919_s2 + $0x78] sm:$0xff] }
  0xe7   :  { %v1416_v23 = vmax.f32 %v315_v14, %v645_v15  ;;  %v2269_v11 = vld [vmem:[%s2920_s3 + $0x78] sm:$0xff] }
  0xe8   :  { %2400 = vst [vmem:[%s2922_s6 + $0x18] sm:$0xff] %v2296_v13   ;;  %v1513_v18 = vmax.f32 %v1415_v16, %v1464_v17 }
  0xea   :  { %v1566_v29 = vadd.f32 %v2593_v53, %v1513_v18 }
  0xec   :  { %v1615_v32 = vmax.f32 %v1566_v29, 0.0 }
  0xed   :  { %v975_v19 = vpop.f32.mrf.mxu2  ;;  %v1305_v20 = vpop.f32.mrf.mxu3 }
  0xee   :  { %v1465_v24 = vmax.f32 %v975_v19, %v1305_v20  ;;  %v318_v25 = vpop.f32.mrf.mxu0  ;;  %v648_v26 = vpop.f32.mrf.mxu1 }
  0xef   :  { %v1417_v39 = vmax.f32 %v318_v25, %v648_v26 }
  0xf0   :  { %v1514_v30 = vmax.f32 %v1416_v23, %v1465_v24 }
  0xf1   :  { %357 = vmatmul.bf16.gmra.mxu0 %v2195_v21  ;;  %687 = vmatmul.bf16.gmra.mxu1 %v2219_v22 }
  0xf2   :  { %v1567_v31 = vadd.f32 %v2593_v53, %v1514_v30  ;;  %1017 = vmatmul.bf16.gmra.mxu2 %v2243_v27  ;;  %1347 = vmatmul.bf16.gmra.mxu3 %v2267_v28  ;;  %v2198_v27 = vld [vmem:[%s2917_s0 + $0x80] sm:$0xff] }
  0xf3   :  { %v2222_v28 = vld [vmem:[%s2918_s1 + $0x80] sm:$0xff] }
  0xf4   :  { %v1616_v33 = vmax.f32 %v1567_v31, 0.0 }
  0xf5   :  { %v978_v34 = vpop.f32.mrf.mxu2  ;;  %v1308_v35 = vpop.f32.mrf.mxu3 }
  0xf6   :  { %v2301_v36 = vpack.c.bf16 %v1616_v33, %v1615_v32  ;;  %v320_v37 = vpop.f32.mrf.mxu0  ;;  %v650_v38 = vpop.f32.mrf.mxu1  ;;  %v1466_v40 = vmax.f32 %v978_v34, %v1308_v35  ;;  %v2246_v33 = vld [vmem:[%s2919_s2 + $0x80] sm:$0xff] }
  0xf7   :  { %v1418_v46 = vmax.f32 %v320_v37, %v650_v38  ;;  %v2270_v34 = vld [vmem:[%s2920_s3 + $0x80] sm:$0xff] }
  0xf8   :  { %2401 = vst [vmem:[%s2922_s6 + $0x20] sm:$0xff] %v2301_v36   ;;  %v1515_v41 = vmax.f32 %v1417_v39, %v1466_v40 }
  0xfa   :  { %v1568_v52 = vadd.f32 %v2593_v53, %v1515_v41 }
  0xfc   :  { %v1617_v56 = vmax.f32 %v1568_v52, 0.0 }
  0xfd   :  { %v980_v42 = vpop.f32.mrf.mxu2  ;;  %v1310_v43 = vpop.f32.mrf.mxu3 }
  0xfe   :  { %v1467_v47 = vmax.f32 %v980_v42, %v1310_v43  ;;  %v323_v48 = vpop.f32.mrf.mxu0  ;;  %v653_v49 = vpop.f32.mrf.mxu1 }
  0xff   :  { %v1419_v63 = vmax.f32 %v323_v48, %v653_v49 }
 0x100   :  { %v1516_v54 = vmax.f32 %v1418_v46, %v1467_v47 }
 0x101   :  { %362 = vmatmul.bf16.gmra.mxu0 %v2196_v44  ;;  %692 = vmatmul.bf16.gmra.mxu1 %v2220_v45 }
 0x102   :  { %v1569_v55 = vadd.f32 %v2593_v53, %v1516_v54  ;;  %1022 = vmatmul.bf16.gmra.mxu2 %v2244_v50  ;;  %1352 = vmatmul.bf16.gmra.mxu3 %v2268_v51  ;;  %v2199_v50 = vld [vmem:[%s2917_s0 + $0x88] sm:$0xff] }
 0x103   :  { %v2223_v51 = vld [vmem:[%s2918_s1 + $0x88] sm:$0xff] }
 0x104   :  { %v1618_v57 = vmax.f32 %v1569_v55, 0.0 }
 0x105   :  { %v983_v58 = vpop.f32.mrf.mxu2  ;;  %v1313_v59 = vpop.f32.mrf.mxu3 }
 0x106   :  { %v2306_v60 = vpack.c.bf16 %v1618_v57, %v1617_v56  ;;  %v325_v61 = vpop.f32.mrf.mxu0  ;;  %v655_v62 = vpop.f32.mrf.mxu1  ;;  %v1468_v0 = vmax.f32 %v983_v58, %v1313_v59  ;;  %v2247_v57 = vld [vmem:[%s2919_s2 + $0x88] sm:$0xff] }
 0x107   :  { %v1420_v6 = vmax.f32 %v325_v61, %v655_v62  ;;  %v2271_v58 = vld [vmem:[%s2920_s3 + $0x88] sm:$0xff] }
 0x108   :  { %2402 = vst [vmem:[%s2922_s6 + $0x28] sm:$0xff] %v2306_v60   ;;  %v1517_v1 = vmax.f32 %v1419_v63, %v1468_v0 }
 0x10a   :  { %v1570_v12 = vadd.f32 %v2593_v53, %v1517_v1 }
 0x10c   :  { %v1619_v15 = vmax.f32 %v1570_v12, 0.0 }
 0x10d   :  { %v985_v2 = vpop.f32.mrf.mxu2  ;;  %v1315_v3 = vpop.f32.mrf.mxu3 }
 0x10e   :  { %v1469_v7 = vmax.f32 %v985_v2, %v1315_v3  ;;  %v328_v8 = vpop.f32.mrf.mxu0  ;;  %v658_v9 = vpop.f32.mrf.mxu1 }
 0x10f   :  { %v1421_v22 = vmax.f32 %v328_v8, %v658_v9 }
 0x110   :  { %v1518_v13 = vmax.f32 %v1420_v6, %v1469_v7 }
 0x111   :  { %367 = vmatmul.bf16.gmra.mxu0 %v2197_v4  ;;  %697 = vmatmul.bf16.gmra.mxu1 %v2221_v5 }
 0x112   :  { %v1571_v14 = vadd.f32 %v2593_v53, %v1518_v13  ;;  %1027 = vmatmul.bf16.gmra.mxu2 %v2245_v10  ;;  %1357 = vmatmul.bf16.gmra.mxu3 %v2269_v11  ;;  %v2200_v10 = vld [vmem:[%s2917_s0 + $0x90] sm:$0xff] }
 0x113   :  { %v2224_v11 = vld [vmem:[%s2918_s1 + $0x90] sm:$0xff] }
 0x114   :  { %v1620_v16 = vmax.f32 %v1571_v14, 0.0 }
 0x115   :  { %v988_v17 = vpop.f32.mrf.mxu2  ;;  %v1318_v18 = vpop.f32.mrf.mxu3 }
 0x116   :  { %v2311_v19 = vpack.c.bf16 %v1620_v16, %v1619_v15  ;;  %v330_v20 = vpop.f32.mrf.mxu0  ;;  %v660_v21 = vpop.f32.mrf.mxu1  ;;  %v1470_v23 = vmax.f32 %v988_v17, %v1318_v18  ;;  %v2248_v16 = vld [vmem:[%s2919_s2 + $0x90] sm:$0xff] }
 0x117   :  { %v1422_v29 = vmax.f32 %v330_v20, %v660_v21  ;;  %v2272_v17 = vld [vmem:[%s2920_s3 + $0x90] sm:$0xff] }
 0x118   :  { %2403 = vst [vmem:[%s2922_s6 + $0x30] sm:$0xff] %v2311_v19   ;;  %v1519_v24 = vmax.f32 %v1421_v22, %v1470_v23 }
 0x11a   :  { %v1572_v35 = vadd.f32 %v2593_v53, %v1519_v24 }
 0x11c   :  { %v1621_v38 = vmax.f32 %v1572_v35, 0.0 }
 0x11d   :  { %v990_v25 = vpop.f32.mrf.mxu2  ;;  %v1320_v26 = vpop.f32.mrf.mxu3 }
 0x11e   :  { %v1471_v30 = vmax.f32 %v990_v25, %v1320_v26  ;;  %v333_v31 = vpop.f32.mrf.mxu0  ;;  %v663_v32 = vpop.f32.mrf.mxu1 }
 0x11f   :  { %v1423_v45 = vmax.f32 %v333_v31, %v663_v32 }
 0x120   :  { %v1520_v36 = vmax.f32 %v1422_v29, %v1471_v30 }
 0x121   :  { %372 = vmatmul.bf16.gmra.mxu0 %v2198_v27  ;;  %702 = vmatmul.bf16.gmra.mxu1 %v2222_v28 }
 0x122   :  { %v1573_v37 = vadd.f32 %v2593_v53, %v1520_v36  ;;  %1032 = vmatmul.bf16.gmra.mxu2 %v2246_v33  ;;  %1362 = vmatmul.bf16.gmra.mxu3 %v2270_v34  ;;  %v2201_v33 = vld [vmem:[%s2917_s0 + $0x98] sm:$0xff] }
 0x123   :  { %v2225_v34 = vld [vmem:[%s2918_s1 + $0x98] sm:$0xff] }
 0x124   :  { %v1622_v39 = vmax.f32 %v1573_v37, 0.0 }
 0x125   :  { %v993_v40 = vpop.f32.mrf.mxu2  ;;  %v1323_v41 = vpop.f32.mrf.mxu3 }
 0x126   :  { %v2316_v42 = vpack.c.bf16 %v1622_v39, %v1621_v38  ;;  %v335_v43 = vpop.f32.mrf.mxu0  ;;  %v665_v44 = vpop.f32.mrf.mxu1  ;;  %v1472_v46 = vmax.f32 %v993_v40, %v1323_v41  ;;  %v2249_v39 = vld [vmem:[%s2919_s2 + $0x98] sm:$0xff] }
 0x127   :  { %v1424_v52 = vmax.f32 %v335_v43, %v665_v44  ;;  %v2273_v40 = vld [vmem:[%s2920_s3 + $0x98] sm:$0xff] }
 0x128   :  { %2404 = vst [vmem:[%s2922_s6 + $0x38] sm:$0xff] %v2316_v42   ;;  %v1521_v47 = vmax.f32 %v1423_v45, %v1472_v46 }
 0x12a   :  { %v1574_v59 = vadd.f32 %v2593_v53, %v1521_v47 }
 0x12c   :  { %v1623_v62 = vmax.f32 %v1574_v59, 0.0 }
 0x12d   :  { %v995_v48 = vpop.f32.mrf.mxu2  ;;  %v1325_v49 = vpop.f32.mrf.mxu3 }
 0x12e   :  { %v1473_v54 = vmax.f32 %v995_v48, %v1325_v49  ;;  %v338_v55 = vpop.f32.mrf.mxu0  ;;  %v668_v56 = vpop.f32.mrf.mxu1 }
 0x12f   :  { %v1425_v5 = vmax.f32 %v338_v55, %v668_v56 }
 0x130   :  { %v1522_v60 = vmax.f32 %v1424_v52, %v1473_v54 }
 0x131   :  { %377 = vmatmul.bf16.gmra.mxu0 %v2199_v50  ;;  %707 = vmatmul.bf16.gmra.mxu1 %v2223_v51 }
 0x132   :  { %v1575_v61 = vadd.f32 %v2593_v53, %v1522_v60  ;;  %1037 = vmatmul.bf16.gmra.mxu2 %v2247_v57  ;;  %1367 = vmatmul.bf16.gmra.mxu3 %v2271_v58  ;;  %v2202_v57 = vld [vmem:[%s2917_s0 + $0xa0] sm:$0xff] }
 0x133   :  { %v2226_v58 = vld [vmem:[%s2918_s1 + $0xa0] sm:$0xff] }
 0x134   :  { %v1624_v63 = vmax.f32 %v1575_v61, 0.0 }
 0x135   :  { %v998_v0 = vpop.f32.mrf.mxu2  ;;  %v1328_v1 = vpop.f32.mrf.mxu3 }
 0x136   :  { %v2321_v2 = vpack.c.bf16 %v1624_v63, %v1623_v62  ;;  %v340_v3 = vpop.f32.mrf.mxu0  ;;  %v670_v4 = vpop.f32.mrf.mxu1  ;;  %v1474_v6 = vmax.f32 %v998_v0, %v1328_v1  ;;  %v2250_v63 = vld [vmem:[%s2919_s2 + $0xa0] sm:$0xff] }
 0x137   :  { %v1426_v12 = vmax.f32 %v340_v3, %v670_v4  ;;  %v2274_v0 = vld [vmem:[%s2920_s3 + $0xa0] sm:$0xff] }
 0x138   :  { %2405 = vst [vmem:[%s2922_s6 + $0x40] sm:$0xff] %v2321_v2   ;;  %v1523_v7 = vmax.f32 %v1425_v5, %v1474_v6 }
 0x13a   :  { %v1576_v18 = vadd.f32 %v2593_v53, %v1523_v7 }
 0x13c   :  { %v1625_v21 = vmax.f32 %v1576_v18, 0.0 }
 0x13d   :  { %v1000_v8 = vpop.f32.mrf.mxu2  ;;  %v1330_v9 = vpop.f32.mrf.mxu3 }
 0x13e   :  { %v1475_v13 = vmax.f32 %v1000_v8, %v1330_v9  ;;  %v343_v14 = vpop.f32.mrf.mxu0  ;;  %v673_v15 = vpop.f32.mrf.mxu1 }
 0x13f   :  { %v1427_v28 = vmax.f32 %v343_v14, %v673_v15 }
 0x140   :  { %v1524_v19 = vmax.f32 %v1426_v12, %v1475_v13 }
 0x141   :  { %382 = vmatmul.bf16.gmra.mxu0 %v2200_v10  ;;  %712 = vmatmul.bf16.gmra.mxu1 %v2224_v11 }
 0x142   :  { %v1577_v20 = vadd.f32 %v2593_v53, %v1524_v19  ;;  %1042 = vmatmul.bf16.gmra.mxu2 %v2248_v16  ;;  %1372 = vmatmul.bf16.gmra.mxu3 %v2272_v17  ;;  %v2203_v16 = vld [vmem:[%s2917_s0 + $0xa8] sm:$0xff] }
 0x143   :  { %v2227_v17 = vld [vmem:[%s2918_s1 + $0xa8] sm:$0xff] }
 0x144   :  { %v1626_v22 = vmax.f32 %v1577_v20, 0.0 }
 0x145   :  { %v1003_v23 = vpop.f32.mrf.mxu2  ;;  %v1333_v24 = vpop.f32.mrf.mxu3 }
 0x146   :  { %v2326_v25 = vpack.c.bf16 %v1626_v22, %v1625_v21  ;;  %v345_v26 = vpop.f32.mrf.mxu0  ;;  %v675_v27 = vpop.f32.mrf.mxu1  ;;  %v1476_v29 = vmax.f32 %v1003_v23, %v1333_v24  ;;  %v2251_v22 = vld [vmem:[%s2919_s2 + $0xa8] sm:$0xff] }
 0x147   :  { %v1428_v35 = vmax.f32 %v345_v26, %v675_v27  ;;  %v2275_v23 = vld [vmem:[%s2920_s3 + $0xa8] sm:$0xff] }
 0x148   :  { %2406 = vst [vmem:[%s2922_s6 + $0x48] sm:$0xff] %v2326_v25   ;;  %v1525_v30 = vmax.f32 %v1427_v28, %v1476_v29 }
 0x14a   :  { %v1578_v41 = vadd.f32 %v2593_v53, %v1525_v30 }
 0x14c   :  { %v1627_v44 = vmax.f32 %v1578_v41, 0.0 }
 0x14d   :  { %v1005_v31 = vpop.f32.mrf.mxu2  ;;  %v1335_v32 = vpop.f32.mrf.mxu3 }
 0x14e   :  { %v1477_v36 = vmax.f32 %v1005_v31, %v1335_v32  ;;  %v348_v37 = vpop.f32.mrf.mxu0  ;;  %v678_v38 = vpop.f32.mrf.mxu1 }
 0x14f   :  { %v1429_v51 = vmax.f32 %v348_v37, %v678_v38 }
 0x150   :  { %v1526_v42 = vmax.f32 %v1428_v35, %v1477_v36 }
 0x151   :  { %387 = vmatmul.bf16.gmra.mxu0 %v2201_v33  ;;  %717 = vmatmul.bf16.gmra.mxu1 %v2225_v34 }
 0x152   :  { %v1579_v43 = vadd.f32 %v2593_v53, %v1526_v42  ;;  %1047 = vmatmul.bf16.gmra.mxu2 %v2249_v39  ;;  %1377 = vmatmul.bf16.gmra.mxu3 %v2273_v40  ;;  %v2204_v39 = vld [vmem:[%s2917_s0 + $0xb0] sm:$0xff] }
 0x153   :  { %v2228_v40 = vld [vmem:[%s2918_s1 + $0xb0] sm:$0xff] }
 0x154   :  { %v1628_v45 = vmax.f32 %v1579_v43, 0.0 }
 0x155   :  { %v1008_v46 = vpop.f32.mrf.mxu2  ;;  %v1338_v47 = vpop.f32.mrf.mxu3 }
 0x156   :  { %v2331_v48 = vpack.c.bf16 %v1628_v45, %v1627_v44  ;;  %v350_v49 = vpop.f32.mrf.mxu0  ;;  %v680_v50 = vpop.f32.mrf.mxu1  ;;  %v1478_v52 = vmax.f32 %v1008_v46, %v1338_v47  ;;  %v2252_v45 = vld [vmem:[%s2919_s2 + $0xb0] sm:$0xff] }
 0x157   :  { %v1430_v59 = vmax.f32 %v350_v49, %v680_v50  ;;  %v2276_v46 = vld [vmem:[%s2920_s3 + $0xb0] sm:$0xff] }
 0x158   :  { %2407 = vst [vmem:[%s2922_s6 + $0x50] sm:$0xff] %v2331_v48   ;;  %v1527_v54 = vmax.f32 %v1429_v51, %v1478_v52 }
 0x15a   :  { %v1580_v1 = vadd.f32 %v2593_v53, %v1527_v54 }
 0x15c   :  { %v1629_v4 = vmax.f32 %v1580_v1, 0.0 }
 0x15d   :  { %v1010_v55 = vpop.f32.mrf.mxu2  ;;  %v1340_v56 = vpop.f32.mrf.mxu3 }
 0x15e   :  { %v1479_v60 = vmax.f32 %v1010_v55, %v1340_v56  ;;  %v353_v61 = vpop.f32.mrf.mxu0  ;;  %v683_v62 = vpop.f32.mrf.mxu1 }
 0x15f   :  { %v1431_v11 = vmax.f32 %v353_v61, %v683_v62 }
 0x160   :  { %v1528_v2 = vmax.f32 %v1430_v59, %v1479_v60 }
 0x161   :  { %392 = vmatmul.bf16.gmra.mxu0 %v2202_v57  ;;  %722 = vmatmul.bf16.gmra.mxu1 %v2226_v58 }
 0x162   :  { %v1581_v3 = vadd.f32 %v2593_v53, %v1528_v2  ;;  %1052 = vmatmul.bf16.gmra.mxu2 %v2250_v63  ;;  %1382 = vmatmul.bf16.gmra.mxu3 %v2274_v0  ;;  %v2205_v63 = vld [vmem:[%s2917_s0 + $0xb8] sm:$0xff] }
 0x163   :  { %v2229_v0 = vld [vmem:[%s2918_s1 + $0xb8] sm:$0xff] }
 0x164   :  { %v1630_v5 = vmax.f32 %v1581_v3, 0.0 }
 0x165   :  { %v1013_v6 = vpop.f32.mrf.mxu2  ;;  %v1343_v7 = vpop.f32.mrf.mxu3 }
 0x166   :  { %v2336_v8 = vpack.c.bf16 %v1630_v5, %v1629_v4  ;;  %v355_v9 = vpop.f32.mrf.mxu0  ;;  %v685_v10 = vpop.f32.mrf.mxu1  ;;  %v1480_v12 = vmax.f32 %v1013_v6, %v1343_v7  ;;  %v2253_v5 = vld [vmem:[%s2919_s2 + $0xb8] sm:$0xff] }
 0x167   :  { %v1432_v18 = vmax.f32 %v355_v9, %v685_v10  ;;  %v2277_v6 = vld [vmem:[%s2920_s3 + $0xb8] sm:$0xff] }
 0x168   :  { %2408 = vst [vmem:[%s2922_s6 + $0x58] sm:$0xff] %v2336_v8   ;;  %v1529_v13 = vmax.f32 %v1431_v11, %v1480_v12 }
 0x16a   :  { %v1582_v24 = vadd.f32 %v2593_v53, %v1529_v13 }
 0x16c   :  { %v1631_v27 = vmax.f32 %v1582_v24, 0.0 }
 0x16d   :  { %v1015_v14 = vpop.f32.mrf.mxu2  ;;  %v1345_v15 = vpop.f32.mrf.mxu3 }
 0x16e   :  { %v1481_v19 = vmax.f32 %v1015_v14, %v1345_v15  ;;  %v358_v20 = vpop.f32.mrf.mxu0  ;;  %v688_v21 = vpop.f32.mrf.mxu1 }
 0x16f   :  { %v1433_v34 = vmax.f32 %v358_v20, %v688_v21  ;;  %v1125_v20 = vld [vmem:[%s2920_s3 + $0xc0] sm:$0xf] }
 0x170   :  { %v1530_v25 = vmax.f32 %v1432_v18, %v1481_v19  ;;  %v465_v18 = vld [vmem:[%s2918_s1 + $0xc0] sm:$0xf] }
 0x171   :  { %397 = vmatmul.bf16.gmra.mxu0 %v2203_v16  ;;  %727 = vmatmul.bf16.gmra.mxu1 %v2227_v17  ;;  %v87_v17 = vld [vmem:[%s2917_s0 + $0xc0] sm:$0xf]  ;;  %v563_v24 = vunpack.c.l.b16 %v465_v18 }
 0x172   :  { %v1583_v26 = vadd.f32 %v2593_v53, %v1530_v25  ;;  %1057 = vmatmul.bf16.gmra.mxu2 %v2251_v22  ;;  %1387 = vmatmul.bf16.gmra.mxu3 %v2275_v23  ;;  %v795_v19 = vld [vmem:[%s2919_s2 + $0xc0] sm:$0xf]  ;;  %v185_v23 = vunpack.c.l.b16 %v87_v17 }
 0x173   :  { %v893_v25 = vunpack.c.l.b16 %v795_v19 }
 0x174   :  { %v1632_v28 = vmax.f32 %v1583_v26, 0.0  ;;  %v1223_v26 = vunpack.c.l.b16 %v1125_v20 }
 0x175   :  { %v1018_v29 = vpop.f32.mrf.mxu2  ;;  %v1348_v30 = vpop.f32.mrf.mxu3 }
 0x176   :  { %v2341_v31 = vpack.c.bf16 %v1632_v28, %v1631_v27  ;;  %v360_v32 = vpop.f32.mrf.mxu0  ;;  %v690_v33 = vpop.f32.mrf.mxu1  ;;  %v1482_v35 = vmax.f32 %v1018_v29, %v1348_v30  ;;  %v210_v30 = vpack.c.b16 %v185_v23, %v185_v23 }
 0x177   :  { %v1434_v41 = vmax.f32 %v360_v32, %v690_v33 }
 0x178   :  { %2409 = vst [vmem:[%s2922_s6 + $0x60] sm:$0xff] %v2341_v31   ;;  %v1531_v36 = vmax.f32 %v1433_v34, %v1482_v35  ;;  %v588_v31 = vpack.c.b16 %v563_v24, %v563_v24 }
 0x17a   :  { %v1584_v47 = vadd.f32 %v2593_v53, %v1531_v36  ;;  %v918_v36 = vpack.c.b16 %v893_v25, %v893_v25 }
 0x17c   :  { %v1633_v50 = vmax.f32 %v1584_v47, 0.0 }
 0x17d   :  { %v1020_v37 = vpop.f32.mrf.mxu2  ;;  %v1350_v38 = vpop.f32.mrf.mxu3 }
 0x17e   :  { %v1483_v42 = vmax.f32 %v1020_v37, %v1350_v38  ;;  %v363_v43 = vpop.f32.mrf.mxu0  ;;  %v693_v44 = vpop.f32.mrf.mxu1  ;;  %v1248_v37 = vpack.c.b16 %v1223_v26, %v1223_v26 }
 0x17f   :  { %v1435_v58 = vmax.f32 %v363_v43, %v693_v44 }
 0x180   :  { %v1532_v48 = vmax.f32 %v1434_v41, %v1483_v42 }
 0x181   :  { %402 = vmatmul.bf16.gmra.mxu0 %v2204_v39  ;;  %732 = vmatmul.bf16.gmra.mxu1 %v2228_v40 }
 0x182   :  { %v1585_v49 = vadd.f32 %v2593_v53, %v1532_v48  ;;  %1062 = vmatmul.bf16.gmra.mxu2 %v2252_v45  ;;  %1392 = vmatmul.bf16.gmra.mxu3 %v2276_v46 }
 0x184   :  { %v1634_v51 = vmax.f32 %v1585_v49, 0.0 }
 0x185   :  { %v1023_v52 = vpop.f32.mrf.mxu2  ;;  %v1353_v54 = vpop.f32.mrf.mxu3 }
 0x186   :  { %v2346_v55 = vpack.c.bf16 %v1634_v51, %v1633_v50  ;;  %v365_v56 = vpop.f32.mrf.mxu0  ;;  %v695_v57 = vpop.f32.mrf.mxu1  ;;  %v1484_v59 = vmax.f32 %v1023_v52, %v1353_v54 }
 0x187   :  { %v1436_v1 = vmax.f32 %v365_v56, %v695_v57 }
 0x188   :  { %2410 = vst [vmem:[%s2922_s6 + $0x68] sm:$0xff] %v2346_v55   ;;  %v1533_v60 = vmax.f32 %v1435_v58, %v1484_v59 }
 0x18a   :  { %v1586_v7 = vadd.f32 %v2593_v53, %v1533_v60 }
 0x18c   :  { %v1635_v10 = vmax.f32 %v1586_v7, 0.0 }
 0x18d   :  { %v1025_v61 = vpop.f32.mrf.mxu2  ;;  %v1355_v62 = vpop.f32.mrf.mxu3 }
 0x18e   :  { %v1485_v2 = vmax.f32 %v1025_v61, %v1355_v62  ;;  %v368_v3 = vpop.f32.mrf.mxu0  ;;  %v698_v4 = vpop.f32.mrf.mxu1 }
 0x18f   :  { %v1437_v21 = vmax.f32 %v368_v3, %v698_v4 }
 0x190   :  { %v1534_v8 = vmax.f32 %v1436_v1, %v1485_v2 }
 0x191   :  { %407 = vmatmul.bf16.gmra.mxu0 %v2205_v63  ;;  %737 = vmatmul.bf16.gmra.mxu1 %v2229_v0 }
 0x192   :  { %v1587_v9 = vadd.f32 %v2593_v53, %v1534_v8  ;;  %1067 = vmatmul.bf16.gmra.mxu2 %v2253_v5  ;;  %1397 = vmatmul.bf16.gmra.mxu3 %v2277_v6 }
 0x194   :  { %v1636_v11 = vmax.f32 %v1587_v9, 0.0 }
 0x195   :  { %v1028_v12 = vpop.f32.mrf.mxu2  ;;  %v1358_v13 = vpop.f32.mrf.mxu3 }
 0x196   :  { %v2351_v14 = vpack.c.bf16 %v1636_v11, %v1635_v10  ;;  %v370_v15 = vpop.f32.mrf.mxu0  ;;  %v700_v16 = vpop.f32.mrf.mxu1  ;;  %v1486_v22 = vmax.f32 %v1028_v12, %v1358_v13 }
 0x197   :  { %v1438_v32 = vmax.f32 %v370_v15, %v700_v16 }
 0x198   :  { %2411 = vst [vmem:[%s2922_s6 + $0x70] sm:$0xff] %v2351_v14   ;;  %v1535_v27 = vmax.f32 %v1437_v21, %v1486_v22 }
 0x19a   :  { %v1588_v38 = vadd.f32 %v2593_v53, %v1535_v27 }
 0x19c   :  { %v1637_v41 = vmax.f32 %v1588_v38, 0.0 }
 0x19d   :  { %v1030_v28 = vpop.f32.mrf.mxu2  ;;  %v1360_v29 = vpop.f32.mrf.mxu3 }
 0x19e   :  { %v1487_v33 = vmax.f32 %v1030_v28, %v1360_v29  ;;  %v373_v34 = vpop.f32.mrf.mxu0  ;;  %v703_v35 = vpop.f32.mrf.mxu1 }
 0x19f   :  { %v1439_v48 = vmax.f32 %v373_v34, %v703_v35 }
 0x1a0   :  { %v1536_v39 = vmax.f32 %v1438_v32, %v1487_v33 }
 0x1a1   :  { %412 = vmatmul.bf16.gmra.mxu0 %v210_v30  ;;  %742 = vmatmul.bf16.gmra.mxu1 %v588_v31 }
 0x1a2   :  { %v1589_v40 = vadd.f32 %v2593_v53, %v1536_v39  ;;  %1072 = vmatmul.bf16.gmra.mxu2 %v918_v36  ;;  %1402 = vmatmul.bf16.gmra.mxu3 %v1248_v37 }
 0x1a4   :  { %v1638_v42 = vmax.f32 %v1589_v40, 0.0 }
 0x1a5   :  { %v1033_v43 = vpop.f32.mrf.mxu2  ;;  %v1363_v44 = vpop.f32.mrf.mxu3 }
 0x1a6   :  { %v2356_v45 = vpack.c.bf16 %v1638_v42, %v1637_v41  ;;  %v375_v46 = vpop.f32.mrf.mxu0  ;;  %v705_v47 = vpop.f32.mrf.mxu1  ;;  %v1488_v49 = vmax.f32 %v1033_v43, %v1363_v44 }
 0x1a7   :  { %v1440_v54 = vmax.f32 %v375_v46, %v705_v47 }
 0x1a8   :  { %2412 = vst [vmem:[%s2922_s6 + $0x78] sm:$0xff] %v2356_v45   ;;  %v1537_v50 = vmax.f32 %v1439_v48, %v1488_v49 }
 0x1aa   :  { %v1590_v58 = vadd.f32 %v2593_v53, %v1537_v50  ;;  %v2885_v50 = vld [vmem:[%s2921_s5] ss:$0 sm:$0xff] }
 0x1ac   :  { %v1639_v61 = vmax.f32 %v1590_v58, 0.0 }
 0x1ad   :  { %v1035_v51 = vpop.f32.mrf.mxu2  ;;  %v1365_v52 = vpop.f32.mrf.mxu3 }
 0x1ae   :  { %v1489_v55 = vmax.f32 %v1035_v51, %v1365_v52  ;;  %v378_v56 = vpop.f32.mrf.mxu0  ;;  %v708_v57 = vpop.f32.mrf.mxu1 }
 0x1af   :  { %v1441_v4 = vmax.f32 %v378_v56, %v708_v57 }
 0x1b0   :  { %v1538_v59 = vmax.f32 %v1440_v54, %v1489_v55 }
 0x1b2   :  { %v1591_v60 = vadd.f32 %v2593_v53, %v1538_v59 }
 0x1b4   :  { %v1640_v62 = vmax.f32 %v1591_v60, 0.0 }
 0x1b5   :  { %v1038_v63 = vpop.f32.mrf.mxu2  ;;  %v1368_v0 = vpop.f32.mrf.mxu3 }
 0x1b6   :  { %v2361_v1 = vpack.c.bf16 %v1640_v62, %v1639_v61  ;;  %v380_v2 = vpop.f32.mrf.mxu0  ;;  %v710_v3 = vpop.f32.mrf.mxu1  ;;  %v1490_v5 = vmax.f32 %v1038_v63, %v1368_v0 }
 0x1b7   :  { %v1442_v9 = vmax.f32 %v380_v2, %v710_v3 }
 0x1b8   :  { %2413 = vst [vmem:[%s2922_s6 + $0x80] sm:$0xff] %v2361_v1   ;;  %v1539_v6 = vmax.f32 %v1441_v4, %v1490_v5 }
 0x1ba   :  { %v1592_v13 = vadd.f32 %v2593_v53, %v1539_v6 }
 0x1bc   :  { %v1641_v16 = vmax.f32 %v1592_v13, 0.0 }
 0x1bd   :  { %v1040_v7 = vpop.f32.mrf.mxu2  ;;  %v1370_v8 = vpop.f32.mrf.mxu3 }
 0x1be   :  { %v1491_v10 = vmax.f32 %v1040_v7, %v1370_v8  ;;  %v383_v11 = vpop.f32.mrf.mxu0  ;;  %v713_v12 = vpop.f32.mrf.mxu1 }
 0x1bf   :  { %v1443_v23 = vmax.f32 %v383_v11, %v713_v12 }
 0x1c0   :  { %v1540_v14 = vmax.f32 %v1442_v9, %v1491_v10 }
 0x1c2   :  { %v1593_v15 = vadd.f32 %v2593_v53, %v1540_v14 }
 0x1c4   :  { %v1642_v17 = vmax.f32 %v1593_v15, 0.0 }
 0x1c5   :  { %v1043_v18 = vpop.f32.mrf.mxu2  ;;  %v1373_v19 = vpop.f32.mrf.mxu3 }
 0x1c6   :  { %v2366_v20 = vpack.c.bf16 %v1642_v17, %v1641_v16  ;;  %v385_v21 = vpop.f32.mrf.mxu0  ;;  %v715_v22 = vpop.f32.mrf.mxu1  ;;  %v1492_v24 = vmax.f32 %v1043_v18, %v1373_v19 }
 0x1c7   :  { %v1444_v28 = vmax.f32 %v385_v21, %v715_v22 }
 0x1c8   :  { %2414 = vst [vmem:[%s2922_s6 + $0x88] sm:$0xff] %v2366_v20   ;;  %v1541_v25 = vmax.f32 %v1443_v23, %v1492_v24 }
 0x1ca   :  { %v1594_v32 = vadd.f32 %v2593_v53, %v1541_v25 }
 0x1cc   :  { %v1643_v35 = vmax.f32 %v1594_v32, 0.0 }
 0x1cd   :  { %v1045_v26 = vpop.f32.mrf.mxu2  ;;  %v1375_v27 = vpop.f32.mrf.mxu3 }
 0x1ce   :  { %v1493_v29 = vmax.f32 %v1045_v26, %v1375_v27  ;;  %v388_v30 = vpop.f32.mrf.mxu0  ;;  %v718_v31 = vpop.f32.mrf.mxu1 }
 0x1cf   :  { %v1445_v42 = vmax.f32 %v388_v30, %v718_v31 }
 0x1d0   :  { %v1542_v33 = vmax.f32 %v1444_v28, %v1493_v29 }
 0x1d2   :  { %v1595_v34 = vadd.f32 %v2593_v53, %v1542_v33 }
 0x1d4   :  { %v1644_v36 = vmax.f32 %v1595_v34, 0.0 }
 0x1d5   :  { %v1048_v37 = vpop.f32.mrf.mxu2  ;;  %v1378_v38 = vpop.f32.mrf.mxu3 }
 0x1d6   :  { %v2371_v39 = vpack.c.bf16 %v1644_v36, %v1643_v35  ;;  %v390_v40 = vpop.f32.mrf.mxu0  ;;  %v720_v41 = vpop.f32.mrf.mxu1  ;;  %v1494_v43 = vmax.f32 %v1048_v37, %v1378_v38 }
 0x1d7   :  { %v1446_v47 = vmax.f32 %v390_v40, %v720_v41 }
 0x1d8   :  { %2415 = vst [vmem:[%s2922_s6 + $0x90] sm:$0xff] %v2371_v39   ;;  %v1543_v44 = vmax.f32 %v1445_v42, %v1494_v43 }
 0x1da   :  { %v1596_v51 = vadd.f32 %v2885_v50, %v1543_v44 }
 0x1dc   :  { %v1645_v55 = vmax.f32 %v1596_v51, 0.0 }
 0x1dd   :  { %v1050_v45 = vpop.f32.mrf.mxu2  ;;  %v1380_v46 = vpop.f32.mrf.mxu3 }
 0x1de   :  { %v1495_v48 = vmax.f32 %v1050_v45, %v1380_v46  ;;  %v393_v49 = vpop.f32.mrf.mxu0  ;;  %v723_v53 = vpop.f32.mrf.mxu1 }
 0x1df   :  { %v1447_v62 = vmax.f32 %v393_v49, %v723_v53 }
 0x1e0   :  { %v1544_v52 = vmax.f32 %v1446_v47, %v1495_v48 }
 0x1e2   :  { %v1597_v54 = vadd.f32 %v2885_v50, %v1544_v52 }
 0x1e4   :  { %v1646_v56 = vmax.f32 %v1597_v54, 0.0 }
 0x1e5   :  { %v1053_v57 = vpop.f32.mrf.mxu2  ;;  %v1383_v58 = vpop.f32.mrf.mxu3 }
 0x1e6   :  { %v2376_v59 = vpack.c.bf16 %v1646_v56, %v1645_v55  ;;  %v395_v60 = vpop.f32.mrf.mxu0  ;;  %v725_v61 = vpop.f32.mrf.mxu1  ;;  %v1496_v63 = vmax.f32 %v1053_v57, %v1383_v58 }
 0x1e7   :  { %v1448_v3 = vmax.f32 %v395_v60, %v725_v61 }
 0x1e8   :  { %2416 = vst [vmem:[%s2922_s6 + $0x98] sm:$0xff] %v2376_v59   ;;  %v1545_v0 = vmax.f32 %v1447_v62, %v1496_v63 }
 0x1ea   :  { %v1598_v7 = vadd.f32 %v2885_v50, %v1545_v0 }
 0x1ec   :  { %v1647_v10 = vmax.f32 %v1598_v7, 0.0 }
 0x1ed   :  { %v1055_v1 = vpop.f32.mrf.mxu2  ;;  %v1385_v2 = vpop.f32.mrf.mxu3 }
 0x1ee   :  { %v1497_v4 = vmax.f32 %v1055_v1, %v1385_v2  ;;  %v398_v5 = vpop.f32.mrf.mxu0  ;;  %v728_v6 = vpop.f32.mrf.mxu1 }
 0x1ef   :  { %v1449_v17 = vmax.f32 %v398_v5, %v728_v6 }
 0x1f0   :  { %v1546_v8 = vmax.f32 %v1448_v3, %v1497_v4 }
 0x1f2   :  { %v1599_v9 = vadd.f32 %v2885_v50, %v1546_v8 }
 0x1f4   :  { %v1648_v11 = vmax.f32 %v1599_v9, 0.0 }
 0x1f5   :  { %v1058_v12 = vpop.f32.mrf.mxu2  ;;  %v1388_v13 = vpop.f32.mrf.mxu3 }
 0x1f6   :  { %v2381_v14 = vpack.c.bf16 %v1648_v11, %v1647_v10  ;;  %v400_v15 = vpop.f32.mrf.mxu0  ;;  %v730_v16 = vpop.f32.mrf.mxu1  ;;  %v1498_v18 = vmax.f32 %v1058_v12, %v1388_v13 }
 0x1f7   :  { %v1450_v22 = vmax.f32 %v400_v15, %v730_v16 }
 0x1f8   :  { %2417 = vst [vmem:[%s2922_s6 + $0xa0] sm:$0xff] %v2381_v14   ;;  %v1547_v19 = vmax.f32 %v1449_v17, %v1498_v18 }
 0x1fa   :  { %v1600_v26 = vadd.f32 %v2885_v50, %v1547_v19 }
 0x1fc   :  { %v1649_v29 = vmax.f32 %v1600_v26, 0.0 }
 0x1fd   :  { %v1060_v20 = vpop.f32.mrf.mxu2  ;;  %v1390_v21 = vpop.f32.mrf.mxu3 }
 0x1fe   :  { %v1499_v23 = vmax.f32 %v1060_v20, %v1390_v21  ;;  %v403_v24 = vpop.f32.mrf.mxu0  ;;  %v733_v25 = vpop.f32.mrf.mxu1 }
 0x1ff   :  { %v1451_v36 = vmax.f32 %v403_v24, %v733_v25 }
 0x200   :  { %v1548_v27 = vmax.f32 %v1450_v22, %v1499_v23 }
 0x202   :  { %v1601_v28 = vadd.f32 %v2885_v50, %v1548_v27 }
 0x204   :  { %v1650_v30 = vmax.f32 %v1601_v28, 0.0 }
 0x205   :  { %v1063_v31 = vpop.f32.mrf.mxu2  ;;  %v1393_v32 = vpop.f32.mrf.mxu3 }
 0x206   :  { %v2386_v33 = vpack.c.bf16 %v1650_v30, %v1649_v29  ;;  %v405_v34 = vpop.f32.mrf.mxu0  ;;  %v735_v35 = vpop.f32.mrf.mxu1  ;;  %v1500_v37 = vmax.f32 %v1063_v31, %v1393_v32 }
 0x207   :  { %v1452_v41 = vmax.f32 %v405_v34, %v735_v35 }
 0x208   :  { %2418 = vst [vmem:[%s2922_s6 + $0xa8] sm:$0xff] %v2386_v33   ;;  %v1549_v38 = vmax.f32 %v1451_v36, %v1500_v37 }
 0x20a   :  { %v1602_v45 = vadd.f32 %v2885_v50, %v1549_v38 }
 0x20c   :  { %v1651_v48 = vmax.f32 %v1602_v45, 0.0 }
 0x20d   :  { %v1065_v39 = vpop.f32.mrf.mxu2  ;;  %v1395_v40 = vpop.f32.mrf.mxu3 }
 0x20e   :  { %v1501_v42 = vmax.f32 %v1065_v39, %v1395_v40  ;;  %v408_v43 = vpop.f32.mrf.mxu0  ;;  %v738_v44 = vpop.f32.mrf.mxu1 }
 0x20f   :  { %v1453_v56 = vmax.f32 %v408_v43, %v738_v44 }
 0x210   :  { %v1550_v46 = vmax.f32 %v1452_v41, %v1501_v42 }
 0x212   :  { %v1603_v47 = vadd.f32 %v2885_v50, %v1550_v46 }
 0x214   :  { %v1652_v49 = vmax.f32 %v1603_v47, 0.0 }
 0x215   :  { %v1068_v53 = vpop.f32.mrf.mxu2  ;;  %v1398_v51 = vpop.f32.mrf.mxu3 }
 0x216   :  { %v2391_v52 = vpack.c.bf16 %v1652_v49, %v1651_v48  ;;  %v410_v54 = vpop.f32.mrf.mxu0  ;;  %v740_v55 = vpop.f32.mrf.mxu1  ;;  %v1502_v57 = vmax.f32 %v1068_v53, %v1398_v51 }
 0x217   :  { %v1454_v61 = vmax.f32 %v410_v54, %v740_v55 }
 0x218   :  { %2419 = vst [vmem:[%s2922_s6 + $0xb0] sm:$0xff] %v2391_v52   ;;  %v1551_v58 = vmax.f32 %v1453_v56, %v1502_v57 }
 0x21a   :  { %v1604_v1 = vadd.f32 %v2885_v50, %v1551_v58 }
 0x21c   :  { %v1653_v4 = vmax.f32 %v1604_v1, 0.0 }
 0x21d   :  { %v1070_v59 = vpop.f32.mrf.mxu2  ;;  %v1400_v60 = vpop.f32.mrf.mxu3 }
 0x21e   :  { %v1503_v62 = vmax.f32 %v1070_v59, %v1400_v60  ;;  %v413_v63 = vpop.f32.mrf.mxu0  ;;  %v743_v0 = vpop.f32.mrf.mxu1 }
 0x21f   :  { %v1455_v6 = vmax.f32 %v413_v63, %v743_v0 }
 0x220   :  { %v1552_v2 = vmax.f32 %v1454_v61, %v1503_v62 }
 0x222   :  { %v1605_v3 = vadd.f32 %v2885_v50, %v1552_v2 }
 0x224   :  { %v1654_v5 = vmax.f32 %v1605_v3, 0.0 }
 0x225   :  { %v1073_v7 = vpop.f32.mrf.mxu2  ;;  %v1403_v8 = vpop.f32.mrf.mxu3 }
 0x226   :  { %v2396_v9 = vpack.c.bf16 %v1654_v5, %v1653_v4  ;;  %v1504_v10 = vmax.f32 %v1073_v7, %v1403_v8  ;;  %v415_v11 = vpop.f32.mrf.mxu0  ;;  %v745_v12 = vpop.f32.mrf.mxu1 }
 0x228   :  { %2420 = vst [vmem:[%s2922_s6 + $0xb8] sm:$0xff] %v2396_v9   ;;  %v1553_v13 = vmax.f32 %v1455_v6, %v1504_v10 }
 0x22a   :  { %v1606_v14 = vadd.f32 %v2885_v50, %v1553_v13 }
 0x22c   :  { %v1655_v15 = vmax.f32 %v1606_v14, 0.0 }
 0x22d   :  { %v1075_v16 = vpop.f32.mrf.mxu2  ;;  %v1405_v17 = vpop.f32.mrf.mxu3 }
 0x22e   :  { %v1704_v18 = vpack.c.bf16 %v1655_v15, %v1655_v15 }
 0x230   :  { %1753 = vst [vmem:[%s2922_s6 + $0xc0] sm:$0xf] %v1704_v18 }

// kernel: cnn_forward.5
= control target key start
LH: loop header
LB: loop body
LE: loop exit
PB: predicated region body
PF: predicated region fallthrough
CT: control target
= control target key end

     0   :  { %s3500_s4 = inlined_call_operand.vmem [shape: bf16[512,128], index: 4, kind: input, shape index: {}]   ;;  %s3501_s0 = inlined_call_operand.vmem [shape: bf16[104,512], index: 0, kind: input, shape index: {}]   ;;  %s3502_s1 = inlined_call_operand.vmem [shape: bf16[104,512], index: 1, kind: input, shape index: {}]   ;;  %s3503_s2 = inlined_call_operand.vmem [shape: bf16[104,512], index: 2, kind: input, shape index: {}]   ;;  %s3504_s3 = inlined_call_operand.vmem [shape: bf16[104,512], index: 3, kind: input, shape index: {}]   ;;  %s3505_s5 = inlined_call_operand.vmem [shape: f32[1,128], index: 5, kind: input, shape index: {}]   ;;  %s3506_s6 = inlined_call_operand.vmem [shape: bf16[104,128], index: 6, kind: output, shape index: {}]  }
   0x1   :  { %v2420_v0 = vld [vmem:[%s3500_s4 + $0x38] sm:$0xff]  ;;  %v2442_v4 = vld [vmem:[%s3500_s4 + $0x30] sm:$0xff]  ;;  %v2466_v8 = vld [vmem:[%s3500_s4 + $0x28] sm:$0xff] }
   0x2   :  { %v2425_v1 = vld [vmem:[%s3500_s4 + $0x78] sm:$0xff]  ;;  %439 = vmatpush.bf16.msra.mxu0 %v2420_v0  ;;  %v2447_v5 = vld [vmem:[%s3500_s4 + $0x70] sm:$0xff]  ;;  %v2471_v9 = vld [vmem:[%s3500_s4 + $0x68] sm:$0xff] }
   0x3   :  { %v2430_v2 = vld [vmem:[%s3500_s4 + $0xb8] sm:$0xff]  ;;  %482 = vmatpush.bf16.msra.mxu1 %v2425_v1  ;;  %v2454_v6 = vld [vmem:[%s3500_s4 + $0xb0] sm:$0xff]  ;;  %v2478_v10 = vld [vmem:[%s3500_s4 + $0xa8] sm:$0xff] }
   0x4   :  { %v2435_v3 = vld [vmem:[%s3500_s4 + $0xf8] sm:$0xff]  ;;  %525 = vmatpush.bf16.msra.mxu2 %v2430_v2  ;;  %v2459_v7 = vld [vmem:[%s3500_s4 + $0xf0] sm:$0xff]  ;;  %v2483_v11 = vld [vmem:[%s3500_s4 + $0xe8] sm:$0xff] }
   0x5   :  { %568 = vmatpush.bf16.msra.mxu3 %v2435_v3  ;;  %v2490_v12 = vld [vmem:[%s3500_s4 + $0x20] sm:$0xff]  ;;  %v2514_v16 = vld [vmem:[%s3500_s4 + $0x18] sm:$0xff]  ;;  %v2538_v20 = vld [vmem:[%s3500_s4 + $0x10] sm:$0xff] }
   0x6   :  { %440 = vmatpush.bf16.msra.mxu0 %v2442_v4  ;;  %v2495_v13 = vld [vmem:[%s3500_s4 + $0x60] sm:$0xff]  ;;  %v2519_v17 = vld [vmem:[%s3500_s4 + $0x58] sm:$0xff]  ;;  %v2543_v21 = vld [vmem:[%s3500_s4 + $0x50] sm:$0xff] }
   0x7   :  { %483 = vmatpush.bf16.msra.mxu1 %v2447_v5  ;;  %v2502_v14 = vld [vmem:[%s3500_s4 + $0xa0] sm:$0xff]  ;;  %v2526_v18 = vld [vmem:[%s3500_s4 + $0x98] sm:$0xff]  ;;  %v2550_v22 = vld [vmem:[%s3500_s4 + $0x90] sm:$0xff] }
   0x8   :  { %526 = vmatpush.bf16.msra.mxu2 %v2454_v6  ;;  %v2507_v15 = vld [vmem:[%s3500_s4 + $0xe0] sm:$0xff]  ;;  %v2531_v19 = vld [vmem:[%s3500_s4 + $0xd8] sm:$0xff]  ;;  %v2555_v23 = vld [vmem:[%s3500_s4 + $0xd0] sm:$0xff] }
   0x9   :  { %569 = vmatpush.bf16.msra.mxu3 %v2459_v7  ;;  %v2562_v24 = vld [vmem:[%s3500_s4 + $0x8] sm:$0xff]  ;;  %v2584_v28 = vld [vmem:[%s3500_s4] sm:$0xff]  ;;  %v2252_v33 = vld [vmem:[%s3501_s0 + $0xc] sm:$0xf0] }
   0xa   :  { %441 = vmatpush.bf16.msra.mxu0 %v2466_v8  ;;  %v2567_v25 = vld [vmem:[%s3500_s4 + $0x48] sm:$0xff]  ;;  %v2589_v29 = vld [vmem:[%s3500_s4 + $0x40] sm:$0xff]  ;;  %v1710_v35 = vld [vmem:[%s3501_s0 + $0x10] sm:$0xf0] }
   0xb   :  { %484 = vmatpush.bf16.msra.mxu1 %v2471_v9  ;;  %v2574_v26 = vld [vmem:[%s3500_s4 + $0x88] sm:$0xff]  ;;  %v2594_v30 = vld [vmem:[%s3500_s4 + $0x80] sm:$0xff]  ;;  %v2253_v37 = vld [vmem:[%s3501_s0 + $0x14] sm:$0xf0] }
   0xc   :  { %527 = vmatpush.bf16.msra.mxu2 %v2478_v10  ;;  %v2579_v27 = vld [vmem:[%s3500_s4 + $0xc8] sm:$0xff]  ;;  %v2599_v31 = vld [vmem:[%s3500_s4 + $0xc0] sm:$0xff]  ;;  %v1718_v39 = vld [vmem:[%s3501_s0 + $0x18] sm:$0xf0] }
   0xd   :  { %570 = vmatpush.bf16.msra.mxu3 %v2483_v11  ;;  %v1708_v32 = vld [vmem:[%s3501_s0] sm:$0xf]  ;;  %v2250_v34 = vld [vmem:[%s3501_s0 + $0x4] sm:$0xf]  ;;  %v1716_v36 = vld [vmem:[%s3501_s0 + $0x8] sm:$0xf] }
   0xe   :  { %442 = vmatpush.bf16.msra.mxu0 %v2490_v12  ;;  %v2251_v38 = vld [vmem:[%s3501_s0 + $0xc] sm:$0xf]  ;;  %v1709_v40 = vor.u32 %v2252_v33, %v1708_v32  ;;  %v1713_v41 = vor.u32 %v2250_v34, %v1710_v35  ;;  %v1717_v42 = vor.u32 %v2253_v37, %v1716_v36  ;;  %v1724_v44 = vld [vmem:[%s3501_s0 + $0x20] sm:$0xf]  ;;  %v2256_v45 = vld [vmem:[%s3501_s0 + $0x2c] sm:$0xf0] }
   0xf   :  { %485 = vmatpush.bf16.msra.mxu1 %v2495_v13  ;;  %v1721_v43 = vor.u32 %v2251_v38, %v1718_v39  ;;  %v2254_v46 = vld [vmem:[%s3501_s0 + $0x24] sm:$0xf]  ;;  %v1726_v47 = vld [vmem:[%s3501_s0 + $0x30] sm:$0xf0]  ;;  %v1732_v48 = vld [vmem:[%s3501_s0 + $0x28] sm:$0xf]  ;;  %v1725_v52 = vor.u32 %v2256_v45, %v1724_v44 }
  0x10   :  { %528 = vmatpush.bf16.msra.mxu2 %v2502_v14  ;;  %v2257_v49 = vld [vmem:[%s3501_s0 + $0x34] sm:$0xf0]  ;;  %v2255_v50 = vld [vmem:[%s3501_s0 + $0x2c] sm:$0xf]  ;;  %v1734_v51 = vld [vmem:[%s3501_s0 + $0x38] sm:$0xf0]  ;;  %v1729_v53 = vor.u32 %v2254_v46, %v1726_v47 }
  0x11   :  { %571 = vmatpush.bf16.msra.mxu3 %v2507_v15  ;;  %v1733_v54 = vor.u32 %v2257_v49, %v1732_v48  ;;  %v1737_v55 = vor.u32 %v2255_v50, %v1734_v51  ;;  %v1740_v56 = vld [vmem:[%s3501_s0 + $0x40] sm:$0xf]  ;;  %v2260_v57 = vld [vmem:[%s3501_s0 + $0x4c] sm:$0xf0]  ;;  %v2258_v58 = vld [vmem:[%s3501_s0 + $0x44] sm:$0xf] }
  0x12   :  { %443 = vmatpush.bf16.msra.mxu0 %v2514_v16  ;;  %v1742_v59 = vld [vmem:[%s3501_s0 + $0x50] sm:$0xf0]  ;;  %v1748_v60 = vld [vmem:[%s3501_s0 + $0x48] sm:$0xf]  ;;  %v2261_v61 = vld [vmem:[%s3501_s0 + $0x54] sm:$0xf0]  ;;  %v1741_v32 = vor.u32 %v2260_v57, %v1740_v56 }
  0x13   :  { %486 = vmatpush.bf16.msra.mxu1 %v2519_v17  ;;  %v2259_v62 = vld [vmem:[%s3501_s0 + $0x4c] sm:$0xf]  ;;  %v1750_v63 = vld [vmem:[%s3501_s0 + $0x58] sm:$0xf0]  ;;  %v1745_v33 = vor.u32 %v2258_v58, %v1742_v59  ;;  %v1749_v34 = vor.u32 %v2261_v61, %v1748_v60  ;;  %v1756_v36 = vld [vmem:[%s3501_s0 + $0x60] sm:$0xf] }
  0x14   :  { %529 = vmatpush.bf16.msra.mxu2 %v2526_v18  ;;  %v1753_v35 = vor.u32 %v2259_v62, %v1750_v63  ;;  %v2264_v37 = vld [vmem:[%s3501_s0 + $0x6c] sm:$0xf0]  ;;  %v2262_v38 = vld [vmem:[%s3501_s0 + $0x64] sm:$0xf]  ;;  %v1758_v39 = vld [vmem:[%s3501_s0 + $0x70] sm:$0xf0] }
  0x15   :  { %572 = vmatpush.bf16.msra.mxu3 %v2531_v19  ;;  %v1757_v44 = vor.u32 %v2264_v37, %v1756_v36  ;;  %v1761_v45 = vor.u32 %v2262_v38, %v1758_v39  ;;  %v1772_v48 = vld [vmem:[%s3501_s0 + $0x80] sm:$0xf]  ;;  %v2268_v49 = vld [vmem:[%s3501_s0 + $0x8c] sm:$0xf0]  ;;  %v2266_v50 = vld [vmem:[%s3501_s0 + $0x84] sm:$0xf] }
  0x16   :  { %444 = vmatpush.bf16.msra.mxu0 %v2538_v20  ;;  %v1774_v51 = vld [vmem:[%s3501_s0 + $0x90] sm:$0xf0]  ;;  %v1773_v56 = vor.u32 %v2268_v49, %v1772_v48  ;;  %v1788_v60 = vld [vmem:[%s3501_s0 + $0xa0] sm:$0xf]  ;;  %v2272_v61 = vld [vmem:[%s3501_s0 + $0xac] sm:$0xf0] }
  0x17   :  { %487 = vmatpush.bf16.msra.mxu1 %v2543_v21  ;;  %v1777_v57 = vor.u32 %v2266_v50, %v1774_v51  ;;  %v2270_v62 = vld [vmem:[%s3501_s0 + $0xa4] sm:$0xf]  ;;  %v1790_v63 = vld [vmem:[%s3501_s0 + $0xb0] sm:$0xf0]  ;;  %v1789_v36 = vor.u32 %v2272_v61, %v1788_v60  ;;  %v1932_v50 = vld [vmem:[%s3502_s1] sm:$0xf] }
  0x18   :  { %530 = vmatpush.bf16.msra.mxu2 %v2550_v22  ;;  %v1793_v37 = vor.u32 %v2270_v62, %v1790_v63  ;;  %v2276_v51 = vld [vmem:[%s3502_s1 + $0xc] sm:$0xf0]  ;;  %v1948_v62 = vld [vmem:[%s3502_s1 + $0x20] sm:$0xf] }
  0x19   :  { %573 = vmatpush.bf16.msra.mxu3 %v2555_v23 }
  0x1a   :  { %445 = vmatpush.bf16.msra.mxu0 %v2562_v24 }
  0x1b   :  { %488 = vmatpush.bf16.msra.mxu1 %v2567_v25 }
  0x1c   :  { %531 = vmatpush.bf16.msra.mxu2 %v2574_v26 }
  0x1d   :  { %574 = vmatpush.bf16.msra.mxu3 %v2579_v27 }
  0x1e   :  { %446 = vmatpush.bf16.msra.mxu0 %v2584_v28 }
  0x1f   :  { %489 = vmatpush.bf16.msra.mxu1 %v2589_v29 }
  0x20   :  { %532 = vmatpush.bf16.msra.mxu2 %v2594_v30 }
  0x21   :  { %575 = vmatpush.bf16.msra.mxu3 %v2599_v31  ;;  %447 = vmatmul.bf16.vlgmr.msra.gmra.mxu0 %v1709_v40  ;;  %v1764_v40 = vld [vmem:[%s3501_s0 + $0x68] sm:$0xf] }
  0x22   :  { %490 = vmatmul.bf16.vlgmr.msra.gmra.mxu1 %v1713_v41  ;;  %771 = vmatpush.bf16.msrb.mxu0 %v2420_v0  ;;  %v2265_v41 = vld [vmem:[%s3501_s0 + $0x74] sm:$0xf0] }
  0x23   :  { %533 = vmatmul.bf16.vlgmr.msra.gmra.mxu2 %v1717_v42  ;;  %814 = vmatpush.bf16.msrb.mxu1 %v2425_v1  ;;  %v2263_v42 = vld [vmem:[%s3501_s0 + $0x6c] sm:$0xf]  ;;  %v1765_v46 = vor.u32 %v2265_v41, %v1764_v40  ;;  %v111_v40 = vld [vmem:[%s3501_s0 + $0xc0] sm:$0xff] }
  0x24   :  { %857 = vmatpush.bf16.msrb.mxu2 %v2430_v2  ;;  %576 = vmatmul.bf16.vlgmr.msra.gmra.mxu3 %v1721_v43  ;;  %v1766_v43 = vld [vmem:[%s3501_s0 + $0x78] sm:$0xf0]  ;;  %v112_v41 = vld [vmem:[%s3501_s0 + $0xc8] sm:$0xff] }
  0x25   :  { %900 = vmatpush.bf16.msrb.mxu3 %v2435_v3  ;;  %v1769_v47 = vor.u32 %v2263_v42, %v1766_v43  ;;  %v187_v42 = vunpack.c.l.b16 %v111_v40  ;;  %v188_v43 = vunpack.c.h.b16 %v111_v40 }
  0x26   :  { %772 = vmatpush.bf16.msrb.mxu0 %v2442_v4 }
  0x27   :  { %815 = vmatpush.bf16.msrb.mxu1 %v2447_v5 }
  0x28   :  { %858 = vmatpush.bf16.msrb.mxu2 %v2454_v6 }
  0x29   :  { %901 = vmatpush.bf16.msrb.mxu3 %v2459_v7 }
  0x2a   :  { %773 = vmatpush.bf16.msrb.mxu0 %v2466_v8 }
  0x2b   :  { %816 = vmatpush.bf16.msrb.mxu1 %v2471_v9 }
  0x2c   :  { %859 = vmatpush.bf16.msrb.mxu2 %v2478_v10 }
  0x2d   :  { %902 = vmatpush.bf16.msrb.mxu3 %v2483_v11 }
  0x2e   :  { %774 = vmatpush.bf16.msrb.mxu0 %v2490_v12 }
  0x2f   :  { %817 = vmatpush.bf16.msrb.mxu1 %v2495_v13 }
  0x30   :  { %860 = vmatpush.bf16.msrb.mxu2 %v2502_v14 }
  0x31   :  { %903 = vmatpush.bf16.msrb.mxu3 %v2507_v15  ;;  %452 = vmatmul.bf16.gmra.mxu0 %v1725_v52  ;;  %v1780_v52 = vld [vmem:[%s3501_s0 + $0x88] sm:$0xf] }
  0x32   :  { %495 = vmatmul.bf16.gmra.mxu1 %v1729_v53  ;;  %775 = vmatpush.bf16.msrb.mxu0 %v2514_v16  ;;  %v2269_v53 = vld [vmem:[%s3501_s0 + $0x94] sm:$0xf0] }
  0x33   :  { %538 = vmatmul.bf16.gmra.mxu2 %v1733_v54  ;;  %818 = vmatpush.bf16.msrb.mxu1 %v2519_v17  ;;  %v2267_v54 = vld [vmem:[%s3501_s0 + $0x8c] sm:$0xf]  ;;  %v1781_v58 = vor.u32 %v2269_v53, %v1780_v52  ;;  %v2274_v52 = vld [vmem:[%s3502_s1 + $0x4] sm:$0xf]  ;;  %v1934_v53 = vld [vmem:[%s3502_s1 + $0x10] sm:$0xf0] }
  0x34   :  { %861 = vmatpush.bf16.msrb.mxu2 %v2526_v18  ;;  %581 = vmatmul.bf16.gmra.mxu3 %v1737_v55  ;;  %v1782_v55 = vld [vmem:[%s3501_s0 + $0x98] sm:$0xf0] }
  0x35   :  { %904 = vmatpush.bf16.msrb.mxu3 %v2531_v19  ;;  %v1785_v59 = vor.u32 %v2267_v54, %v1782_v55  ;;  %v1940_v54 = vld [vmem:[%s3502_s1 + $0x8] sm:$0xf]  ;;  %v2277_v55 = vld [vmem:[%s3502_s1 + $0x14] sm:$0xf0] }
  0x36   :  { %776 = vmatpush.bf16.msrb.mxu0 %v2538_v20  ;;  %v1941_v60 = vor.u32 %v2277_v55, %v1940_v54 }
  0x37   :  { %819 = vmatpush.bf16.msrb.mxu1 %v2543_v21 }
  0x38   :  { %862 = vmatpush.bf16.msrb.mxu2 %v2550_v22 }
  0x39   :  { %905 = vmatpush.bf16.msrb.mxu3 %v2555_v23 }
  0x3a   :  { %777 = vmatpush.bf16.msrb.mxu0 %v2562_v24 }
  0x3b   :  { %820 = vmatpush.bf16.msrb.mxu1 %v2567_v25 }
  0x3c   :  { %863 = vmatpush.bf16.msrb.mxu2 %v2574_v26 }
  0x3d   :  { %906 = vmatpush.bf16.msrb.mxu3 %v2579_v27 }
  0x3e   :  { %778 = vmatpush.bf16.msrb.mxu0 %v2584_v28 }
  0x3f   :  { %821 = vmatpush.bf16.msrb.mxu1 %v2589_v29 }
  0x40   :  { %864 = vmatpush.bf16.msrb.mxu2 %v2594_v30 }
  0x41   :  { %907 = vmatpush.bf16.msrb.mxu3 %v2599_v31  ;;  %457 = vmatmul.bf16.gmra.mxu0 %v1741_v32  ;;  %v1796_v32 = vld [vmem:[%s3501_s0 + $0xa8] sm:$0xf] }
  0x42   :  { %1103 = vmatpush.bf16.msra.mxu0 %v2420_v0  ;;  %500 = vmatmul.bf16.gmra.mxu1 %v1745_v33  ;;  %v2273_v33 = vld [vmem:[%s3501_s0 + $0xb4] sm:$0xf0] }
  0x43   :  { %1146 = vmatpush.bf16.msra.mxu1 %v2425_v1  ;;  %543 = vmatmul.bf16.gmra.mxu2 %v1749_v34  ;;  %v2271_v34 = vld [vmem:[%s3501_s0 + $0xac] sm:$0xf]  ;;  %v1797_v38 = vor.u32 %v2273_v33, %v1796_v32 }
  0x44   :  { %1189 = vmatpush.bf16.msra.mxu2 %v2430_v2  ;;  %586 = vmatmul.bf16.gmra.mxu3 %v1753_v35  ;;  %v1798_v35 = vld [vmem:[%s3501_s0 + $0xb8] sm:$0xf0] }
  0x45   :  { %1232 = vmatpush.bf16.msra.mxu3 %v2435_v3  ;;  %v1801_v39 = vor.u32 %v2271_v34, %v1798_v35 }
  0x46   :  { %1104 = vmatpush.bf16.msra.mxu0 %v2442_v4 }
  0x47   :  { %1147 = vmatpush.bf16.msra.mxu1 %v2447_v5 }
  0x48   :  { %1190 = vmatpush.bf16.msra.mxu2 %v2454_v6 }
  0x49   :  { %1233 = vmatpush.bf16.msra.mxu3 %v2459_v7 }
  0x4a   :  { %1105 = vmatpush.bf16.msra.mxu0 %v2466_v8 }
  0x4b   :  { %1148 = vmatpush.bf16.msra.mxu1 %v2471_v9 }
  0x4c   :  { %1191 = vmatpush.bf16.msra.mxu2 %v2478_v10 }
  0x4d   :  { %1234 = vmatpush.bf16.msra.mxu3 %v2483_v11 }
  0x4e   :  { %1106 = vmatpush.bf16.msra.mxu0 %v2490_v12 }
  0x4f   :  { %1149 = vmatpush.bf16.msra.mxu1 %v2495_v13 }
  0x50   :  { %1192 = vmatpush.bf16.msra.mxu2 %v2502_v14 }
  0x51   :  { %1235 = vmatpush.bf16.msra.mxu3 %v2507_v15  ;;  %462 = vmatmul.bf16.gmra.mxu0 %v1757_v44  ;;  %v189_v44 = vunpack.c.l.b16 %v112_v41 }
  0x52   :  { %1107 = vmatpush.bf16.msra.mxu0 %v2514_v16  ;;  %505 = vmatmul.bf16.gmra.mxu1 %v1761_v45  ;;  %v190_v45 = vunpack.c.h.b16 %v112_v41 }
  0x53   :  { %1150 = vmatpush.bf16.msra.mxu1 %v2519_v17  ;;  %548 = vmatmul.bf16.gmra.mxu2 %v1765_v46  ;;  %v215_v46 = vpack.c.b16 %v187_v42, %v187_v42  ;;  %v217_v48 = vpack.c.b16 %v189_v44, %v189_v44 }
  0x54   :  { %1193 = vmatpush.bf16.msra.mxu2 %v2526_v18  ;;  %591 = vmatmul.bf16.gmra.mxu3 %v1769_v47  ;;  %v216_v47 = vpack.c.b16 %v188_v43, %v188_v43  ;;  %v218_v49 = vpack.c.b16 %v190_v45, %v190_v45 }
  0x55   :  { %1236 = vmatpush.bf16.msra.mxu3 %v2531_v19 }
  0x56   :  { %1108 = vmatpush.bf16.msra.mxu0 %v2538_v20 }
  0x57   :  { %1151 = vmatpush.bf16.msra.mxu1 %v2543_v21 }
  0x58   :  { %1194 = vmatpush.bf16.msra.mxu2 %v2550_v22 }
  0x59   :  { %1237 = vmatpush.bf16.msra.mxu3 %v2555_v23 }
  0x5a   :  { %1109 = vmatpush.bf16.msra.mxu0 %v2562_v24 }
  0x5b   :  { %1152 = vmatpush.bf16.msra.mxu1 %v2567_v25 }
  0x5c   :  { %1195 = vmatpush.bf16.msra.mxu2 %v2574_v26 }
  0x5d   :  { %1238 = vmatpush.bf16.msra.mxu3 %v2579_v27 }
  0x5e   :  { %1110 = vmatpush.bf16.msra.mxu0 %v2584_v28 }
  0x5f   :  { %1153 = vmatpush.bf16.msra.mxu1 %v2589_v29 }
  0x60   :  { %1196 = vmatpush.bf16.msra.mxu2 %v2594_v30 }
  0x61   :  { %1239 = vmatpush.bf16.msra.mxu3 %v2599_v31  ;;  %467 = vmatmul.bf16.gmra.mxu0 %v1773_v56  ;;  %v2275_v56 = vld [vmem:[%s3502_s1 + $0xc] sm:$0xf] }
  0x62   :  { %510 = vmatmul.bf16.gmra.mxu1 %v1777_v57  ;;  %v1942_v57 = vld [vmem:[%s3502_s1 + $0x18] sm:$0xf0] }
  0x63   :  { %553 = vmatmul.bf16.gmra.mxu2 %v1781_v58  ;;  %v1933_v58 = vor.u32 %v2276_v51, %v1932_v50  ;;  %v1945_v61 = vor.u32 %v2275_v56, %v1942_v57  ;;  %v1988_v50 = vld [vmem:[%s3502_s1 + $0x68] sm:$0xf]  ;;  %v2289_v51 = vld [vmem:[%s3502_s1 + $0x74] sm:$0xf0] }
  0x64   :  { %596 = vmatmul.bf16.gmra.mxu3 %v1785_v59  ;;  %v1937_v59 = vor.u32 %v2274_v52, %v1934_v53  ;;  %v2287_v52 = vld [vmem:[%s3502_s1 + $0x6c] sm:$0xf]  ;;  %v1990_v53 = vld [vmem:[%s3502_s1 + $0x78] sm:$0xf0] }
  0x71   :  { %472 = vmatmul.bf16.gmra.mxu0 %v1789_v36 }
  0x72   :  { %515 = vmatmul.bf16.gmra.mxu1 %v1793_v37 }
  0x73   :  { %558 = vmatmul.bf16.gmra.mxu2 %v1797_v38 }
  0x74   :  { %601 = vmatmul.bf16.gmra.mxu3 %v1801_v39 }
  0x81   :  { %477 = vmatmul.bf16.gmra.mxu0 %v215_v46 }
  0x82   :  { %520 = vmatmul.bf16.gmra.mxu1 %v216_v47 }
  0x83   :  { %563 = vmatmul.bf16.gmra.mxu2 %v217_v48 }
  0x84   :  { %606 = vmatmul.bf16.gmra.mxu3 %v218_v49 }
  0x91   :  { %779 = vmatmul.bf16.vlgmr.msrb.gmra.mxu0 %v1933_v58 }
  0x92   :  { %822 = vmatmul.bf16.vlgmr.msrb.gmra.mxu1 %v1937_v59  ;;  %1435 = vmatpush.bf16.msrb.mxu0 %v2420_v0  ;;  %v2278_v0 = vld [vmem:[%s3502_s1 + $0x24] sm:$0xf] }
  0x93   :  { %865 = vmatmul.bf16.vlgmr.msrb.gmra.mxu2 %v1941_v60  ;;  %1478 = vmatpush.bf16.msrb.mxu1 %v2425_v1  ;;  %v1950_v1 = vld [vmem:[%s3502_s1 + $0x30] sm:$0xf0] }
  0x94   :  { %908 = vmatmul.bf16.vlgmr.msrb.gmra.mxu3 %v1945_v61  ;;  %1521 = vmatpush.bf16.msrb.mxu2 %v2430_v2  ;;  %v2280_v2 = vld [vmem:[%s3502_s1 + $0x2c] sm:$0xf0]  ;;  %v1953_v63 = vor.u32 %v2278_v0, %v1950_v1  ;;  %v1989_v61 = vor.u32 %v2289_v51, %v1988_v50 }
  0x95   :  { %1564 = vmatpush.bf16.msrb.mxu3 %v2435_v3  ;;  %v1956_v3 = vld [vmem:[%s3502_s1 + $0x28] sm:$0xf] }
  0x96   :  { %1436 = vmatpush.bf16.msrb.mxu0 %v2442_v4  ;;  %v2281_v4 = vld [vmem:[%s3502_s1 + $0x34] sm:$0xf0] }
  0x97   :  { %1479 = vmatpush.bf16.msrb.mxu1 %v2447_v5  ;;  %v2279_v5 = vld [vmem:[%s3502_s1 + $0x2c] sm:$0xf]  ;;  %v1957_v34 = vor.u32 %v2281_v4, %v1956_v3 }
  0x98   :  { %1522 = vmatpush.bf16.msrb.mxu2 %v2454_v6  ;;  %v1958_v6 = vld [vmem:[%s3502_s1 + $0x38] sm:$0xf0] }
  0x99   :  { %1565 = vmatpush.bf16.msrb.mxu3 %v2459_v7  ;;  %v1949_v7 = vor.u32 %v2280_v2, %v1948_v62  ;;  %v1961_v35 = vor.u32 %v2279_v5, %v1958_v6  ;;  %v1993_v62 = vor.u32 %v2287_v52, %v1990_v53 }
  0x9a   :  { %1437 = vmatpush.bf16.msrb.mxu0 %v2466_v8 }
  0x9b   :  { %1480 = vmatpush.bf16.msrb.mxu1 %v2471_v9 }
  0x9c   :  { %1523 = vmatpush.bf16.msrb.mxu2 %v2478_v10 }
  0x9d   :  { %1566 = vmatpush.bf16.msrb.mxu3 %v2483_v11 }
  0x9e   :  { %v448_v32 = vpop.f32.mrf.mxu0  ;;  %1438 = vmatpush.bf16.msrb.mxu0 %v2490_v12 }
  0x9f   :  { %v491_v33 = vpop.f32.mrf.mxu1  ;;  %1481 = vmatpush.bf16.msrb.mxu1 %v2495_v13 }
  0xa0   :  { %v492_v36 = vadd.f32 %v491_v33, %v448_v32  ;;  %1524 = vmatpush.bf16.msrb.mxu2 %v2502_v14  ;;  %v1996_v32 = vld [vmem:[%s3502_s1 + $0x80] sm:$0xf]  ;;  %v2292_v33 = vld [vmem:[%s3502_s1 + $0x8c] sm:$0xf0] }
  0xa1   :  { %1567 = vmatpush.bf16.msrb.mxu3 %v2507_v15  ;;  %784 = vmatmul.bf16.gmra.mxu0 %v1949_v7  ;;  %v1964_v15 = vld [vmem:[%s3502_s1 + $0x40] sm:$0xf] }
  0xa2   :  { %827 = vmatmul.bf16.gmra.mxu1 %v1953_v63  ;;  %1439 = vmatpush.bf16.msrb.mxu0 %v2514_v16  ;;  %v2284_v16 = vld [vmem:[%s3502_s1 + $0x4c] sm:$0xf0] }
  0xa3   :  { %870 = vmatmul.bf16.gmra.mxu2 %v1957_v34  ;;  %1482 = vmatpush.bf16.msrb.mxu1 %v2519_v17  ;;  %v2282_v17 = vld [vmem:[%s3502_s1 + $0x44] sm:$0xf]  ;;  %v1965_v38 = vor.u32 %v2284_v16, %v1964_v15 }
  0xa4   :  { %913 = vmatmul.bf16.gmra.mxu3 %v1961_v35  ;;  %1525 = vmatpush.bf16.msrb.mxu2 %v2526_v18  ;;  %v1966_v18 = vld [vmem:[%s3502_s1 + $0x50] sm:$0xf0]  ;;  %v2290_v34 = vld [vmem:[%s3502_s1 + $0x84] sm:$0xf] }
  0xa5   :  { %1568 = vmatpush.bf16.msrb.mxu3 %v2531_v19  ;;  %v1972_v19 = vld [vmem:[%s3502_s1 + $0x48] sm:$0xf]  ;;  %v1969_v39 = vor.u32 %v2282_v17, %v1966_v18  ;;  %v1998_v35 = vld [vmem:[%s3502_s1 + $0x90] sm:$0xf0] }
  0xa6   :  { %v534_v8 = vpop.f32.mrf.mxu2  ;;  %v450_v11 = vpop.f32.mrf.mxu0  ;;  %1440 = vmatpush.bf16.msrb.mxu0 %v2538_v20  ;;  %v2285_v20 = vld [vmem:[%s3502_s1 + $0x54] sm:$0xf0]  ;;  %v2001_v15 = vor.u32 %v2290_v34, %v1998_v35 }
  0xa7   :  { %v577_v9 = vpop.f32.mrf.mxu3  ;;  %v535_v10 = vadd.f32 %v534_v8, %v492_v36  ;;  %v493_v14 = vpop.f32.mrf.mxu1  ;;  %1483 = vmatpush.bf16.msrb.mxu1 %v2543_v21  ;;  %v2283_v21 = vld [vmem:[%s3502_s1 + $0x4c] sm:$0xf]  ;;  %v1973_v43 = vor.u32 %v2285_v20, %v1972_v19  ;;  %v2004_v36 = vld [vmem:[%s3502_s1 + $0x88] sm:$0xf]  ;;  %v2293_v8 = vld [vmem:[%s3502_s1 + $0x94] sm:$0xf0] }
  0xa8   :  { %v494_v12 = vadd.f32 %v493_v14, %v450_v11  ;;  %1526 = vmatpush.bf16.msrb.mxu2 %v2550_v22  ;;  %v1974_v22 = vld [vmem:[%s3502_s1 + $0x58] sm:$0xf0]  ;;  %v2005_v19 = vor.u32 %v2293_v8, %v2004_v36 }
  0xa9   :  { %1569 = vmatpush.bf16.msrb.mxu3 %v2555_v23  ;;  %v2893_v13 = vadd.f32 %v577_v9, %v535_v10  ;;  %v1977_v44 = vor.u32 %v2283_v21, %v1974_v22  ;;  %v2291_v9 = vld [vmem:[%s3502_s1 + $0x8c] sm:$0xf]  ;;  %v2006_v10 = vld [vmem:[%s3502_s1 + $0x98] sm:$0xf0] }
  0xaa   :  { %1441 = vmatpush.bf16.msrb.mxu0 %v2562_v24  ;;  %v2009_v20 = vor.u32 %v2291_v9, %v2006_v10 }
  0xab   :  { %1484 = vmatpush.bf16.msrb.mxu1 %v2567_v25 }
  0xac   :  { %1527 = vmatpush.bf16.msrb.mxu2 %v2574_v26 }
  0xad   :  { %1570 = vmatpush.bf16.msrb.mxu3 %v2579_v27 }
  0xae   :  { %v536_v23 = vpop.f32.mrf.mxu2  ;;  %v453_v41 = vpop.f32.mrf.mxu0  ;;  %1442 = vmatpush.bf16.msrb.mxu0 %v2584_v28  ;;  %v2288_v28 = vld [vmem:[%s3502_s1 + $0x6c] sm:$0xf0] }
  0xaf   :  { %v579_v37 = vpop.f32.mrf.mxu3  ;;  %v537_v40 = vadd.f32 %v536_v23, %v494_v12  ;;  %v496_v42 = vpop.f32.mrf.mxu1  ;;  %1485 = vmatpush.bf16.msrb.mxu1 %v2589_v29  ;;  %v2286_v29 = vld [vmem:[%s3502_s1 + $0x64] sm:$0xf]  ;;  %v1997_v12 = vor.u32 %v2292_v33, %v1996_v32 }
  0xb0   :  { %v497_v45 = vadd.f32 %v496_v42, %v453_v41  ;;  %1528 = vmatpush.bf16.msrb.mxu2 %v2594_v30  ;;  %v1980_v30 = vld [vmem:[%s3502_s1 + $0x60] sm:$0xf] }
  0xb1   :  { %1571 = vmatpush.bf16.msrb.mxu3 %v2599_v31  ;;  %v2927_v26 = vadd.f32 %v579_v37, %v537_v40  ;;  %789 = vmatmul.bf16.gmra.mxu0 %v1965_v38  ;;  %v1982_v31 = vld [vmem:[%s3502_s1 + $0x70] sm:$0xf0]  ;;  %v1981_v56 = vor.u32 %v2288_v28, %v1980_v30 }
  0xb2   :  { %832 = vmatmul.bf16.gmra.mxu1 %v1969_v39  ;;  %v1985_v57 = vor.u32 %v2286_v29, %v1982_v31 }
  0xb3   :  { %875 = vmatmul.bf16.gmra.mxu2 %v1973_v43  ;;  %v2012_v43 = vld [vmem:[%s3502_s1 + $0xa0] sm:$0xf] }
  0xb4   :  { %918 = vmatmul.bf16.gmra.mxu3 %v1977_v44  ;;  %v2296_v44 = vld [vmem:[%s3502_s1 + $0xac] sm:$0xf0] }
  0xb5   :  { %v2013_v28 = vor.u32 %v2296_v44, %v2012_v43  ;;  %v2038_v43 = vld [vmem:[%s3503_s2 + $0x18] sm:$0xf0] }
  0xb6   :  { %v539_v24 = vpop.f32.mrf.mxu2  ;;  %v455_v46 = vpop.f32.mrf.mxu0 }
  0xb7   :  { %v582_v25 = vpop.f32.mrf.mxu3  ;;  %v540_v27 = vadd.f32 %v539_v24, %v497_v45  ;;  %v498_v47 = vpop.f32.mrf.mxu1  ;;  %v2294_v45 = vld [vmem:[%s3502_s1 + $0xa4] sm:$0xf]  ;;  %v2014_v24 = vld [vmem:[%s3502_s1 + $0xb0] sm:$0xf0] }
  0xb8   :  { %v499_v48 = vadd.f32 %v498_v47, %v455_v46  ;;  %v2295_v46 = vld [vmem:[%s3502_s1 + $0xac] sm:$0xf]  ;;  %v2022_v47 = vld [vmem:[%s3502_s1 + $0xb8] sm:$0xf0]  ;;  %v2017_v29 = vor.u32 %v2294_v45, %v2014_v24 }
  0xb9   :  { %v2931_v49 = vadd.f32 %v582_v25, %v540_v27  ;;  %v2020_v25 = vld [vmem:[%s3502_s1 + $0xa8] sm:$0xf]  ;;  %v2297_v27 = vld [vmem:[%s3502_s1 + $0xb4] sm:$0xf0]  ;;  %v2025_v53 = vor.u32 %v2295_v46, %v2022_v47 }
  0xba   :  { %v2021_v52 = vor.u32 %v2297_v27, %v2020_v25 }
  0xbe   :  { %v541_v54 = vpop.f32.mrf.mxu2  ;;  %v458_v59 = vpop.f32.mrf.mxu0 }
  0xbf   :  { %v584_v55 = vpop.f32.mrf.mxu3  ;;  %v542_v58 = vadd.f32 %v541_v54, %v499_v48  ;;  %v501_v60 = vpop.f32.mrf.mxu1 }
  0xc0   :  { %v502_v2 = vadd.f32 %v501_v60, %v458_v59 }
  0xc1   :  { %v2957_v0 = vadd.f32 %v584_v55, %v542_v58  ;;  %794 = vmatmul.bf16.gmra.mxu0 %v1981_v56 }
  0xc2   :  { %837 = vmatmul.bf16.gmra.mxu1 %v1985_v57 }
  0xc3   :  { %880 = vmatmul.bf16.gmra.mxu2 %v1989_v61  ;;  %v635_v61 = vld [vmem:[%s3502_s1 + $0xc0] sm:$0xff] }
  0xc4   :  { %923 = vmatmul.bf16.gmra.mxu3 %v1993_v62 }
  0xc6   :  { %v544_v1 = vpop.f32.mrf.mxu2  ;;  %v460_v5 = vpop.f32.mrf.mxu0 }
  0xc7   :  { %v587_v3 = vpop.f32.mrf.mxu3  ;;  %v545_v4 = vadd.f32 %v544_v1, %v502_v2  ;;  %v503_v6 = vpop.f32.mrf.mxu1  ;;  %v636_v2 = vld [vmem:[%s3502_s1 + $0xc8] sm:$0xff] }
  0xc8   :  { %v504_v7 = vadd.f32 %v503_v6, %v460_v5  ;;  %v713_v5 = vunpack.c.l.b16 %v636_v2  ;;  %v714_v6 = vunpack.c.h.b16 %v636_v2  ;;  %v2054_v2 = vld [vmem:[%s3503_s2 + $0x38] sm:$0xf0] }
  0xc9   :  { %v2959_v63 = vadd.f32 %v587_v3, %v545_v4  ;;  %v711_v3 = vunpack.c.l.b16 %v635_v61  ;;  %v712_v4 = vunpack.c.h.b16 %v635_v61  ;;  %v2305_v61 = vld [vmem:[%s3503_s2 + $0x34] sm:$0xf0] }
  0xca   :  { %v741_v9 = vpack.c.b16 %v713_v5, %v713_v5  ;;  %v742_v10 = vpack.c.b16 %v714_v6, %v714_v6 }
  0xcb   :  { %v739_v33 = vpack.c.b16 %v711_v3, %v711_v3  ;;  %v740_v34 = vpack.c.b16 %v712_v4, %v712_v4 }
  0xce   :  { %v546_v11 = vpop.f32.mrf.mxu2  ;;  %v463_v17 = vpop.f32.mrf.mxu0 }
  0xcf   :  { %v589_v14 = vpop.f32.mrf.mxu3  ;;  %v547_v16 = vadd.f32 %v546_v11, %v504_v7  ;;  %v506_v18 = vpop.f32.mrf.mxu1 }
  0xd0   :  { %v507_v21 = vadd.f32 %v506_v18, %v463_v17 }
  0xd1   :  { %v2985_v22 = vadd.f32 %v589_v14, %v547_v16  ;;  %799 = vmatmul.bf16.gmra.mxu0 %v1997_v12 }
  0xd2   :  { %842 = vmatmul.bf16.gmra.mxu1 %v2001_v15 }
  0xd3   :  { %885 = vmatmul.bf16.gmra.mxu2 %v2005_v19 }
  0xd4   :  { %928 = vmatmul.bf16.gmra.mxu3 %v2009_v20 }
  0xd6   :  { %v549_v23 = vpop.f32.mrf.mxu2  ;;  %v465_v39 = vpop.f32.mrf.mxu0 }
  0xd7   :  { %v592_v37 = vpop.f32.mrf.mxu3  ;;  %v550_v38 = vadd.f32 %v549_v23, %v507_v21  ;;  %v508_v40 = vpop.f32.mrf.mxu1  ;;  %v2028_v21 = vld [vmem:[%s3503_s2] sm:$0xf]  ;;  %v2300_v23 = vld [vmem:[%s3503_s2 + $0xc] sm:$0xf0] }
  0xd8   :  { %v509_v41 = vadd.f32 %v508_v40, %v465_v39  ;;  %v2036_v39 = vld [vmem:[%s3503_s2 + $0x8] sm:$0xf]  ;;  %v2301_v40 = vld [vmem:[%s3503_s2 + $0x14] sm:$0xf0]  ;;  %v2029_v24 = vor.u32 %v2300_v23, %v2028_v21  ;;  %v2062_v21 = vld [vmem:[%s3503_s2 + $0x50] sm:$0xf0] }
  0xd9   :  { %v2987_v42 = vadd.f32 %v592_v37, %v550_v38  ;;  %v2298_v37 = vld [vmem:[%s3503_s2 + $0x4] sm:$0xf]  ;;  %v2030_v38 = vld [vmem:[%s3503_s2 + $0x10] sm:$0xf0]  ;;  %v2068_v23 = vld [vmem:[%s3503_s2 + $0x48] sm:$0xf] }
  0xda   :  { %v2033_v25 = vor.u32 %v2298_v37, %v2030_v38  ;;  %v2309_v37 = vld [vmem:[%s3503_s2 + $0x54] sm:$0xf0]  ;;  %v2307_v38 = vld [vmem:[%s3503_s2 + $0x4c] sm:$0xf] }
  0xde   :  { %v551_v48 = vpop.f32.mrf.mxu2  ;;  %v468_v50 = vpop.f32.mrf.mxu0 }
  0xdf   :  { %v594_v30 = vpop.f32.mrf.mxu3  ;;  %v552_v31 = vadd.f32 %v551_v48, %v509_v41  ;;  %v511_v51 = vpop.f32.mrf.mxu1  ;;  %v2299_v41 = vld [vmem:[%s3503_s2 + $0xc] sm:$0xf]  ;;  %v2037_v48 = vor.u32 %v2301_v40, %v2036_v39  ;;  %v2070_v39 = vld [vmem:[%s3503_s2 + $0x58] sm:$0xf0] }
  0xe0   :  { %v512_v54 = vadd.f32 %v511_v51, %v468_v50 }
  0xe1   :  { %v3013_v55 = vadd.f32 %v594_v30, %v552_v31  ;;  %804 = vmatmul.bf16.gmra.mxu0 %v2013_v28  ;;  %v2041_v30 = vor.u32 %v2299_v41, %v2038_v43 }
  0xe2   :  { %847 = vmatmul.bf16.gmra.mxu1 %v2017_v29 }
  0xe3   :  { %890 = vmatmul.bf16.gmra.mxu2 %v2021_v52 }
  0xe4   :  { %933 = vmatmul.bf16.gmra.mxu3 %v2025_v53 }
  0xe6   :  { %v554_v56 = vpop.f32.mrf.mxu2  ;;  %v470_v59 = vpop.f32.mrf.mxu0 }
  0xe7   :  { %v597_v57 = vpop.f32.mrf.mxu3  ;;  %v555_v58 = vadd.f32 %v554_v56, %v512_v54  ;;  %v513_v60 = vpop.f32.mrf.mxu1  ;;  %v2044_v56 = vld [vmem:[%s3503_s2 + $0x20] sm:$0xf] }
  0xe8   :  { %v514_v62 = vadd.f32 %v513_v60, %v470_v59  ;;  %v2046_v59 = vld [vmem:[%s3503_s2 + $0x30] sm:$0xf0]  ;;  %v2052_v60 = vld [vmem:[%s3503_s2 + $0x28] sm:$0xf] }
  0xe9   :  { %v3021_v1 = vadd.f32 %v597_v57, %v555_v58  ;;  %v2304_v57 = vld [vmem:[%s3503_s2 + $0x2c] sm:$0xf0]  ;;  %v2302_v58 = vld [vmem:[%s3503_s2 + $0x24] sm:$0xf] }
  0xea   :  { %v2045_v5 = vor.u32 %v2304_v57, %v2044_v56  ;;  %v2049_v6 = vor.u32 %v2302_v58, %v2046_v59  ;;  %v2076_v57 = vld [vmem:[%s3503_s2 + $0x60] sm:$0xf]  ;;  %v2312_v58 = vld [vmem:[%s3503_s2 + $0x6c] sm:$0xf0] }
  0xee   :  { %v556_v7 = vpop.f32.mrf.mxu2  ;;  %v473_v36 = vpop.f32.mrf.mxu0 }
  0xef   :  { %v599_v32 = vpop.f32.mrf.mxu3  ;;  %v557_v35 = vadd.f32 %v556_v7, %v514_v62  ;;  %v516_v8 = vpop.f32.mrf.mxu1  ;;  %v2303_v62 = vld [vmem:[%s3503_s2 + $0x2c] sm:$0xf] }
  0xf0   :  { %v517_v11 = vadd.f32 %v516_v8, %v473_v36 }
  0xf1   :  { %v3023_v14 = vadd.f32 %v599_v32, %v557_v35  ;;  %809 = vmatmul.bf16.gmra.mxu0 %v739_v33  ;;  %v2053_v33 = vor.u32 %v2305_v61, %v2052_v60  ;;  %v2310_v60 = vld [vmem:[%s3503_s2 + $0x64] sm:$0xf]  ;;  %v2078_v61 = vld [vmem:[%s3503_s2 + $0x70] sm:$0xf0] }
  0xf2   :  { %852 = vmatmul.bf16.gmra.mxu1 %v740_v34  ;;  %v2057_v34 = vor.u32 %v2303_v62, %v2054_v2  ;;  %v2084_v62 = vld [vmem:[%s3503_s2 + $0x68] sm:$0xf]  ;;  %v2313_v2 = vld [vmem:[%s3503_s2 + $0x74] sm:$0xf0] }
  0xf3   :  { %895 = vmatmul.bf16.gmra.mxu2 %v741_v9 }
  0xf4   :  { %938 = vmatmul.bf16.gmra.mxu3 %v742_v10 }
  0xf6   :  { %v559_v12 = vpop.f32.mrf.mxu2  ;;  %v475_v17 = vpop.f32.mrf.mxu0 }
  0xf7   :  { %v602_v15 = vpop.f32.mrf.mxu3  ;;  %v560_v16 = vadd.f32 %v559_v12, %v517_v11  ;;  %v518_v18 = vpop.f32.mrf.mxu1 }
  0xf8   :  { %v519_v19 = vadd.f32 %v518_v18, %v475_v17  ;;  %v2308_v17 = vld [vmem:[%s3503_s2 + $0x4c] sm:$0xf0] }
  0xf9   :  { %v3025_v20 = vadd.f32 %v602_v15, %v560_v16  ;;  %v2060_v16 = vld [vmem:[%s3503_s2 + $0x40] sm:$0xf] }
  0xfa   :  { %v2061_v43 = vor.u32 %v2308_v17, %v2060_v16 }
  0xfe   :  { %v561_v44 = vpop.f32.mrf.mxu2  ;;  %v478_v46 = vpop.f32.mrf.mxu0 }
  0xff   :  { %v604_v45 = vpop.f32.mrf.mxu3  ;;  %v562_v27 = vadd.f32 %v561_v44, %v519_v19  ;;  %v521_v47 = vpop.f32.mrf.mxu1  ;;  %v2306_v19 = vld [vmem:[%s3503_s2 + $0x44] sm:$0xf] }
 0x100   :  { %v522_v28 = vadd.f32 %v521_v47, %v478_v46  ;;  %v2065_v44 = vor.u32 %v2306_v19, %v2062_v21  ;;  %v2073_v46 = vor.u32 %v2307_v38, %v2070_v39  ;;  %v2092_v38 = vld [vmem:[%s3503_s2 + $0x80] sm:$0xf]  ;;  %v2316_v39 = vld [vmem:[%s3503_s2 + $0x8c] sm:$0xf0] }
 0x101   :  { %v3051_v29 = vadd.f32 %v604_v45, %v562_v27  ;;  %1111 = vmatmul.bf16.vlgmr.msra.gmra.mxu0 %v2029_v24  ;;  %v2069_v27 = vor.u32 %v2309_v37, %v2068_v23 }
 0x102   :  { %1154 = vmatmul.bf16.vlgmr.msra.gmra.mxu1 %v2033_v25 }
 0x103   :  { %1197 = vmatmul.bf16.vlgmr.msra.gmra.mxu2 %v2037_v48 }
 0x104   :  { %1240 = vmatmul.bf16.vlgmr.msra.gmra.mxu3 %v2041_v30 }
 0x106   :  { %v564_v31 = vpop.f32.mrf.mxu2  ;;  %v480_v52 = vpop.f32.mrf.mxu0 }
 0x107   :  { %v607_v50 = vpop.f32.mrf.mxu3  ;;  %v565_v51 = vadd.f32 %v564_v31, %v522_v28  ;;  %v523_v53 = vpop.f32.mrf.mxu1 }
 0x109   :  { %v3053_v54 = vadd.f32 %v607_v50, %v565_v51 }
 0x10e   :  { %v566_v3 = vpop.f32.mrf.mxu2  ;;  %v780_v7 = vpop.f32.mrf.mxu0 }
 0x10f   :  { %v609_v4 = vpop.f32.mrf.mxu3  ;;  %v823_v32 = vpop.f32.mrf.mxu1  ;;  %v2311_v3 = vld [vmem:[%s3503_s2 + $0x6c] sm:$0xf] }
 0x110   :  { %v824_v35 = vadd.f32 %v823_v32, %v780_v7  ;;  %v2086_v4 = vld [vmem:[%s3503_s2 + $0x78] sm:$0xf0]  ;;  %v2077_v7 = vor.u32 %v2312_v58, %v2076_v57  ;;  %v2081_v32 = vor.u32 %v2310_v60, %v2078_v61 }
 0x111   :  { %1116 = vmatmul.bf16.gmra.mxu0 %v2045_v5 }
 0x112   :  { %1159 = vmatmul.bf16.gmra.mxu1 %v2049_v6 }
 0x113   :  { %1202 = vmatmul.bf16.gmra.mxu2 %v2053_v33 }
 0x114   :  { %1245 = vmatmul.bf16.gmra.mxu3 %v2057_v34 }
 0x116   :  { %v866_v36 = vpop.f32.mrf.mxu2  ;;  %v782_v10 = vpop.f32.mrf.mxu0 }
 0x117   :  { %v909_v8 = vpop.f32.mrf.mxu3  ;;  %v867_v9 = vadd.f32 %v866_v36, %v824_v35  ;;  %v825_v11 = vpop.f32.mrf.mxu1  ;;  %v2085_v36 = vor.u32 %v2313_v2, %v2084_v62 }
 0x118   :  { %v826_v12 = vadd.f32 %v825_v11, %v782_v10 }
 0x119   :  { %v3079_v15 = vadd.f32 %v909_v8, %v867_v9  ;;  %v2089_v8 = vor.u32 %v2311_v3, %v2086_v4 }
 0x11b   :  { %v1607_v18 = vmax.f32 %v2893_v13, %v3079_v15 }
 0x11e   :  { %v868_v40 = vpop.f32.mrf.mxu2  ;;  %v785_v24 = vpop.f32.mrf.mxu0 }
 0x11f   :  { %v911_v41 = vpop.f32.mrf.mxu3  ;;  %v869_v45 = vadd.f32 %v868_v40, %v826_v12  ;;  %v828_v25 = vpop.f32.mrf.mxu1 }
 0x120   :  { %v829_v47 = vadd.f32 %v828_v25, %v785_v24  ;;  %v2315_v24 = vld [vmem:[%s3503_s2 + $0x8c] sm:$0xf]  ;;  %v2102_v25 = vld [vmem:[%s3503_s2 + $0x98] sm:$0xf0] }
 0x121   :  { %v3107_v48 = vadd.f32 %v911_v41, %v869_v45  ;;  %1121 = vmatmul.bf16.gmra.mxu0 %v2061_v43  ;;  %v2314_v41 = vld [vmem:[%s3503_s2 + $0x84] sm:$0xf]  ;;  %v2094_v43 = vld [vmem:[%s3503_s2 + $0x90] sm:$0xf0]  ;;  %v2317_v45 = vld [vmem:[%s3503_s2 + $0x94] sm:$0xf0] }
 0x122   :  { %1164 = vmatmul.bf16.gmra.mxu1 %v2065_v44  ;;  %v2100_v44 = vld [vmem:[%s3503_s2 + $0x88] sm:$0xf] }
 0x123   :  { %v1608_v30 = vmax.f32 %v2927_v26, %v3107_v48  ;;  %1207 = vmatmul.bf16.gmra.mxu2 %v2069_v27 }
 0x124   :  { %1250 = vmatmul.bf16.gmra.mxu3 %v2073_v46 }
 0x126   :  { %v871_v28 = vpop.f32.mrf.mxu2  ;;  %v787_v51 = vpop.f32.mrf.mxu0 }
 0x127   :  { %v914_v31 = vpop.f32.mrf.mxu3  ;;  %v872_v50 = vadd.f32 %v871_v28, %v829_v47  ;;  %v830_v52 = vpop.f32.mrf.mxu1  ;;  %v2093_v47 = vor.u32 %v2316_v39, %v2092_v38  ;;  %v2097_v28 = vor.u32 %v2314_v41, %v2094_v43 }
 0x128   :  { %v831_v53 = vadd.f32 %v830_v52, %v787_v51  ;;  %v2101_v52 = vor.u32 %v2317_v45, %v2100_v44 }
 0x129   :  { %v3111_v56 = vadd.f32 %v914_v31, %v872_v50 }
 0x12b   :  { %v1609_v59 = vmax.f32 %v2931_v49, %v3111_v56 }
 0x12e   :  { %v873_v5 = vpop.f32.mrf.mxu2  ;;  %v790_v34 = vpop.f32.mrf.mxu0 }
 0x12f   :  { %v916_v6 = vpop.f32.mrf.mxu3  ;;  %v874_v33 = vadd.f32 %v873_v5, %v831_v53  ;;  %v833_v35 = vpop.f32.mrf.mxu1  ;;  %v2105_v53 = vor.u32 %v2315_v24, %v2102_v25 }
 0x130   :  { %v834_v9 = vadd.f32 %v833_v35, %v790_v34  ;;  %v2318_v34 = vld [vmem:[%s3503_s2 + $0xa4] sm:$0xf]  ;;  %v2110_v35 = vld [vmem:[%s3503_s2 + $0xb0] sm:$0xf0] }
 0x131   :  { %v3139_v10 = vadd.f32 %v916_v6, %v874_v33  ;;  %1126 = vmatmul.bf16.gmra.mxu0 %v2077_v7  ;;  %v2108_v7 = vld [vmem:[%s3503_s2 + $0xa0] sm:$0xf] }
 0x132   :  { %1169 = vmatmul.bf16.gmra.mxu1 %v2081_v32  ;;  %v2320_v32 = vld [vmem:[%s3503_s2 + $0xac] sm:$0xf0] }
 0x133   :  { %v1610_v11 = vmax.f32 %v2957_v0, %v3139_v10  ;;  %1212 = vmatmul.bf16.gmra.mxu2 %v2085_v36  ;;  %v2116_v36 = vld [vmem:[%s3503_s2 + $0xa8] sm:$0xf] }
 0x134   :  { %1255 = vmatmul.bf16.gmra.mxu3 %v2089_v8  ;;  %v2321_v8 = vld [vmem:[%s3503_s2 + $0xb4] sm:$0xf0] }
 0x135   :  { %v2117_v41 = vor.u32 %v2321_v8, %v2116_v36 }
 0x136   :  { %v876_v12 = vpop.f32.mrf.mxu2  ;;  %v792_v19 = vpop.f32.mrf.mxu0 }
 0x137   :  { %v919_v16 = vpop.f32.mrf.mxu3  ;;  %v877_v17 = vadd.f32 %v876_v12, %v834_v9  ;;  %v835_v21 = vpop.f32.mrf.mxu1  ;;  %v2319_v9 = vld [vmem:[%s3503_s2 + $0xac] sm:$0xf]  ;;  %v2118_v12 = vld [vmem:[%s3503_s2 + $0xb8] sm:$0xf0] }
 0x138   :  { %v836_v23 = vadd.f32 %v835_v21, %v792_v19  ;;  %v2109_v19 = vor.u32 %v2320_v32, %v2108_v7  ;;  %v2113_v21 = vor.u32 %v2318_v34, %v2110_v35  ;;  %v2121_v43 = vor.u32 %v2319_v9, %v2118_v12 }
 0x139   :  { %v3143_v37 = vadd.f32 %v919_v16, %v877_v17 }
 0x13b   :  { %v1611_v40 = vmax.f32 %v2959_v63, %v3143_v37 }
 0x13e   :  { %v878_v27 = vpop.f32.mrf.mxu2  ;;  %v795_v50 = vpop.f32.mrf.mxu0 }
 0x13f   :  { %v921_v46 = vpop.f32.mrf.mxu3  ;;  %v879_v31 = vadd.f32 %v878_v27, %v836_v23  ;;  %v838_v51 = vpop.f32.mrf.mxu1 }
 0x140   :  { %v839_v57 = vadd.f32 %v838_v51, %v795_v50  ;;  %v968_v51 = vld [vmem:[%s3503_s2 + $0xc8] sm:$0xff] }
 0x141   :  { %v3171_v58 = vadd.f32 %v921_v46, %v879_v31  ;;  %1131 = vmatmul.bf16.gmra.mxu0 %v2093_v47  ;;  %v967_v31 = vld [vmem:[%s3503_s2 + $0xc0] sm:$0xff] }
 0x142   :  { %1174 = vmatmul.bf16.gmra.mxu1 %v2097_v28 }
 0x143   :  { %1217 = vmatmul.bf16.gmra.mxu2 %v2101_v52 }
 0x144   :  { %1260 = vmatmul.bf16.gmra.mxu3 %v2105_v53  ;;  %v1043_v53 = vunpack.c.l.b16 %v967_v31 }
 0x146   :  { %v881_v61 = vpop.f32.mrf.mxu2  ;;  %v797_v3 = vpop.f32.mrf.mxu0 }
 0x147   :  { %v924_v62 = vpop.f32.mrf.mxu3  ;;  %v882_v2 = vadd.f32 %v881_v61, %v839_v57  ;;  %v840_v4 = vpop.f32.mrf.mxu1  ;;  %v1044_v57 = vunpack.c.h.b16 %v967_v31  ;;  %v2323_v31 = vld [vmem:[%s3504_s3 + $0xc] sm:$0xf] }
 0x148   :  { %v841_v5 = vadd.f32 %v840_v4, %v797_v3 }
 0x149   :  { %v3175_v6 = vadd.f32 %v924_v62, %v882_v2  ;;  %v1045_v62 = vunpack.c.l.b16 %v968_v51  ;;  %v1046_v2 = vunpack.c.h.b16 %v968_v51  ;;  %v1072_v7 = vpack.c.b16 %v1044_v57, %v1044_v57 }
 0x14b   :  { %v1073_v36 = vpack.c.b16 %v1045_v62, %v1045_v62  ;;  %v1074_v8 = vpack.c.b16 %v1046_v2, %v1046_v2 }
 0x14e   :  { %v883_v16 = vpop.f32.mrf.mxu2  ;;  %v800_v38 = vpop.f32.mrf.mxu0 }
 0x14f   :  { %v926_v17 = vpop.f32.mrf.mxu3  ;;  %v884_v23 = vadd.f32 %v883_v16, %v841_v5  ;;  %v843_v39 = vpop.f32.mrf.mxu1  ;;  %v1071_v5 = vpack.c.b16 %v1043_v53, %v1043_v53 }
 0x150   :  { %v844_v44 = vadd.f32 %v843_v39, %v800_v38 }
 0x151   :  { %v3203_v45 = vadd.f32 %v926_v17, %v884_v23  ;;  %1136 = vmatmul.bf16.gmra.mxu0 %v2109_v19 }
 0x152   :  { %1179 = vmatmul.bf16.gmra.mxu1 %v2113_v21 }
 0x153   :  { %1222 = vmatmul.bf16.gmra.mxu2 %v2117_v41 }
 0x154   :  { %1265 = vmatmul.bf16.gmra.mxu3 %v2121_v43  ;;  %v2124_v43 = vld [vmem:[%s3504_s3] sm:$0xf] }
 0x156   :  { %v886_v25 = vpop.f32.mrf.mxu2  ;;  %v802_v47 = vpop.f32.mrf.mxu0 }
 0x157   :  { %v929_v27 = vpop.f32.mrf.mxu3  ;;  %v887_v46 = vadd.f32 %v886_v25, %v844_v44  ;;  %v845_v28 = vpop.f32.mrf.mxu1  ;;  %v2324_v44 = vld [vmem:[%s3504_s3 + $0xc] sm:$0xf0] }
 0x158   :  { %v846_v50 = vadd.f32 %v845_v28, %v802_v47  ;;  %v2132_v47 = vld [vmem:[%s3504_s3 + $0x8] sm:$0xf]  ;;  %v2325_v28 = vld [vmem:[%s3504_s3 + $0x14] sm:$0xf0]  ;;  %v2125_v57 = vor.u32 %v2324_v44, %v2124_v43  ;;  %v2326_v43 = vld [vmem:[%s3504_s3 + $0x24] sm:$0xf] }
 0x159   :  { %v3213_v52 = vadd.f32 %v929_v27, %v887_v46  ;;  %v2322_v27 = vld [vmem:[%s3504_s3 + $0x4] sm:$0xf]  ;;  %v2126_v46 = vld [vmem:[%s3504_s3 + $0x10] sm:$0xf0] }
 0x15a   :  { %v2129_v62 = vor.u32 %v2322_v27, %v2126_v46  ;;  %v2142_v44 = vld [vmem:[%s3504_s3 + $0x30] sm:$0xf0]  ;;  %v2148_v27 = vld [vmem:[%s3504_s3 + $0x28] sm:$0xf]  ;;  %v2329_v46 = vld [vmem:[%s3504_s3 + $0x34] sm:$0xf0] }
 0x15e   :  { %v888_v3 = vpop.f32.mrf.mxu2  ;;  %v805_v34 = vpop.f32.mrf.mxu0 }
 0x15f   :  { %v931_v4 = vpop.f32.mrf.mxu3  ;;  %v889_v32 = vadd.f32 %v888_v3, %v846_v50  ;;  %v848_v35 = vpop.f32.mrf.mxu1  ;;  %v2134_v50 = vld [vmem:[%s3504_s3 + $0x18] sm:$0xf0] }
 0x160   :  { %v849_v9 = vadd.f32 %v848_v35, %v805_v34 }
 0x161   :  { %v3217_v12 = vadd.f32 %v931_v4, %v889_v32  ;;  %1141 = vmatmul.bf16.gmra.mxu0 %v1071_v5  ;;  %v2133_v5 = vor.u32 %v2325_v28, %v2132_v47  ;;  %v2327_v47 = vld [vmem:[%s3504_s3 + $0x2c] sm:$0xf]  ;;  %v2150_v28 = vld [vmem:[%s3504_s3 + $0x38] sm:$0xf0] }
 0x162   :  { %1184 = vmatmul.bf16.gmra.mxu1 %v1072_v7  ;;  %v2137_v7 = vor.u32 %v2323_v31, %v2134_v50 }
 0x163   :  { %1227 = vmatmul.bf16.gmra.mxu2 %v1073_v36 }
 0x164   :  { %1270 = vmatmul.bf16.gmra.mxu3 %v1074_v8 }
 0x166   :  { %v891_v17 = vpop.f32.mrf.mxu2  ;;  %v807_v23 = vpop.f32.mrf.mxu0 }
 0x167   :  { %v934_v19 = vpop.f32.mrf.mxu3  ;;  %v892_v21 = vadd.f32 %v891_v17, %v849_v9  ;;  %v850_v38 = vpop.f32.mrf.mxu1 }
 0x168   :  { %v851_v39 = vadd.f32 %v850_v38, %v807_v23  ;;  %v2140_v23 = vld [vmem:[%s3504_s3 + $0x20] sm:$0xf]  ;;  %v2328_v38 = vld [vmem:[%s3504_s3 + $0x2c] sm:$0xf0] }
 0x169   :  { %v3221_v41 = vadd.f32 %v934_v19, %v892_v21 }
 0x16e   :  { %v893_v51 = vpop.f32.mrf.mxu2  ;;  %v810_v3 = vpop.f32.mrf.mxu0 }
 0x16f   :  { %v936_v53 = vpop.f32.mrf.mxu3  ;;  %v894_v2 = vadd.f32 %v893_v51, %v851_v39  ;;  %v853_v4 = vpop.f32.mrf.mxu1  ;;  %v2141_v51 = vor.u32 %v2328_v38, %v2140_v23  ;;  %v2332_v23 = vld [vmem:[%s3504_s3 + $0x4c] sm:$0xf0]  ;;  %v2330_v38 = vld [vmem:[%s3504_s3 + $0x44] sm:$0xf] }
 0x170   :  { %v854_v32 = vadd.f32 %v853_v4, %v810_v3  ;;  %v2153_v3 = vor.u32 %v2327_v47, %v2150_v28  ;;  %v2166_v47 = vld [vmem:[%s3504_s3 + $0x58] sm:$0xf0] }
 0x171   :  { %v3249_v34 = vadd.f32 %v936_v53, %v894_v2  ;;  %1443 = vmatmul.bf16.vlgmr.msrb.gmra.mxu0 %v2125_v57  ;;  %v2145_v53 = vor.u32 %v2326_v43, %v2142_v44  ;;  %v2149_v2 = vor.u32 %v2329_v46, %v2148_v27  ;;  %v2158_v43 = vld [vmem:[%s3504_s3 + $0x50] sm:$0xf0]  ;;  %v2164_v44 = vld [vmem:[%s3504_s3 + $0x48] sm:$0xf]  ;;  %v2333_v27 = vld [vmem:[%s3504_s3 + $0x54] sm:$0xf0] }
 0x172   :  { %1486 = vmatmul.bf16.vlgmr.msrb.gmra.mxu1 %v2129_v62  ;;  %v2331_v46 = vld [vmem:[%s3504_s3 + $0x4c] sm:$0xf] }
 0x173   :  { %1529 = vmatmul.bf16.vlgmr.msrb.gmra.mxu2 %v2133_v5 }
 0x174   :  { %1572 = vmatmul.bf16.vlgmr.msrb.gmra.mxu3 %v2137_v7 }
 0x176   :  { %v896_v36 = vpop.f32.mrf.mxu2  ;;  %v812_v17 = vpop.f32.mrf.mxu0 }
 0x177   :  { %v939_v8 = vpop.f32.mrf.mxu3  ;;  %v897_v9 = vadd.f32 %v896_v36, %v854_v32  ;;  %v855_v19 = vpop.f32.mrf.mxu1 }
 0x178   :  { %v2156_v19 = vld [vmem:[%s3504_s3 + $0x40] sm:$0xf] }
 0x179   :  { %v3253_v21 = vadd.f32 %v939_v8, %v897_v9 }
 0x17e   :  { %v898_v31 = vpop.f32.mrf.mxu2  ;;  %v1112_v57 = vpop.f32.mrf.mxu0 }
 0x17f   :  { %v941_v50 = vpop.f32.mrf.mxu3  ;;  %v1155_v62 = vpop.f32.mrf.mxu1 }
 0x180   :  { %v1156_v4 = vadd.f32 %v1155_v62, %v1112_v57  ;;  %v2157_v50 = vor.u32 %v2332_v23, %v2156_v19  ;;  %v2336_v23 = vld [vmem:[%s3504_s3 + $0x6c] sm:$0xf0] }
 0x181   :  { %1448 = vmatmul.bf16.gmra.mxu0 %v2141_v51  ;;  %v2161_v51 = vor.u32 %v2330_v38, %v2158_v43  ;;  %v2334_v38 = vld [vmem:[%s3504_s3 + $0x64] sm:$0xf]  ;;  %v2174_v43 = vld [vmem:[%s3504_s3 + $0x70] sm:$0xf0] }
 0x182   :  { %1491 = vmatmul.bf16.gmra.mxu1 %v2145_v53 }
 0x183   :  { %1534 = vmatmul.bf16.gmra.mxu2 %v2149_v2  ;;  %v2165_v2 = vor.u32 %v2333_v27, %v2164_v44  ;;  %v2337_v44 = vld [vmem:[%s3504_s3 + $0x74] sm:$0xf0]  ;;  %v2335_v27 = vld [vmem:[%s3504_s3 + $0x6c] sm:$0xf] }
 0x184   :  { %1577 = vmatmul.bf16.gmra.mxu3 %v2153_v3  ;;  %v2169_v3 = vor.u32 %v2331_v46, %v2166_v47  ;;  %v2182_v46 = vld [vmem:[%s3504_s3 + $0x78] sm:$0xf0] }
 0x186   :  { %v1198_v5 = vpop.f32.mrf.mxu2  ;;  %v1114_v36 = vpop.f32.mrf.mxu0 }
 0x187   :  { %v1241_v7 = vpop.f32.mrf.mxu3  ;;  %v1199_v32 = vadd.f32 %v1198_v5, %v1156_v4  ;;  %v1157_v8 = vpop.f32.mrf.mxu1 }
 0x188   :  { %v1158_v9 = vadd.f32 %v1157_v8, %v1114_v36 }
 0x189   :  { %v3281_v17 = vadd.f32 %v1241_v7, %v1199_v32 }
 0x18e   :  { %v1200_v28 = vpop.f32.mrf.mxu2  ;;  %v1117_v57 = vpop.f32.mrf.mxu0 }
 0x18f   :  { %v1243_v31 = vpop.f32.mrf.mxu3  ;;  %v1201_v53 = vadd.f32 %v1200_v28, %v1158_v9  ;;  %v1160_v62 = vpop.f32.mrf.mxu1  ;;  %v2172_v9 = vld [vmem:[%s3504_s3 + $0x60] sm:$0xf] }
 0x190   :  { %v1161_v4 = vadd.f32 %v1160_v62, %v1117_v57 }
 0x191   :  { %v3307_v5 = vadd.f32 %v1243_v31, %v1201_v53  ;;  %1453 = vmatmul.bf16.gmra.mxu0 %v2157_v50  ;;  %v2173_v31 = vor.u32 %v2336_v23, %v2172_v9  ;;  %v2177_v50 = vor.u32 %v2334_v38, %v2174_v43  ;;  %v2340_v23 = vld [vmem:[%s3504_s3 + $0x8c] sm:$0xf0]  ;;  %v2338_v38 = vld [vmem:[%s3504_s3 + $0x84] sm:$0xf]  ;;  %v2190_v43 = vld [vmem:[%s3504_s3 + $0x90] sm:$0xf0] }
 0x192   :  { %1496 = vmatmul.bf16.gmra.mxu1 %v2161_v51 }
 0x193   :  { %1539 = vmatmul.bf16.gmra.mxu2 %v2165_v2  ;;  %v2185_v2 = vor.u32 %v2335_v27, %v2182_v46  ;;  %v2198_v27 = vld [vmem:[%s3504_s3 + $0x98] sm:$0xf0] }
 0x194   :  { %1582 = vmatmul.bf16.gmra.mxu3 %v2169_v3 }
 0x196   :  { %v1203_v7 = vpop.f32.mrf.mxu2  ;;  %v1119_v8 = vpop.f32.mrf.mxu0 }
 0x197   :  { %v1246_v32 = vpop.f32.mrf.mxu3  ;;  %v1204_v36 = vadd.f32 %v1203_v7, %v1161_v4  ;;  %v1162_v39 = vpop.f32.mrf.mxu1 }
 0x198   :  { %v1163_v35 = vadd.f32 %v1162_v39, %v1119_v8  ;;  %v2180_v39 = vld [vmem:[%s3504_s3 + $0x68] sm:$0xf] }
 0x199   :  { %v3309_v19 = vadd.f32 %v1246_v32, %v1204_v36  ;;  %v2181_v62 = vor.u32 %v2337_v44, %v2180_v39  ;;  %v2341_v39 = vld [vmem:[%s3504_s3 + $0x94] sm:$0xf0]  ;;  %v2339_v44 = vld [vmem:[%s3504_s3 + $0x8c] sm:$0xf] }
 0x19e   :  { %v1205_v47 = vpop.f32.mrf.mxu2  ;;  %v1122_v53 = vpop.f32.mrf.mxu0 }
 0x19f   :  { %v1248_v28 = vpop.f32.mrf.mxu3  ;;  %v1206_v51 = vadd.f32 %v1205_v47, %v1163_v35  ;;  %v1165_v57 = vpop.f32.mrf.mxu1  ;;  %v2188_v35 = vld [vmem:[%s3504_s3 + $0x80] sm:$0xf] }
 0x1a0   :  { %v1166_v3 = vadd.f32 %v1165_v57, %v1122_v53 }
 0x1a1   :  { %v3335_v4 = vadd.f32 %v1248_v28, %v1206_v51  ;;  %1458 = vmatmul.bf16.gmra.mxu0 %v2173_v31  ;;  %v2189_v28 = vor.u32 %v2340_v23, %v2188_v35  ;;  %v2193_v31 = vor.u32 %v2338_v38, %v2190_v43  ;;  %v2344_v23 = vld [vmem:[%s3504_s3 + $0xac] sm:$0xf0]  ;;  %v2342_v38 = vld [vmem:[%s3504_s3 + $0xa4] sm:$0xf]  ;;  %v2206_v43 = vld [vmem:[%s3504_s3 + $0xb0] sm:$0xf0] }
 0x1a2   :  { %1501 = vmatmul.bf16.gmra.mxu1 %v2177_v50 }
 0x1a3   :  { %1544 = vmatmul.bf16.gmra.mxu2 %v2181_v62  ;;  %v2201_v62 = vor.u32 %v2339_v44, %v2198_v27  ;;  %v2214_v44 = vld [vmem:[%s3504_s3 + $0xb8] sm:$0xf0] }
 0x1a4   :  { %1587 = vmatmul.bf16.gmra.mxu3 %v2185_v2 }
 0x1a6   :  { %v1208_v7 = vpop.f32.mrf.mxu2  ;;  %v1124_v8 = vpop.f32.mrf.mxu0 }
 0x1a7   :  { %v1251_v32 = vpop.f32.mrf.mxu3  ;;  %v1209_v36 = vadd.f32 %v1208_v7, %v1166_v3  ;;  %v1167_v25 = vpop.f32.mrf.mxu1 }
 0x1a8   :  { %v1168_v16 = vadd.f32 %v1167_v25, %v1124_v8  ;;  %v2196_v25 = vld [vmem:[%s3504_s3 + $0x88] sm:$0xf] }
 0x1a9   :  { %v3337_v9 = vadd.f32 %v1251_v32, %v1209_v36  ;;  %v2197_v57 = vor.u32 %v2341_v39, %v2196_v25  ;;  %v2345_v25 = vld [vmem:[%s3504_s3 + $0xb4] sm:$0xf0]  ;;  %v2343_v39 = vld [vmem:[%s3504_s3 + $0xac] sm:$0xf] }
 0x1ae   :  { %v1210_v46 = vpop.f32.mrf.mxu2  ;;  %v1127_v51 = vpop.f32.mrf.mxu0 }
 0x1af   :  { %v1253_v47 = vpop.f32.mrf.mxu3  ;;  %v1211_v50 = vadd.f32 %v1210_v46, %v1168_v16  ;;  %v1170_v53 = vpop.f32.mrf.mxu1  ;;  %v2204_v16 = vld [vmem:[%s3504_s3 + $0xa0] sm:$0xf] }
 0x1b0   :  { %v1171_v2 = vadd.f32 %v1170_v53, %v1127_v51 }
 0x1b1   :  { %v3363_v3 = vadd.f32 %v1253_v47, %v1211_v50  ;;  %1463 = vmatmul.bf16.gmra.mxu0 %v2189_v28  ;;  %v2205_v47 = vor.u32 %v2344_v23, %v2204_v16  ;;  %v2209_v28 = vor.u32 %v2342_v38, %v2206_v43  ;;  %v1300_v23 = vld [vmem:[%s3504_s3 + $0xc8] sm:$0xff] }
 0x1b2   :  { %1506 = vmatmul.bf16.gmra.mxu1 %v2193_v31 }
 0x1b3   :  { %1549 = vmatmul.bf16.gmra.mxu2 %v2197_v57  ;;  %v2217_v57 = vor.u32 %v2343_v39, %v2214_v44  ;;  %v1378_v39 = vunpack.c.h.b16 %v1300_v23 }
 0x1b4   :  { %1592 = vmatmul.bf16.gmra.mxu3 %v2201_v62 }
 0x1b6   :  { %v1213_v7 = vpop.f32.mrf.mxu2  ;;  %v1129_v8 = vpop.f32.mrf.mxu0 }
 0x1b7   :  { %v1256_v32 = vpop.f32.mrf.mxu3  ;;  %v1214_v36 = vadd.f32 %v1213_v7, %v1171_v2  ;;  %v1172_v61 = vpop.f32.mrf.mxu1 }
 0x1b8   :  { %v1173_v24 = vadd.f32 %v1172_v61, %v1129_v8  ;;  %v2212_v61 = vld [vmem:[%s3504_s3 + $0xa8] sm:$0xf] }
 0x1b9   :  { %v3365_v35 = vadd.f32 %v1256_v32, %v1214_v36  ;;  %v2213_v53 = vor.u32 %v2345_v25, %v2212_v61  ;;  %v1377_v25 = vunpack.c.l.b16 %v1300_v23 }
 0x1be   :  { %v1215_v27 = vpop.f32.mrf.mxu2  ;;  %v1132_v50 = vpop.f32.mrf.mxu0 }
 0x1bf   :  { %v1258_v46 = vpop.f32.mrf.mxu3  ;;  %v1216_v31 = vadd.f32 %v1215_v27, %v1173_v24  ;;  %v1175_v51 = vpop.f32.mrf.mxu1  ;;  %v1299_v24 = vld [vmem:[%s3504_s3 + $0xc0] sm:$0xff] }
 0x1c0   :  { %v1176_v62 = vadd.f32 %v1175_v51, %v1132_v50  ;;  %v1375_v43 = vunpack.c.l.b16 %v1299_v24  ;;  %v1376_v61 = vunpack.c.h.b16 %v1299_v24  ;;  %v1405_v51 = vpack.c.b16 %v1377_v25, %v1377_v25 }
 0x1c1   :  { %v3391_v2 = vadd.f32 %v1258_v46, %v1216_v31  ;;  %1468 = vmatmul.bf16.gmra.mxu0 %v2205_v47 }
 0x1c2   :  { %1511 = vmatmul.bf16.gmra.mxu1 %v2209_v28  ;;  %v1403_v46 = vpack.c.b16 %v1375_v43, %v1375_v43  ;;  %v1404_v47 = vpack.c.b16 %v1376_v61, %v1376_v61 }
 0x1c3   :  { %1554 = vmatmul.bf16.gmra.mxu2 %v2213_v53  ;;  %v1406_v53 = vpack.c.b16 %v1378_v39, %v1378_v39 }
 0x1c4   :  { %1597 = vmatmul.bf16.gmra.mxu3 %v2217_v57 }
 0x1c6   :  { %v1218_v7 = vpop.f32.mrf.mxu2  ;;  %v1134_v8 = vpop.f32.mrf.mxu0 }
 0x1c7   :  { %v1261_v32 = vpop.f32.mrf.mxu3  ;;  %v1219_v36 = vadd.f32 %v1218_v7, %v1176_v62  ;;  %v1177_v33 = vpop.f32.mrf.mxu1 }
 0x1c8   :  { %v1178_v16 = vadd.f32 %v1177_v33, %v1134_v8 }
 0x1c9   :  { %v3399_v38 = vadd.f32 %v1261_v32, %v1219_v36 }
 0x1ce   :  { %v1220_v44 = vpop.f32.mrf.mxu2  ;;  %v1137_v31 = vpop.f32.mrf.mxu0 }
 0x1cf   :  { %v1263_v27 = vpop.f32.mrf.mxu3  ;;  %v1221_v28 = vadd.f32 %v1220_v44, %v1178_v16  ;;  %v1180_v50 = vpop.f32.mrf.mxu1 }
 0x1d0   :  { %v1181_v33 = vadd.f32 %v1180_v50, %v1137_v31 }
 0x1d1   :  { %v3401_v57 = vadd.f32 %v1263_v27, %v1221_v28  ;;  %1473 = vmatmul.bf16.gmra.mxu0 %v1403_v46 }
 0x1d2   :  { %1516 = vmatmul.bf16.gmra.mxu1 %v1404_v47 }
 0x1d3   :  { %1559 = vmatmul.bf16.gmra.mxu2 %v1405_v51 }
 0x1d4   :  { %1602 = vmatmul.bf16.gmra.mxu3 %v1406_v53 }
 0x1d6   :  { %v1223_v62 = vpop.f32.mrf.mxu2  ;;  %v1139_v36 = vpop.f32.mrf.mxu0 }
 0x1d7   :  { %v1266_v7 = vpop.f32.mrf.mxu3  ;;  %v1224_v32 = vadd.f32 %v1223_v62, %v1181_v33  ;;  %v1182_v8 = vpop.f32.mrf.mxu1 }
 0x1d8   :  { %v1183_v24 = vadd.f32 %v1182_v8, %v1139_v36 }
 0x1d9   :  { %v3403_v23 = vadd.f32 %v1266_v7, %v1224_v32 }
 0x1de   :  { %v1225_v16 = vpop.f32.mrf.mxu2  ;;  %v1142_v25 = vpop.f32.mrf.mxu0 }
 0x1df   :  { %v1268_v43 = vpop.f32.mrf.mxu3  ;;  %v1226_v61 = vadd.f32 %v1225_v16, %v1183_v24  ;;  %v1185_v39 = vpop.f32.mrf.mxu1 }
 0x1e0   :  { %v1186_v44 = vadd.f32 %v1185_v39, %v1142_v25 }
 0x1e1   :  { %v3405_v27 = vadd.f32 %v1268_v43, %v1226_v61 }
 0x1e6   :  { %v1228_v46 = vpop.f32.mrf.mxu2  ;;  %v1144_v31 = vpop.f32.mrf.mxu0 }
 0x1e7   :  { %v1271_v47 = vpop.f32.mrf.mxu3  ;;  %v1229_v28 = vadd.f32 %v1228_v46, %v1186_v44  ;;  %v1187_v50 = vpop.f32.mrf.mxu1 }
 0x1e8   :  { %v3416_v50 = vld [vmem:[%s3505_s5] ss:$0 sm:$0xff] }
 0x1e9   :  { %v3407_v51 = vadd.f32 %v1271_v47, %v1229_v28 }
 0x1ee   :  { %v1230_v53 = vpop.f32.mrf.mxu2  ;;  %v1444_v62 = vpop.f32.mrf.mxu0 }
 0x1ef   :  { %v1273_v33 = vpop.f32.mrf.mxu3  ;;  %v1487_v7 = vpop.f32.mrf.mxu1 }
 0x1f0   :  { %v1488_v32 = vadd.f32 %v1487_v7, %v1444_v62 }
 0x1f6   :  { %v1530_v36 = vpop.f32.mrf.mxu2  ;;  %v1446_v16 = vpop.f32.mrf.mxu0 }
 0x1f7   :  { %v1573_v8 = vpop.f32.mrf.mxu3  ;;  %v1531_v24 = vadd.f32 %v1530_v36, %v1488_v32  ;;  %v1489_v60 = vpop.f32.mrf.mxu1 }
 0x1f8   :  { %v1490_v39 = vadd.f32 %v1489_v60, %v1446_v16 }
 0x1f9   :  { %v1574_v25 = vadd.f32 %v1573_v8, %v1531_v24 }
 0x1fb   :  { %v1620_v43 = vmax.f32 %v3281_v17, %v1574_v25 }
 0x1fd   :  { %v1633_v61 = vmax.f32 %v1607_v18, %v1620_v43 }
 0x1fe   :  { %v1532_v44 = vpop.f32.mrf.mxu2  ;;  %v1449_v28 = vpop.f32.mrf.mxu0 }
 0x1ff   :  { %v1575_v46 = vpop.f32.mrf.mxu3  ;;  %v1533_v47 = vadd.f32 %v1532_v44, %v1490_v39  ;;  %v1492_v31 = vpop.f32.mrf.mxu1  ;;  %v1650_v17 = vadd.f32 %v3416_v50, %v1633_v61 }
 0x200   :  { %v1493_v62 = vadd.f32 %v1492_v31, %v1449_v28 }
 0x201   :  { %v1576_v53 = vadd.f32 %v1575_v46, %v1533_v47  ;;  %v1663_v8 = vmax.f32 %v1650_v17, 0.0 }
 0x203   :  { %v1621_v33 = vmax.f32 %v3307_v5, %v1576_v53 }
 0x205   :  { %v1634_v13 = vmax.f32 %v1608_v30, %v1621_v33 }
 0x206   :  { %v1535_v15 = vpop.f32.mrf.mxu2  ;;  %v1451_v32 = vpop.f32.mrf.mxu0 }
 0x207   :  { %v1578_v18 = vpop.f32.mrf.mxu3  ;;  %v1651_v60 = vadd.f32 %v3416_v50, %v1634_v13  ;;  %v1536_v7 = vadd.f32 %v1535_v15, %v1493_v62  ;;  %v1494_v36 = vpop.f32.mrf.mxu1 }
 0x208   :  { %v1495_v48 = vadd.f32 %v1494_v36, %v1451_v32 }
 0x209   :  { %v1664_v24 = vmax.f32 %v1651_v60, 0.0  ;;  %v1579_v16 = vadd.f32 %v1578_v18, %v1536_v7 }
 0x20b   :  { %v2349_v25 = vpack.c.bf16 %v1664_v24, %v1663_v8  ;;  %v1622_v5 = vmax.f32 %v3309_v19, %v1579_v16 }
 0x20d   :  { %2350 = vst [vmem:[%s3506_s6] sm:$0xff] %v2349_v25   ;;  %v1635_v26 = vmax.f32 %v1609_v59, %v1622_v5  ;;  %v3507_v25 = vmax.f32 %v2985_v22, %v3171_v58  ;;  %v3508_v22 = vmax.f32 %v2987_v42, %v3175_v6 }
 0x20e   :  { %v1537_v30 = vpop.f32.mrf.mxu2  ;;  %v1454_v39 = vpop.f32.mrf.mxu0 }
 0x20f   :  { %v1580_v43 = vpop.f32.mrf.mxu3  ;;  %v1538_v61 = vadd.f32 %v1537_v30, %v1495_v48  ;;  %v1497_v44 = vpop.f32.mrf.mxu1  ;;  %v1652_v19 = vadd.f32 %v3416_v50, %v1635_v26 }
 0x210   :  { %v1498_v28 = vadd.f32 %v1497_v44, %v1454_v39 }
 0x211   :  { %v1581_v46 = vadd.f32 %v1580_v43, %v1538_v61  ;;  %v1665_v17 = vmax.f32 %v1652_v19, 0.0 }
 0x213   :  { %v1623_v47 = vmax.f32 %v3335_v4, %v1581_v46 }
 0x215   :  { %v1636_v31 = vmax.f32 %v1610_v11, %v1623_v47 }
 0x216   :  { %v1540_v53 = vpop.f32.mrf.mxu2  ;;  %v1456_v59 = vpop.f32.mrf.mxu0 }
 0x217   :  { %v1583_v33 = vpop.f32.mrf.mxu3  ;;  %v1653_v49 = vadd.f32 %v3416_v50, %v1636_v31  ;;  %v1541_v56 = vadd.f32 %v1540_v53, %v1498_v28  ;;  %v1499_v62 = vpop.f32.mrf.mxu1 }
 0x218   :  { %v1500_v10 = vadd.f32 %v1499_v62, %v1456_v59  ;;  %v3509_v59 = vmax.f32 %v3013_v55, %v3203_v45  ;;  %v3510_v55 = vmax.f32 %v3021_v1, %v3213_v52 }
 0x219   :  { %v1666_v13 = vmax.f32 %v1653_v49, 0.0  ;;  %v1584_v15 = vadd.f32 %v1583_v33, %v1541_v56 }
 0x21b   :  { %v2354_v18 = vpack.c.bf16 %v1666_v13, %v1665_v17  ;;  %v1624_v4 = vmax.f32 %v3337_v9, %v1584_v15 }
 0x21d   :  { %2376 = vst [vmem:[%s3506_s6 + $0x8] sm:$0xff] %v2354_v18   ;;  %v1637_v0 = vmax.f32 %v1611_v40, %v1624_v4 }
 0x21e   :  { %v1542_v11 = vpop.f32.mrf.mxu2  ;;  %v1459_v32 = vpop.f32.mrf.mxu0 }
 0x21f   :  { %v1585_v60 = vpop.f32.mrf.mxu3  ;;  %v1543_v7 = vadd.f32 %v1542_v11, %v1500_v10  ;;  %v1502_v36 = vpop.f32.mrf.mxu1  ;;  %v1654_v9 = vadd.f32 %v3416_v50, %v1637_v0 }
 0x220   :  { %v1503_v16 = vadd.f32 %v1502_v36, %v1459_v32 }
 0x221   :  { %v1586_v8 = vadd.f32 %v1585_v60, %v1543_v7  ;;  %v1667_v43 = vmax.f32 %v1654_v9, 0.0 }
 0x223   :  { %v1625_v24 = vmax.f32 %v3363_v3, %v1586_v8 }
 0x225   :  { %v1638_v5 = vmax.f32 %v3507_v25, %v1625_v24 }
 0x226   :  { %v1545_v26 = vpop.f32.mrf.mxu2  ;;  %v1461_v40 = vpop.f32.mrf.mxu0 }
 0x227   :  { %v1588_v48 = vpop.f32.mrf.mxu3  ;;  %v1655_v63 = vadd.f32 %v3416_v50, %v1638_v5  ;;  %v1546_v37 = vadd.f32 %v1545_v26, %v1503_v16  ;;  %v1504_v30 = vpop.f32.mrf.mxu1  ;;  %v3511_v5 = vmax.f32 %v3023_v14, %v3217_v12  ;;  %v3512_v14 = vmax.f32 %v3025_v20, %v3221_v41 }
 0x228   :  { %v1505_v46 = vadd.f32 %v1504_v30, %v1461_v40 }
 0x229   :  { %v1668_v61 = vmax.f32 %v1655_v63, 0.0  ;;  %v1589_v39 = vadd.f32 %v1588_v48, %v1546_v37 }
 0x22b   :  { %v2359_v44 = vpack.c.bf16 %v1668_v61, %v1667_v43  ;;  %v1626_v3 = vmax.f32 %v3365_v35, %v1589_v39 }
 0x22d   :  { %2377 = vst [vmem:[%s3506_s6 + $0x10] sm:$0xff] %v2359_v44   ;;  %v1639_v58 = vmax.f32 %v3508_v22, %v1626_v3 }
 0x22e   :  { %v1547_v47 = vpop.f32.mrf.mxu2  ;;  %v1464_v31 = vpop.f32.mrf.mxu0 }
 0x22f   :  { %v1590_v28 = vpop.f32.mrf.mxu3  ;;  %v1548_v19 = vadd.f32 %v1547_v47, %v1505_v46  ;;  %v1507_v53 = vpop.f32.mrf.mxu1  ;;  %v1656_v35 = vadd.f32 %v3416_v50, %v1639_v58 }
 0x230   :  { %v1508_v56 = vadd.f32 %v1507_v53, %v1464_v31  ;;  %v3513_v53 = vmax.f32 %v3051_v29, %v3249_v34  ;;  %v3514_v29 = vmax.f32 %v3053_v54, %v3253_v21 }
 0x231   :  { %v1591_v33 = vadd.f32 %v1590_v28, %v1548_v19  ;;  %v1669_v4 = vmax.f32 %v1656_v35, 0.0 }
 0x233   :  { %v1627_v49 = vmax.f32 %v3391_v2, %v1591_v33 }
 0x235   :  { %v1640_v62 = vmax.f32 %v3509_v59, %v1627_v49 }
 0x236   :  { %v1550_v17 = vpop.f32.mrf.mxu2  ;;  %v1466_v15 = vpop.f32.mrf.mxu0 }
 0x237   :  { %v1593_v13 = vpop.f32.mrf.mxu3  ;;  %v1657_v42 = vadd.f32 %v3416_v50, %v1640_v62  ;;  %v1551_v6 = vadd.f32 %v1550_v17, %v1508_v56  ;;  %v1509_v18 = vpop.f32.mrf.mxu1 }
 0x238   :  { %v1510_v60 = vadd.f32 %v1509_v18, %v1466_v15 }
 0x239   :  { %v1670_v0 = vmax.f32 %v1657_v42, 0.0  ;;  %v1594_v10 = vadd.f32 %v1593_v13, %v1551_v6 }
 0x23b   :  { %v2364_v11 = vpack.c.bf16 %v1670_v0, %v1669_v4  ;;  %v1628_v2 = vmax.f32 %v3399_v38, %v1594_v10 }
 0x23d   :  { %2378 = vst [vmem:[%s3506_s6 + $0x18] sm:$0xff] %v2364_v11   ;;  %v1641_v45 = vmax.f32 %v3510_v55, %v1628_v2 }
 0x23e   :  { %v1552_v7 = vpop.f32.mrf.mxu2  ;;  %v1469_v8 = vpop.f32.mrf.mxu0 }
 0x23f   :  { %v1595_v32 = vpop.f32.mrf.mxu3  ;;  %v1553_v36 = vadd.f32 %v1552_v7, %v1510_v60  ;;  %v1512_v24 = vpop.f32.mrf.mxu1  ;;  %v1658_v38 = vadd.f32 %v3416_v50, %v1641_v45 }
 0x240   :  { %v1513_v25 = vadd.f32 %v1512_v24, %v1469_v8 }
 0x241   :  { %v1596_v16 = vadd.f32 %v1595_v32, %v1553_v36  ;;  %v1671_v30 = vmax.f32 %v1658_v38, 0.0 }
 0x243   :  { %v1629_v9 = vmax.f32 %v3401_v57, %v1596_v16 }
 0x245   :  { %v1642_v26 = vmax.f32 %v3511_v5, %v1629_v9 }
 0x246   :  { %v1555_v48 = vpop.f32.mrf.mxu2  ;;  %v1471_v37 = vpop.f32.mrf.mxu0 }
 0x247   :  { %v1598_v63 = vpop.f32.mrf.mxu3  ;;  %v1659_v1 = vadd.f32 %v3416_v50, %v1642_v26  ;;  %v1556_v52 = vadd.f32 %v1555_v48, %v1513_v25  ;;  %v1514_v40 = vpop.f32.mrf.mxu1 }
 0x248   :  { %v1515_v44 = vadd.f32 %v1514_v40, %v1471_v37 }
 0x249   :  { %v1672_v43 = vmax.f32 %v1659_v1, 0.0  ;;  %v1599_v61 = vadd.f32 %v1598_v63, %v1556_v52 }
 0x24b   :  { %v2369_v39 = vpack.c.bf16 %v1672_v43, %v1671_v30  ;;  %v1630_v57 = vmax.f32 %v3403_v23, %v1599_v61 }
 0x24d   :  { %2379 = vst [vmem:[%s3506_s6 + $0x20] sm:$0xff] %v2369_v39   ;;  %v1643_v12 = vmax.f32 %v3512_v14, %v1630_v57 }
 0x24e   :  { %v1557_v3 = vpop.f32.mrf.mxu2  ;;  %v1474_v46 = vpop.f32.mrf.mxu0 }
 0x24f   :  { %v1600_v22 = vpop.f32.mrf.mxu3  ;;  %v1558_v58 = vadd.f32 %v1557_v3, %v1515_v44  ;;  %v1517_v47 = vpop.f32.mrf.mxu1  ;;  %v1660_v23 = vadd.f32 %v3416_v50, %v1643_v12 }
 0x250   :  { %v1518_v31 = vadd.f32 %v1517_v47, %v1474_v46 }
 0x251   :  { %v1601_v28 = vadd.f32 %v1600_v22, %v1558_v58  ;;  %v1673_v62 = vmax.f32 %v1660_v23, 0.0 }
 0x253   :  { %v1631_v19 = vmax.f32 %v3405_v27, %v1601_v28 }
 0x255   :  { %v1644_v33 = vmax.f32 %v3513_v53, %v1631_v19 }
 0x256   :  { %v1560_v49 = vpop.f32.mrf.mxu2  ;;  %v1476_v35 = vpop.f32.mrf.mxu0 }
 0x257   :  { %v1603_v56 = vpop.f32.mrf.mxu3  ;;  %v1661_v20 = vadd.f32 %v3416_v50, %v1644_v33  ;;  %v1561_v41 = vadd.f32 %v1560_v49, %v1518_v31  ;;  %v1519_v59 = vpop.f32.mrf.mxu1 }
 0x259   :  { %v1674_v17 = vmax.f32 %v1661_v20, 0.0  ;;  %v1604_v13 = vadd.f32 %v1603_v56, %v1561_v41 }
 0x25b   :  { %v2374_v42 = vpack.c.bf16 %v1674_v17, %v1673_v62  ;;  %v1632_v27 = vmax.f32 %v3407_v51, %v1604_v13 }
 0x25d   :  { %2380 = vst [vmem:[%s3506_s6 + $0x28] sm:$0xff] %v2374_v42   ;;  %v1645_v34 = vmax.f32 %v3514_v29, %v1632_v27 }
 0x25e   :  { %v1562_v6 = vpop.f32.mrf.mxu2 }
 0x25f   :  { %v1605_v15 = vpop.f32.mrf.mxu3  ;;  %v1662_v18 = vadd.f32 %v3416_v50, %v1645_v34 }
 0x261   :  { %v1675_v4 = vmax.f32 %v1662_v18, 0.0 }
 0x263   :  { %v1688_v0 = vpack.c.bf16 %v1675_v4, %v1675_v4 }
 0x265   :  { %1701 = vst [vmem:[%s3506_s6 + $0x30] sm:$0xf] %v1688_v0 }

// kernel: cnn_forward.6
= control target key start
LH: loop header
LB: loop body
LE: loop exit
PB: predicated region body
PF: predicated region fallthrough
CT: control target
= control target key end

     0   :  { %s2261_s1 = inlined_call_operand.vmem [shape: bf16[896,128], index: 1, kind: input, shape index: {}]   ;;  %s2262_s2 = inlined_call_operand.vmem [shape: f32[1,128], index: 2, kind: input, shape index: {}]   ;;  %s2263_s0 = inlined_call_operand.vmem [shape: bf16[104,896], index: 0, kind: input, shape index: {}]   ;;  %s2264_s3 = inlined_call_operand.vmem [shape: bf16[104,128], index: 3, kind: output, shape index: {}]  }
   0x1   :  { %v1544_v0 = vld [vmem:[%s2261_s1 + $0x38] sm:$0xff]  ;;  %v1543_v3 = vld [vmem:[%s2261_s1 + $0x30] sm:$0xff]  ;;  %v1542_v6 = vld [vmem:[%s2261_s1 + $0x28] sm:$0xff] }
   0x2   :  { %v1552_v1 = vld [vmem:[%s2261_s1 + $0x78] sm:$0xff]  ;;  %759 = vmatpush.bf16.msra.mxu0 %v1544_v0  ;;  %1628 = vmatpush.bf16.msra.mxu3 %v1544_v0  ;;  %v1551_v4 = vld [vmem:[%s2261_s1 + $0x70] sm:$0xff]  ;;  %v1550_v7 = vld [vmem:[%s2261_s1 + $0x68] sm:$0xff] }
   0x3   :  { %v1560_v2 = vld [vmem:[%s2261_s1 + $0xb8] sm:$0xff]  ;;  %802 = vmatpush.bf16.msra.mxu1 %v1552_v1  ;;  %v1559_v5 = vld [vmem:[%s2261_s1 + $0xb0] sm:$0xff]  ;;  %v1558_v8 = vld [vmem:[%s2261_s1 + $0xa8] sm:$0xff] }
   0x4   :  { %845 = vmatpush.bf16.msra.mxu2 %v1560_v2  ;;  %v1541_v9 = vld [vmem:[%s2261_s1 + $0x20] sm:$0xff]  ;;  %v1540_v12 = vld [vmem:[%s2261_s1 + $0x18] sm:$0xff]  ;;  %v1539_v15 = vld [vmem:[%s2261_s1 + $0x10] sm:$0xff] }
   0x5   :  { %v1549_v10 = vld [vmem:[%s2261_s1 + $0x60] sm:$0xff]  ;;  %v1548_v13 = vld [vmem:[%s2261_s1 + $0x58] sm:$0xff]  ;;  %v1547_v16 = vld [vmem:[%s2261_s1 + $0x50] sm:$0xff] }
   0x6   :  { %760 = vmatpush.bf16.msra.mxu0 %v1543_v3  ;;  %1629 = vmatpush.bf16.msra.mxu3 %v1543_v3  ;;  %v1557_v11 = vld [vmem:[%s2261_s1 + $0xa0] sm:$0xff]  ;;  %v1556_v14 = vld [vmem:[%s2261_s1 + $0x98] sm:$0xff]  ;;  %v1555_v17 = vld [vmem:[%s2261_s1 + $0x90] sm:$0xff] }
   0x7   :  { %803 = vmatpush.bf16.msra.mxu1 %v1551_v4  ;;  %v1538_v18 = vld [vmem:[%s2261_s1 + $0x8] sm:$0xff]  ;;  %v1537_v21 = vld [vmem:[%s2261_s1] sm:$0xff]  ;;  %v1498_v25 = vld [vmem:[%s2263_s0 + $0x18] sm:$0xf0] }
   0x8   :  { %846 = vmatpush.bf16.msra.mxu2 %v1559_v5  ;;  %v1546_v19 = vld [vmem:[%s2261_s1 + $0x48] sm:$0xff]  ;;  %v1545_v22 = vld [vmem:[%s2261_s1 + $0x40] sm:$0xff]  ;;  %v1161_v26 = vld [vmem:[%s2263_s0 + $0x70] sm:$0xf] }
   0x9   :  { %v1554_v20 = vld [vmem:[%s2261_s1 + $0x88] sm:$0xff]  ;;  %v1553_v23 = vld [vmem:[%s2261_s1 + $0x80] sm:$0xff]  ;;  %v1772_v32 = vld [vmem:[%s2261_s1 + $0x1b8] sm:$0xff] }
   0xa   :  { %761 = vmatpush.bf16.msra.mxu0 %v1542_v6  ;;  %1630 = vmatpush.bf16.msra.mxu3 %v1542_v6  ;;  %v1105_v24 = vld [vmem:[%s2263_s0] sm:$0xf]  ;;  %v1512_v27 = vld [vmem:[%s2263_s0 + $0x88] sm:$0xf0]  ;;  %v1495_v28 = vld [vmem:[%s2263_s0 + $0x4] sm:$0xf] }
   0xb   :  { %804 = vmatpush.bf16.msra.mxu1 %v1550_v7  ;;  %v1107_v29 = vld [vmem:[%s2263_s0 + $0x1c] sm:$0xf0]  ;;  %v1113_v30 = vld [vmem:[%s2263_s0 + $0x8] sm:$0xf]  ;;  %v1499_v31 = vld [vmem:[%s2263_s0 + $0x20] sm:$0xf0]  ;;  %v1106_v34 = vor.u32 %v1498_v25, %v1105_v24  ;;  %v1162_v35 = vor.u32 %v1512_v27, %v1161_v26 }
   0xc   :  { %847 = vmatpush.bf16.msra.mxu2 %v1558_v8  ;;  %v1576_v33 = vld [vmem:[%s2261_s1 + $0x138] sm:$0xff]  ;;  %v1110_v36 = vor.u32 %v1495_v28, %v1107_v29  ;;  %v1114_v37 = vor.u32 %v1499_v31, %v1113_v30  ;;  %v1575_v40 = vld [vmem:[%s2261_s1 + $0x130] sm:$0xff]  ;;  %v1574_v44 = vld [vmem:[%s2261_s1 + $0x128] sm:$0xff] }
   0xd   :  { %v1780_v38 = vld [vmem:[%s2261_s1 + $0x178] sm:$0xff]  ;;  %v1792_v41 = vld [vmem:[%s2261_s1 + $0x1b0] sm:$0xff]  ;;  %v1810_v45 = vld [vmem:[%s2261_s1 + $0x1a8] sm:$0xff] }
   0xe   :  { %762 = vmatpush.bf16.msra.mxu0 %v1541_v9  ;;  %1631 = vmatpush.bf16.msra.mxu3 %v1541_v9  ;;  %v1568_v39 = vld [vmem:[%s2261_s1 + $0xf8] sm:$0xff]  ;;  %v1798_v42 = vld [vmem:[%s2261_s1 + $0x170] sm:$0xff]  ;;  %v1566_v46 = vld [vmem:[%s2261_s1 + $0xe8] sm:$0xff] }
   0xf   :  { %805 = vmatpush.bf16.msra.mxu1 %v1549_v10  ;;  %v1567_v43 = vld [vmem:[%s2261_s1 + $0xf0] sm:$0xff]  ;;  %v1819_v47 = vld [vmem:[%s2261_s1 + $0x168] sm:$0xff]  ;;  %v1573_v48 = vld [vmem:[%s2261_s1 + $0x120] sm:$0xff] }
  0x10   :  { %848 = vmatpush.bf16.msra.mxu2 %v1557_v11  ;;  %v1133_v49 = vld [vmem:[%s2263_s0 + $0x38] sm:$0xf]  ;;  %v1831_v50 = vld [vmem:[%s2261_s1 + $0x1a0] sm:$0xff]  ;;  %v1505_v51 = vld [vmem:[%s2263_s0 + $0x50] sm:$0xf0] }
  0x11   :  { %v1189_v52 = vld [vmem:[%s2263_s0 + $0xa8] sm:$0xf]  ;;  %v1519_v53 = vld [vmem:[%s2263_s0 + $0xc0] sm:$0xf0]  ;;  %v1502_v54 = vld [vmem:[%s2263_s0 + $0x3c] sm:$0xf]  ;;  %v1134_v61 = vor.u32 %v1505_v51, %v1133_v49 }
  0x12   :  { %763 = vmatpush.bf16.msra.mxu0 %v1540_v12  ;;  %1632 = vmatpush.bf16.msra.mxu3 %v1540_v12  ;;  %v1135_v55 = vld [vmem:[%s2263_s0 + $0x54] sm:$0xf0]  ;;  %v1141_v56 = vld [vmem:[%s2263_s0 + $0x40] sm:$0xf]  ;;  %v1506_v57 = vld [vmem:[%s2263_s0 + $0x58] sm:$0xf0]  ;;  %v1190_v62 = vor.u32 %v1519_v53, %v1189_v52 }
  0x13   :  { %806 = vmatpush.bf16.msra.mxu1 %v1548_v13  ;;  %v1565_v58 = vld [vmem:[%s2261_s1 + $0xe0] sm:$0xff]  ;;  %v1572_v60 = vld [vmem:[%s2261_s1 + $0x118] sm:$0xff]  ;;  %v1138_v63 = vor.u32 %v1502_v54, %v1135_v55  ;;  %v1142_v0 = vor.u32 %v1506_v57, %v1141_v56  ;;  %v1571_v1 = vld [vmem:[%s2261_s1 + $0x110] sm:$0xff] }
  0x14   :  { %849 = vmatpush.bf16.msra.mxu2 %v1556_v14  ;;  %v1861_v59 = vld [vmem:[%s2261_s1 + $0x160] sm:$0xff]  ;;  %v1564_v2 = vld [vmem:[%s2261_s1 + $0xd8] sm:$0xff]  ;;  %v1570_v5 = vld [vmem:[%s2261_s1 + $0x108] sm:$0xff] }
  0x15   :  { %v1877_v3 = vld [vmem:[%s2261_s1 + $0x198] sm:$0xff]  ;;  %v1563_v6 = vld [vmem:[%s2261_s1 + $0xd0] sm:$0xff]  ;;  %v1569_v7 = vld [vmem:[%s2261_s1 + $0x100] sm:$0xff] }
  0x16   :  { %764 = vmatpush.bf16.msra.mxu0 %v1539_v15  ;;  %1633 = vmatpush.bf16.msra.mxu3 %v1539_v15  ;;  %v1580_v4 = vld [vmem:[%s2261_s1 + $0x158] sm:$0xff]  ;;  %v1217_v8 = vld [vmem:[%s2263_s0 + $0xe0] sm:$0xf]  ;;  %v1509_v10 = vld [vmem:[%s2263_s0 + $0x74] sm:$0xf] }
  0x17   :  { %807 = vmatpush.bf16.msra.mxu1 %v1547_v16  ;;  %v1526_v9 = vld [vmem:[%s2263_s0 + $0xf8] sm:$0xf0]  ;;  %v1121_v11 = vld [vmem:[%s2263_s0 + $0x10] sm:$0xf]  ;;  %v1500_v12 = vld [vmem:[%s2263_s0 + $0x28] sm:$0xf0] }
  0x18   :  { %850 = vmatpush.bf16.msra.mxu2 %v1555_v17  ;;  %v1163_v13 = vld [vmem:[%s2263_s0 + $0x8c] sm:$0xf0]  ;;  %v1169_v14 = vld [vmem:[%s2263_s0 + $0x78] sm:$0xf]  ;;  %v1513_v15 = vld [vmem:[%s2263_s0 + $0x90] sm:$0xf0]  ;;  %v1218_v16 = vor.u32 %v1526_v9, %v1217_v8  ;;  %v1122_v17 = vor.u32 %v1500_v12, %v1121_v11 }
  0x19   :  { %v1245_v24 = vld [vmem:[%s2263_s0 + $0x118] sm:$0xf]  ;;  %v1533_v25 = vld [vmem:[%s2263_s0 + $0x130] sm:$0xf0]  ;;  %v1516_v26 = vld [vmem:[%s2263_s0 + $0xac] sm:$0xf] }
  0x1a   :  { %765 = vmatpush.bf16.msra.mxu0 %v1538_v18  ;;  %1634 = vmatpush.bf16.msra.mxu3 %v1538_v18  ;;  %v1166_v18 = vor.u32 %v1509_v10, %v1163_v13  ;;  %v1149_v27 = vld [vmem:[%s2263_s0 + $0x48] sm:$0xf]  ;;  %v1507_v28 = vld [vmem:[%s2263_s0 + $0x60] sm:$0xf0]  ;;  %v1197_v30 = vld [vmem:[%s2263_s0 + $0xb0] sm:$0xf] }
  0x1b   :  { %808 = vmatpush.bf16.msra.mxu1 %v1546_v19  ;;  %v1170_v19 = vor.u32 %v1513_v15, %v1169_v14  ;;  %v1191_v29 = vld [vmem:[%s2263_s0 + $0xc4] sm:$0xf0]  ;;  %v1520_v31 = vld [vmem:[%s2263_s0 + $0xc8] sm:$0xf0]  ;;  %v1585_v54 = vld [vmem:[%s2261_s1 + $0x180] sm:$0xff] }
  0x1c   :  { %851 = vmatpush.bf16.msra.mxu2 %v1554_v20  ;;  %v1920_v20 = vld [vmem:[%s2261_s1 + $0x190] sm:$0xff]  ;;  %v1577_v55 = vld [vmem:[%s2261_s1 + $0x140] sm:$0xff]  ;;  %v1530_v56 = vld [vmem:[%s2263_s0 + $0x11c] sm:$0xf] }
  0x1d   :  { %v1496_v57 = vld [vmem:[%s2263_s0 + $0xc] sm:$0xf]  ;;  %v1510_v11 = vld [vmem:[%s2263_s0 + $0x7c] sm:$0xf]  ;;  %v1171_v12 = vld [vmem:[%s2263_s0 + $0x94] sm:$0xf0] }
  0x1e   :  { %766 = vmatpush.bf16.msra.mxu0 %v1537_v21  ;;  %1635 = vmatpush.bf16.msra.mxu3 %v1537_v21  ;;  %v1562_v21 = vld [vmem:[%s2261_s1 + $0xc8] sm:$0xff]  ;;  %v1535_v14 = vld [vmem:[%s2263_s0 + $0x140] sm:$0xf0] }
  0x1f   :  { %809 = vmatpush.bf16.msra.mxu1 %v1545_v22  ;;  %v1579_v22 = vld [vmem:[%s2261_s1 + $0x150] sm:$0xff]  ;;  %v1261_v13 = vld [vmem:[%s2263_s0 + $0x128] sm:$0xf]  ;;  %v1504_v15 = vld [vmem:[%s2263_s0 + $0x4c] sm:$0xf] }
  0x20   :  { %852 = vmatpush.bf16.msra.mxu2 %v1553_v23  ;;  %v1561_v23 = vld [vmem:[%s2261_s1 + $0xc0] sm:$0xff] }
  0x21   :  { %767 = vmatmul.bf16.vlgmr.msra.gmra.mxu0 %v1106_v34  ;;  %777 = vmatmul.bf16.vlgmr.msra.gmra.mxu3 %v1162_v35  ;;  %v1150_v34 = vor.u32 %v1507_v28, %v1149_v27  ;;  %v1194_v35 = vor.u32 %v1516_v26, %v1191_v29  ;;  %v1517_v26 = vld [vmem:[%s2263_s0 + $0xb4] sm:$0xf]  ;;  %v1199_v27 = vld [vmem:[%s2263_s0 + $0xcc] sm:$0xf0]  ;;  %v1511_v28 = vld [vmem:[%s2263_s0 + $0x84] sm:$0xf] }
  0x22   :  { %931 = vmatpush.bf16.msrb.mxu0 %v1576_v33  ;;  %810 = vmatmul.bf16.vlgmr.msra.gmra.mxu1 %v1110_v36  ;;  %v1246_v33 = vor.u32 %v1533_v25, %v1245_v24  ;;  %v1198_v36 = vor.u32 %v1520_v31, %v1197_v30  ;;  %v2072_v24 = vld [vmem:[%s2262_s2] ss:$0 sm:$0xff]  ;;  %v1185_v30 = vld [vmem:[%s2263_s0 + $0x88] sm:$0xf]  ;;  %v1515_v31 = vld [vmem:[%s2263_s0 + $0xa0] sm:$0xf0] }
  0x23   :  { %853 = vmatmul.bf16.vlgmr.msra.gmra.mxu2 %v1114_v37  ;;  %1636 = vmatpush.bf16.msrb.mxu1 %v1780_v38  ;;  %v1586_v37 = vld [vmem:[%s2261_s1 + $0x188] sm:$0xff]  ;;  %v1179_v29 = vld [vmem:[%s2263_s0 + $0x9c] sm:$0xf0] }
  0x24   :  { %1644 = vmatpush.bf16.msrb.mxu2 %v1772_v32  ;;  %888 = vmatpush.bf16.msrb.mxu3 %v1568_v39  ;;  %v62_v39 = vld [vmem:[%s2263_s0 + $0x150] sm:$0xff] }
  0x26   :  { %932 = vmatpush.bf16.msrb.mxu0 %v1575_v40  ;;  %v318_v40 = vunpack.c.l.b16 %v62_v39 }
  0x27   :  { %1637 = vmatpush.bf16.msrb.mxu1 %v1798_v42 }
  0x28   :  { %1645 = vmatpush.bf16.msrb.mxu2 %v1792_v41  ;;  %889 = vmatpush.bf16.msrb.mxu3 %v1567_v43  ;;  %v1177_v43 = vld [vmem:[%s2263_s0 + $0x80] sm:$0xf]  ;;  %v367_v49 = vpack.c.b16 %v318_v40, %v318_v40 }
  0x2a   :  { %933 = vmatpush.bf16.msrb.mxu0 %v1574_v44  ;;  %v1514_v44 = vld [vmem:[%s2263_s0 + $0x98] sm:$0xf0] }
  0x2b   :  { %1638 = vmatpush.bf16.msrb.mxu1 %v1819_v47  ;;  %v1178_v51 = vor.u32 %v1514_v44, %v1177_v43 }
  0x2c   :  { %1646 = vmatpush.bf16.msrb.mxu2 %v1810_v45  ;;  %890 = vmatpush.bf16.msrb.mxu3 %v1566_v46  ;;  %v1219_v46 = vld [vmem:[%s2263_s0 + $0xfc] sm:$0xf0] }
  0x2e   :  { %934 = vmatpush.bf16.msrb.mxu0 %v1573_v48  ;;  %v1527_v48 = vld [vmem:[%s2263_s0 + $0x100] sm:$0xf0] }
  0x2f   :  { %1639 = vmatpush.bf16.msrb.mxu1 %v1861_v59 }
  0x30   :  { %1647 = vmatpush.bf16.msrb.mxu2 %v1831_v50  ;;  %891 = vmatpush.bf16.msrb.mxu3 %v1565_v58  ;;  %v1115_v58 = vld [vmem:[%s2263_s0 + $0x24] sm:$0xf0] }
  0x31   :  { %772 = vmatmul.bf16.gmra.mxu0 %v1134_v61  ;;  %782 = vmatmul.bf16.gmra.mxu3 %v1190_v62  ;;  %v1253_v61 = vld [vmem:[%s2263_s0 + $0x120] sm:$0xf]  ;;  %v1534_v62 = vld [vmem:[%s2263_s0 + $0x138] sm:$0xf0] }
  0x32   :  { %935 = vmatpush.bf16.msrb.mxu0 %v1572_v60  ;;  %815 = vmatmul.bf16.gmra.mxu1 %v1138_v63  ;;  %v1247_v60 = vld [vmem:[%s2263_s0 + $0x134] sm:$0xf0]  ;;  %v1118_v63 = vor.u32 %v1496_v57, %v1115_v58  ;;  %v1213_v57 = vld [vmem:[%s2263_s0 + $0xc0] sm:$0xf]  ;;  %v1522_v58 = vld [vmem:[%s2263_s0 + $0xd8] sm:$0xf0] }
  0x33   :  { %858 = vmatmul.bf16.gmra.mxu2 %v1142_v0  ;;  %1640 = vmatpush.bf16.msrb.mxu1 %v1580_v4 }
  0x34   :  { %892 = vmatpush.bf16.msrb.mxu3 %v1564_v2  ;;  %1648 = vmatpush.bf16.msrb.mxu2 %v1877_v3  ;;  %v1254_v2 = vor.u32 %v1534_v62, %v1253_v61 }
  0x36   :  { %936 = vmatpush.bf16.msrb.mxu0 %v1571_v1  ;;  %v1250_v1 = vor.u32 %v1530_v56, %v1247_v60  ;;  %v1207_v56 = vld [vmem:[%s2263_s0 + $0xd4] sm:$0xf0] }
  0x37   :  { %1641 = vmatpush.bf16.msrb.mxu1 %v1579_v22 }
  0x38   :  { %893 = vmatpush.bf16.msrb.mxu3 %v1563_v6  ;;  %1649 = vmatpush.bf16.msrb.mxu2 %v1920_v20  ;;  %v1143_v6 = vld [vmem:[%s2263_s0 + $0x5c] sm:$0xf0] }
  0x3a   :  { %937 = vmatpush.bf16.msrb.mxu0 %v1570_v5  ;;  %v319_v5 = vunpack.c.h.b16 %v62_v39 }
  0x3c   :  { %894 = vmatpush.bf16.msrb.mxu3 %v1562_v21  ;;  %1650 = vmatpush.bf16.msrb.mxu2 %v1586_v37  ;;  %v368_v9 = vpack.c.b16 %v319_v5, %v319_v5 }
  0x3e   :  { %938 = vmatpush.bf16.msrb.mxu0 %v1569_v7  ;;  %v1528_v7 = vld [vmem:[%s2263_s0 + $0x108] sm:$0xf0] }
  0x40   :  { %895 = vmatpush.bf16.msrb.mxu3 %v1561_v23  ;;  %1651 = vmatpush.bf16.msrb.mxu2 %v1585_v54  ;;  %v2067_v23 = vld [vmem:[%s2263_s0 + $0x160] sm:$0xff] }
  0x41   :  { %787 = vmatmul.bf16.gmra.mxu3 %v1218_v16  ;;  %939 = vmatmul.bf16.vlgmr.msrb.gmra.mxu0 %v1122_v17  ;;  %v1151_v16 = vld [vmem:[%s2263_s0 + $0x64] sm:$0xf0]  ;;  %v1157_v17 = vld [vmem:[%s2263_s0 + $0x50] sm:$0xf]  ;;  %v322_v25 = vunpack.c.l.b16 %v2067_v23 }
  0x42   :  { %974 = vmatpush.bf16.msra.mxu0 %v1780_v38  ;;  %820 = vmatmul.bf16.gmra.mxu1 %v1166_v18  ;;  %v1578_v38 = vld [vmem:[%s2261_s1 + $0x148] sm:$0xff]  ;;  %v1154_v21 = vor.u32 %v1504_v15, %v1151_v16  ;;  %v1235_v15 = vld [vmem:[%s2263_s0 + $0x10c] sm:$0xf0]  ;;  %v1241_v16 = vld [vmem:[%s2263_s0 + $0xf8] sm:$0xf] }
  0x43   :  { %863 = vmatmul.bf16.gmra.mxu2 %v1170_v19  ;;  %1642 = vmatpush.bf16.msrb.mxu1 %v1578_v38  ;;  %v1508_v18 = vld [vmem:[%s2263_s0 + $0x68] sm:$0xf0]  ;;  %v1174_v19 = vor.u32 %v1510_v11, %v1171_v12  ;;  %v1255_v11 = vld [vmem:[%s2263_s0 + $0x13c] sm:$0xf0]  ;;  %v1525_v12 = vld [vmem:[%s2263_s0 + $0xf4] sm:$0xf] }
  0x46   :  { %975 = vmatpush.bf16.msra.mxu0 %v1798_v42  ;;  %v1523_v42 = vld [vmem:[%s2263_s0 + $0xe4] sm:$0xf] }
  0x47   :  { %v1222_v52 = vor.u32 %v1523_v42, %v1219_v46  ;;  %1643 = vmatpush.bf16.msrb.mxu1 %v1577_v55 }
  0x4a   :  { %976 = vmatpush.bf16.msra.mxu0 %v1819_v47  ;;  %v1225_v47 = vld [vmem:[%s2263_s0 + $0xe8] sm:$0xf] }
  0x4b   :  { %v1226_v53 = vor.u32 %v1527_v48, %v1225_v47 }
  0x4e   :  { %977 = vmatpush.bf16.msra.mxu0 %v1861_v59  ;;  %v1205_v59 = vld [vmem:[%s2263_s0 + $0xb8] sm:$0xf] }
  0x51   :  { %792 = vmatmul.bf16.gmra.mxu3 %v1246_v33  ;;  %944 = vmatmul.bf16.gmra.mxu0 %v1150_v34  ;;  %v1202_v33 = vor.u32 %v1517_v26, %v1199_v27  ;;  %v371_v34 = vpack.c.b16 %v322_v25, %v322_v25  ;;  %v1238_v27 = vor.u32 %v1525_v12, %v1235_v15 }
  0x52   :  { %978 = vmatpush.bf16.msra.mxu0 %v1580_v4  ;;  %825 = vmatmul.bf16.gmra.mxu1 %v1194_v35  ;;  %v1503_v4 = vld [vmem:[%s2263_s0 + $0x44] sm:$0xf] }
  0x53   :  { %868 = vmatmul.bf16.gmra.mxu2 %v1198_v36  ;;  %v1182_v36 = vor.u32 %v1511_v28, %v1179_v29 }
  0x56   :  { %979 = vmatpush.bf16.msra.mxu0 %v1579_v22  ;;  %v1158_v22 = vor.u32 %v1508_v18, %v1157_v17  ;;  %v1529_v17 = vld [vmem:[%s2263_s0 + $0x110] sm:$0xf0] }
  0x57   :  { %v1242_v28 = vor.u32 %v1529_v17, %v1241_v16 }
  0x5a   :  { %980 = vmatpush.bf16.msra.mxu0 %v1578_v38 }
  0x5e   :  { %981 = vmatpush.bf16.msra.mxu0 %v1577_v55  ;;  %v1518_v55 = vld [vmem:[%s2263_s0 + $0xbc] sm:$0xf] }
  0x61   :  { %797 = vmatmul.bf16.gmra.mxu3 %v367_v49  ;;  %949 = vmatmul.bf16.gmra.mxu0 %v1178_v51  ;;  %v1524_v51 = vld [vmem:[%s2263_s0 + $0xec] sm:$0xf] }
  0x62   :  { %830 = vmatmul.bf16.gmra.mxu1 %v1222_v52  ;;  %1017 = vmatpush.bf16.msrb.mxu0 %v1772_v32  ;;  %v1521_v32 = vld [vmem:[%s2263_s0 + $0xd0] sm:$0xf0]  ;;  %v1227_v52 = vld [vmem:[%s2263_s0 + $0x104] sm:$0xf0] }
  0x63   :  { %873 = vmatmul.bf16.gmra.mxu2 %v1226_v53  ;;  %v1206_v0 = vor.u32 %v1521_v32, %v1205_v59  ;;  %v1497_v53 = vld [vmem:[%s2263_s0 + $0x14] sm:$0xf]  ;;  %v1230_v60 = vor.u32 %v1524_v51, %v1227_v52 }
  0x66   :  { %1018 = vmatpush.bf16.msrb.mxu0 %v1792_v41  ;;  %v2023_v41 = vld [vmem:[%s2263_s0 + $0x158] sm:$0xff] }
  0x6a   :  { %1019 = vmatpush.bf16.msrb.mxu0 %v1810_v45  ;;  %v320_v45 = vunpack.c.l.b16 %v2023_v41 }
  0x6c   :  { %v369_v10 = vpack.c.b16 %v320_v45, %v320_v45 }
  0x6e   :  { %1020 = vmatpush.bf16.msrb.mxu0 %v1831_v50  ;;  %v1233_v50 = vld [vmem:[%s2263_s0 + $0xf0] sm:$0xf] }
  0x6f   :  { %v1234_v8 = vor.u32 %v1528_v7, %v1233_v50 }
  0x71   :  { %896 = vmatmul.bf16.vlgmr.msrb.gmra.mxu3 %v1118_v63  ;;  %954 = vmatmul.bf16.gmra.mxu0 %v1206_v0  ;;  %v1210_v0 = vor.u32 %v1518_v55, %v1207_v56 }
  0x72   :  { %835 = vmatmul.bf16.gmra.mxu1 %v1250_v1  ;;  %1021 = vmatpush.bf16.msrb.mxu0 %v1877_v3  ;;  %v1146_v3 = vor.u32 %v1503_v4, %v1143_v6  ;;  %v1214_v1 = vor.u32 %v1522_v58, %v1213_v57 }
  0x73   :  { %878 = vmatmul.bf16.gmra.mxu2 %v1254_v2 }
  0x76   :  { %1022 = vmatpush.bf16.msrb.mxu0 %v1920_v20  ;;  %v1262_v20 = vor.u32 %v1535_v14, %v1261_v13  ;;  %v1129_v13 = vld [vmem:[%s2263_s0 + $0x18] sm:$0xf]  ;;  %v1501_v14 = vld [vmem:[%s2263_s0 + $0x30] sm:$0xf0] }
  0x7a   :  { %1023 = vmatpush.bf16.msrb.mxu0 %v1586_v37  ;;  %v1186_v37 = vor.u32 %v1515_v31, %v1185_v30 }
  0x7e   :  { %1024 = vmatpush.bf16.msrb.mxu0 %v1585_v54  ;;  %v1123_v54 = vld [vmem:[%s2263_s0 + $0x2c] sm:$0xf0] }
  0x7f   :  { %v1126_v61 = vor.u32 %v1497_v53, %v1123_v54 }
  0x81   :  { %901 = vmatmul.bf16.gmra.mxu3 %v1146_v3  ;;  %959 = vmatmul.bf16.gmra.mxu0 %v1234_v8 }
  0x82   :  { %840 = vmatmul.bf16.gmra.mxu1 %v368_v9 }
  0x83   :  { %883 = vmatmul.bf16.gmra.mxu2 %v369_v10  ;;  %v1531_v10 = vld [vmem:[%s2263_s0 + $0x124] sm:$0xf] }
  0x91   :  { %906 = vmatmul.bf16.gmra.mxu3 %v1174_v19  ;;  %964 = vmatmul.bf16.gmra.mxu0 %v1262_v20  ;;  %v1258_v20 = vor.u32 %v1531_v10, %v1255_v11 }
  0x92   :  { %987 = vmatmul.bf16.vlgmr.msrb.gmra.mxu1 %v1154_v21  ;;  %v1130_v21 = vor.u32 %v1501_v14, %v1129_v13 }
  0x93   :  { %1030 = vmatmul.bf16.vlgmr.msrb.gmra.mxu2 %v1158_v22 }
  0x9e   :  { %v768_v35 = vpop.f32.mrf.mxu0 }
  0x9f   :  { %v769_v38 = vadd.f32 %v2072_v24, %v768_v35  ;;  %v811_v39 = vpop.f32.mrf.mxu1 }
  0xa1   :  { %v812_v40 = vadd.f32 %v811_v39, %v769_v38  ;;  %911 = vmatmul.bf16.gmra.mxu3 %v1202_v33  ;;  %969 = vmatmul.bf16.gmra.mxu0 %v371_v34  ;;  %v321_v39 = vunpack.c.h.b16 %v2023_v41 }
  0xa2   :  { %992 = vmatmul.bf16.gmra.mxu1 %v1182_v36 }
  0xa3   :  { %1035 = vmatmul.bf16.gmra.mxu2 %v1186_v37 }
  0xa4   :  { %v778_v42 = vpop.f32.mrf.mxu3 }
  0xa5   :  { %v779_v22 = vadd.f32 %v2072_v24, %v778_v42  ;;  %v1263_v42 = vld [vmem:[%s2263_s0 + $0x144] sm:$0xf0] }
  0xa6   :  { %v854_v43 = vpop.f32.mrf.mxu2  ;;  %v770_v46 = vpop.f32.mrf.mxu0 }
  0xa7   :  { %v2094_v44 = vadd.f32 %v854_v43, %v812_v40  ;;  %v771_v47 = vadd.f32 %v2072_v24, %v770_v46  ;;  %v813_v48 = vpop.f32.mrf.mxu1  ;;  %v1532_v40 = vld [vmem:[%s2263_s0 + $0x12c] sm:$0xf]  ;;  %v1269_v43 = vld [vmem:[%s2263_s0 + $0x130] sm:$0xf] }
  0xa8   :  { %v1536_v46 = vld [vmem:[%s2263_s0 + $0x148] sm:$0xf0]  ;;  %v1266_v53 = vor.u32 %v1532_v40, %v1263_v42 }
  0xa9   :  { %v814_v49 = vadd.f32 %v813_v48, %v771_v47  ;;  %v1270_v54 = vor.u32 %v1536_v46, %v1269_v43 }
  0xac   :  { %v780_v59 = vpop.f32.mrf.mxu3 }
  0xad   :  { %v781_v34 = vadd.f32 %v2072_v24, %v780_v59 }
  0xae   :  { %v856_v32 = vpop.f32.mrf.mxu2  ;;  %v773_v63 = vpop.f32.mrf.mxu0 }
  0xaf   :  { %v2121_v62 = vadd.f32 %v856_v32, %v814_v49  ;;  %v774_v2 = vadd.f32 %v2072_v24, %v773_v63  ;;  %v816_v4 = vpop.f32.mrf.mxu1  ;;  %v370_v49 = vpack.c.b16 %v321_v39, %v321_v39  ;;  %v65_v63 = vld [vmem:[%s2263_s0 + $0x168] sm:$0xf] }
  0xb1   :  { %v817_v5 = vadd.f32 %v816_v4, %v774_v2  ;;  %916 = vmatmul.bf16.gmra.mxu3 %v1230_v60  ;;  %982 = vmatmul.bf16.vlgmr.msra.gmra.mxu0 %v1126_v61  ;;  %v324_v2 = vunpack.c.l.b16 %v65_v63 }
  0xb2   :  { %997 = vmatmul.bf16.gmra.mxu1 %v1210_v0 }
  0xb3   :  { %1040 = vmatmul.bf16.gmra.mxu2 %v1214_v1  ;;  %v323_v1 = vunpack.c.h.b16 %v2067_v23 }
  0xb4   :  { %v783_v45 = vpop.f32.mrf.mxu3 }
  0xb5   :  { %v784_v41 = vadd.f32 %v2072_v24, %v783_v45 }
  0xb6   :  { %v859_v6 = vpop.f32.mrf.mxu2  ;;  %v775_v7 = vpop.f32.mrf.mxu0 }
  0xb7   :  { %v2124_v50 = vadd.f32 %v859_v6, %v817_v5  ;;  %v776_v3 = vadd.f32 %v2072_v24, %v775_v7  ;;  %v818_v8 = vpop.f32.mrf.mxu1 }
  0xb9   :  { %v819_v9 = vadd.f32 %v818_v8, %v776_v3  ;;  %v372_v3 = vpack.c.b16 %v323_v1, %v323_v1  ;;  %v373_v8 = vpack.c.b16 %v324_v2, %v324_v2 }
  0xbc   :  { %v785_v18 = vpop.f32.mrf.mxu3 }
  0xbd   :  { %v786_v59 = vadd.f32 %v2072_v24, %v785_v18 }
  0xbe   :  { %v861_v19 = vpop.f32.mrf.mxu2  ;;  %v2154_v26 = vpop.f32.mrf.mxu0 }
  0xbf   :  { %v2152_v25 = vadd.f32 %v861_v19, %v819_v9  ;;  %v821_v29 = vpop.f32.mrf.mxu1 }
  0xc0   :  { %v822_v30 = vadd.f32 %v821_v29, %v779_v22 }
  0xc1   :  { %921 = vmatmul.bf16.gmra.mxu3 %v1258_v20  ;;  %1025 = vmatmul.bf16.vlgmr.msrb.gmra.mxu0 %v1130_v21 }
  0xc2   :  { %1002 = vmatmul.bf16.gmra.mxu1 %v1238_v27 }
  0xc3   :  { %1045 = vmatmul.bf16.gmra.mxu2 %v1242_v28 }
  0xc4   :  { %v788_v31 = vpop.f32.mrf.mxu3 }
  0xc5   :  { %v789_v45 = vadd.f32 %v2072_v24, %v788_v31 }
  0xc6   :  { %v864_v33 = vpop.f32.mrf.mxu2  ;;  %v2159_v36 = vpop.f32.mrf.mxu0 }
  0xc7   :  { %v2157_v35 = vadd.f32 %v864_v33, %v822_v30  ;;  %v823_v37 = vpop.f32.mrf.mxu1 }
  0xc8   :  { %v824_v38 = vadd.f32 %v823_v37, %v781_v34 }
  0xcc   :  { %v790_v47 = vpop.f32.mrf.mxu3 }
  0xcd   :  { %v791_v13 = vadd.f32 %v2072_v24, %v790_v47 }
  0xce   :  { %v866_v48 = vpop.f32.mrf.mxu2  ;;  %v2177_v52 = vpop.f32.mrf.mxu0 }
  0xcf   :  { %v2175_v51 = vadd.f32 %v866_v48, %v824_v38  ;;  %v826_v55 = vpop.f32.mrf.mxu1 }
  0xd0   :  { %v827_v56 = vadd.f32 %v826_v55, %v784_v41 }
  0xd1   :  { %926 = vmatmul.bf16.gmra.mxu3 %v370_v49 }
  0xd2   :  { %1007 = vmatmul.bf16.gmra.mxu1 %v1266_v53 }
  0xd3   :  { %1050 = vmatmul.bf16.gmra.mxu2 %v1270_v54 }
  0xd4   :  { %v793_v57 = vpop.f32.mrf.mxu3 }
  0xd5   :  { %v794_v19 = vadd.f32 %v2072_v24, %v793_v57 }
  0xd6   :  { %v869_v58 = vpop.f32.mrf.mxu2  ;;  %v947_v60 = vpop.f32.mrf.mxu0 }
  0xd7   :  { %v2180_v32 = vadd.f32 %v869_v58, %v827_v56  ;;  %v828_v61 = vpop.f32.mrf.mxu1 }
  0xd8   :  { %v829_v0 = vadd.f32 %v828_v61, %v786_v59 }
  0xdc   :  { %v795_v4 = vpop.f32.mrf.mxu3 }
  0xdd   :  { %v796_v31 = vadd.f32 %v2072_v24, %v795_v4 }
  0xde   :  { %v871_v5 = vpop.f32.mrf.mxu2  ;;  %v950_v7 = vpop.f32.mrf.mxu0 }
  0xdf   :  { %v2187_v6 = vadd.f32 %v871_v5, %v829_v0  ;;  %v831_v9 = vpop.f32.mrf.mxu1 }
  0xe0   :  { %v832_v10 = vadd.f32 %v831_v9, %v789_v45 }
  0xe2   :  { %1012 = vmatmul.bf16.gmra.mxu1 %v372_v3 }
  0xe3   :  { %1055 = vmatmul.bf16.gmra.mxu2 %v373_v8 }
  0xe4   :  { %v798_v11 = vpop.f32.mrf.mxu3 }
  0xe5   :  { %v799_v46 = vadd.f32 %v2072_v24, %v798_v11 }
  0xe6   :  { %v874_v12 = vpop.f32.mrf.mxu2  ;;  %v952_v23 = vpop.f32.mrf.mxu0 }
  0xe7   :  { %v2190_v14 = vadd.f32 %v874_v12, %v832_v10  ;;  %v833_v15 = vpop.f32.mrf.mxu1 }
  0xe8   :  { %v834_v16 = vadd.f32 %v833_v15, %v791_v13 }
  0xec   :  { %v800_v17 = vpop.f32.mrf.mxu3 }
  0xee   :  { %v876_v18 = vpop.f32.mrf.mxu2  ;;  %v955_v21 = vpop.f32.mrf.mxu0 }
  0xef   :  { %v2193_v20 = vadd.f32 %v876_v18, %v834_v16  ;;  %v836_v22 = vpop.f32.mrf.mxu1 }
  0xf0   :  { %v837_v27 = vadd.f32 %v836_v22, %v794_v19 }
  0xf4   :  { %v897_v28 = vpop.f32.mrf.mxu3 }
  0xf5   :  { %v898_v30 = vadd.f32 %v897_v28, %v2094_v44 }
  0xf6   :  { %v879_v29 = vpop.f32.mrf.mxu2  ;;  %v957_v34 = vpop.f32.mrf.mxu0 }
  0xf7   :  { %v2197_v33 = vadd.f32 %v879_v29, %v837_v27  ;;  %v838_v37 = vpop.f32.mrf.mxu1  ;;  %v2200_v38 = vadd.f32 %v2154_v26, %v898_v30 }
  0xf8   :  { %v839_v39 = vadd.f32 %v838_v37, %v796_v31 }
  0xfc   :  { %v899_v40 = vpop.f32.mrf.mxu3 }
  0xfd   :  { %v900_v43 = vadd.f32 %v899_v40, %v2121_v62 }
  0xfe   :  { %v881_v42 = vpop.f32.mrf.mxu2  ;;  %v2206_v48 = vpop.f32.mrf.mxu0 }
  0xff   :  { %v2204_v47 = vadd.f32 %v881_v42, %v839_v39  ;;  %v841_v44 = vpop.f32.mrf.mxu1  ;;  %v2209_v49 = vadd.f32 %v2159_v36, %v900_v43 }
 0x100   :  { %v842_v41 = vadd.f32 %v841_v44, %v799_v46 }
 0x104   :  { %v902_v53 = vpop.f32.mrf.mxu3 }
 0x105   :  { %v903_v26 = vadd.f32 %v902_v53, %v2124_v50 }
 0x106   :  { %v884_v54 = vpop.f32.mrf.mxu2  ;;  %v2214_v56 = vpop.f32.mrf.mxu0 }
 0x107   :  { %v2212_v55 = vadd.f32 %v884_v54, %v842_v41  ;;  %v843_v62 = vpop.f32.mrf.mxu1  ;;  %v946_v24 = vadd.f32 %v2177_v52, %v903_v26 }
 0x10c   :  { %v904_v57 = vpop.f32.mrf.mxu3 }
 0x10d   :  { %v905_v59 = vadd.f32 %v904_v57, %v2152_v25 }
 0x10e   :  { %v886_v58 = vpop.f32.mrf.mxu2  ;;  %v2218_v61 = vpop.f32.mrf.mxu0 }
 0x10f   :  { %v988_v36 = vpop.f32.mrf.mxu1  ;;  %v948_v63 = vadd.f32 %v947_v60, %v905_v59 }
 0x110   :  { %v989_v45 = vadd.f32 %v988_v36, %v946_v24 }
 0x114   :  { %v907_v0 = vpop.f32.mrf.mxu3 }
 0x115   :  { %v908_v1 = vadd.f32 %v907_v0, %v2157_v35 }
 0x116   :  { %v1031_v2 = vpop.f32.mrf.mxu2  ;;  %v2221_v50 = vpop.f32.mrf.mxu0 }
 0x117   :  { %v990_v4 = vpop.f32.mrf.mxu1  ;;  %v951_v5 = vadd.f32 %v950_v7, %v908_v1  ;;  %v1032_v3 = vadd.f32 %v1031_v2, %v989_v45 }
 0x118   :  { %v991_v8 = vadd.f32 %v990_v4, %v948_v63 }
 0x119   :  { %v1062_v13 = vmax.f32 %v1032_v3, 0.0 }
 0x11c   :  { %v909_v52 = vpop.f32.mrf.mxu3 }
 0x11d   :  { %v910_v9 = vadd.f32 %v909_v52, %v2175_v51 }
 0x11e   :  { %v1033_v10 = vpop.f32.mrf.mxu2  ;;  %v2224_v11 = vpop.f32.mrf.mxu0 }
 0x11f   :  { %v1034_v25 = vadd.f32 %v1033_v10, %v991_v8  ;;  %v993_v12 = vpop.f32.mrf.mxu1  ;;  %v953_v60 = vadd.f32 %v952_v23, %v910_v9 }
 0x120   :  { %v994_v22 = vadd.f32 %v993_v12, %v951_v5 }
 0x121   :  { %v1063_v15 = vmax.f32 %v1034_v25, 0.0 }
 0x123   :  { %v1601_v35 = vpack.c.bf16 %v1063_v15, %v1062_v13 }
 0x124   :  { %v912_v7 = vpop.f32.mrf.mxu3 }
 0x125   :  { %1623 = vst [vmem:[%s2264_s3 + $0x8] sm:$0xff] %v1601_v35   ;;  %v913_v16 = vadd.f32 %v912_v7, %v2180_v32 }
 0x126   :  { %v1036_v17 = vpop.f32.mrf.mxu2  ;;  %v972_v18 = vpop.f32.mrf.mxu0 }
 0x127   :  { %v995_v19 = vpop.f32.mrf.mxu1  ;;  %v956_v51 = vadd.f32 %v955_v21, %v913_v16  ;;  %v1037_v27 = vadd.f32 %v1036_v17, %v994_v22 }
 0x128   :  { %v996_v28 = vadd.f32 %v995_v19, %v953_v60 }
 0x129   :  { %v1064_v42 = vmax.f32 %v1037_v27, 0.0 }
 0x12c   :  { %v914_v29 = vpop.f32.mrf.mxu3 }
 0x12d   :  { %v915_v23 = vadd.f32 %v914_v29, %v2187_v6 }
 0x12e   :  { %v1038_v30 = vpop.f32.mrf.mxu2  ;;  %v983_v37 = vpop.f32.mrf.mxu0 }
 0x12f   :  { %v1039_v31 = vadd.f32 %v1038_v30, %v996_v28  ;;  %v998_v39 = vpop.f32.mrf.mxu1  ;;  %v958_v40 = vadd.f32 %v957_v34, %v915_v23  ;;  %v984_v2 = vadd.f32 %v983_v37, %v2200_v38 }
 0x130   :  { %v999_v54 = vadd.f32 %v998_v39, %v956_v51 }
 0x131   :  { %v1065_v43 = vmax.f32 %v1039_v31, 0.0 }
 0x133   :  { %v1606_v46 = vpack.c.bf16 %v1065_v43, %v1064_v42 }
 0x134   :  { %v917_v32 = vpop.f32.mrf.mxu3 }
 0x135   :  { %1624 = vst [vmem:[%s2264_s3 + $0x10] sm:$0xff] %v1606_v46   ;;  %v918_v21 = vadd.f32 %v917_v32, %v2190_v14 }
 0x136   :  { %v1041_v44 = vpop.f32.mrf.mxu2  ;;  %v985_v41 = vpop.f32.mrf.mxu0 }
 0x137   :  { %v1000_v53 = vpop.f32.mrf.mxu1  ;;  %v961_v6 = vadd.f32 %v2206_v48, %v918_v21  ;;  %v1042_v26 = vadd.f32 %v1041_v44, %v999_v54  ;;  %v986_v4 = vadd.f32 %v985_v41, %v2209_v49 }
 0x138   :  { %v1001_v62 = vadd.f32 %v1000_v53, %v958_v40 }
 0x139   :  { %v1066_v0 = vmax.f32 %v1042_v26, 0.0 }
 0x13c   :  { %v919_v24 = vpop.f32.mrf.mxu3 }
 0x13d   :  { %v920_v34 = vadd.f32 %v919_v24, %v2193_v20 }
 0x13e   :  { %v1043_v57 = vpop.f32.mrf.mxu2  ;;  %v1026_v59 = vpop.f32.mrf.mxu0 }
 0x13f   :  { %v1044_v58 = vadd.f32 %v1043_v57, %v1001_v62  ;;  %v1003_v36 = vpop.f32.mrf.mxu1  ;;  %v963_v63 = vadd.f32 %v2214_v56, %v920_v34  ;;  %v1027_v5 = vadd.f32 %v1026_v59, %v984_v2 }
 0x140   :  { %v1004_v25 = vadd.f32 %v1003_v36, %v961_v6 }
 0x141   :  { %v1067_v1 = vmax.f32 %v1044_v58, 0.0  ;;  %v1060_v9 = vmax.f32 %v1027_v5, 0.0 }
 0x143   :  { %v1611_v14 = vpack.c.bf16 %v1067_v1, %v1066_v0 }
 0x144   :  { %v922_v48 = vpop.f32.mrf.mxu3 }
 0x145   :  { %1625 = vst [vmem:[%s2264_s3 + $0x18] sm:$0xff] %v1611_v14   ;;  %v923_v20 = vadd.f32 %v922_v48, %v2197_v33 }
 0x146   :  { %v1046_v45 = vpop.f32.mrf.mxu2  ;;  %v1028_v3 = vpop.f32.mrf.mxu0 }
 0x147   :  { %v1005_v8 = vpop.f32.mrf.mxu1  ;;  %v1029_v52 = vadd.f32 %v1028_v3, %v986_v4  ;;  %v966_v56 = vadd.f32 %v2218_v61, %v923_v20  ;;  %v1047_v12 = vadd.f32 %v1046_v45, %v1004_v25 }
 0x148   :  { %v1006_v60 = vadd.f32 %v1005_v8, %v963_v63 }
 0x149   :  { %v1061_v10 = vmax.f32 %v1029_v52, 0.0  ;;  %v1068_v16 = vmax.f32 %v1047_v12, 0.0 }
 0x14b   :  { %v1596_v38 = vpack.c.bf16 %v1061_v10, %v1060_v9 }
 0x14c   :  { %v924_v13 = vpop.f32.mrf.mxu3 }
 0x14d   :  { %1597 = vst [vmem:[%s2264_s3] sm:$0xff] %v1596_v38   ;;  %v925_v49 = vadd.f32 %v924_v13, %v2204_v47 }
 0x14e   :  { %v1048_v33 = vpop.f32.mrf.mxu2 }
 0x14f   :  { %v1049_v15 = vadd.f32 %v1048_v33, %v1006_v60  ;;  %v1008_v35 = vpop.f32.mrf.mxu1  ;;  %v968_v7 = vadd.f32 %v2221_v50, %v925_v49 }
 0x150   :  { %v1009_v47 = vadd.f32 %v1008_v35, %v966_v56 }
 0x151   :  { %v1069_v61 = vmax.f32 %v1049_v15, 0.0 }
 0x153   :  { %v1616_v17 = vpack.c.bf16 %v1069_v61, %v1068_v16 }
 0x154   :  { %v927_v18 = vpop.f32.mrf.mxu3 }
 0x155   :  { %1626 = vst [vmem:[%s2264_s3 + $0x20] sm:$0xff] %v1616_v17   ;;  %v928_v19 = vadd.f32 %v927_v18, %v2212_v55 }
 0x156   :  { %v1051_v51 = vpop.f32.mrf.mxu2 }
 0x157   :  { %v1010_v22 = vpop.f32.mrf.mxu1  ;;  %v971_v27 = vadd.f32 %v2224_v11, %v928_v19  ;;  %v1052_v28 = vadd.f32 %v1051_v51, %v1009_v47 }
 0x158   :  { %v1011_v29 = vadd.f32 %v1010_v22, %v968_v7 }
 0x159   :  { %v1070_v37 = vmax.f32 %v1052_v28, 0.0 }
 0x15c   :  { %v929_v23 = vpop.f32.mrf.mxu3 }
 0x15e   :  { %v1053_v30 = vpop.f32.mrf.mxu2 }
 0x15f   :  { %v1054_v50 = vadd.f32 %v1053_v30, %v1011_v29  ;;  %v1013_v31 = vpop.f32.mrf.mxu1 }
 0x160   :  { %v1014_v42 = vadd.f32 %v1013_v31, %v971_v27 }
 0x161   :  { %v1071_v39 = vmax.f32 %v1054_v50, 0.0 }
 0x163   :  { %v1621_v40 = vpack.c.bf16 %v1071_v39, %v1070_v37 }
 0x165   :  { %1627 = vst [vmem:[%s2264_s3 + $0x28] sm:$0xff] %v1621_v40  }
 0x166   :  { %v1056_v55 = vpop.f32.mrf.mxu2 }
 0x167   :  { %v1057_v43 = vadd.f32 %v1056_v55, %v1014_v42  ;;  %v1015_v46 = vpop.f32.mrf.mxu1 }
 0x169   :  { %v1072_v32 = vmax.f32 %v1057_v43, 0.0 }
 0x16b   :  { %v1085_v11 = vpack.c.bf16 %v1072_v32, %v1072_v32 }
 0x16d   :  { %1098 = vst [vmem:[%s2264_s3 + $0x30] sm:$0xf] %v1085_v11 }
 0x16e   :  { %v1058_v21 = vpop.f32.mrf.mxu2 }

// kernel: cnn_forward.7
= control target key start
LH: loop header
LB: loop body
LE: loop exit
PB: predicated region body
PF: predicated region fallthrough
CT: control target
= control target key end

     0   :  { %s3715_s1 = inlined_call_operand.vmem [shape: bf16[3200,128], index: 1, kind: input, shape index: {}]   ;;  %s3716_s0 = inlined_call_operand.vmem [shape: bf16[8,3200], index: 0, kind: input, shape index: {}]   ;;  %s3717_s2 = inlined_call_operand.vmem [shape: f32[1,128], index: 2, kind: input, shape index: {}]   ;;  %s3718_s3 = inlined_call_operand.vmem [shape: f32[8,128], index: 3, kind: output, shape index: {}]  }
   0x1   :  { %v2856_v0 = vld [vmem:[%s3715_s1 + $0x38] sm:$0xff]  ;;  %v2855_v4 = vld [vmem:[%s3715_s1 + $0x30] sm:$0xff]  ;;  %v2854_v8 = vld [vmem:[%s3715_s1 + $0x28] sm:$0xff] }
   0x2   :  { %v2872_v1 = vld [vmem:[%s3715_s1 + $0xb8] sm:$0xff]  ;;  %1719 = vmatpush.bf16.msra.mxu0 %v2856_v0  ;;  %v2871_v5 = vld [vmem:[%s3715_s1 + $0xb0] sm:$0xff]  ;;  %v2870_v9 = vld [vmem:[%s3715_s1 + $0xa8] sm:$0xff] }
   0x3   :  { %v2864_v2 = vld [vmem:[%s3715_s1 + $0x78] sm:$0xff]  ;;  %1745 = vmatpush.bf16.msra.mxu2 %v2872_v1  ;;  %v2863_v6 = vld [vmem:[%s3715_s1 + $0x70] sm:$0xff]  ;;  %v2862_v10 = vld [vmem:[%s3715_s1 + $0x68] sm:$0xff] }
   0x4   :  { %v2880_v3 = vld [vmem:[%s3715_s1 + $0xf8] sm:$0xff]  ;;  %1732 = vmatpush.bf16.msra.mxu1 %v2864_v2  ;;  %v2879_v7 = vld [vmem:[%s3715_s1 + $0xf0] sm:$0xff]  ;;  %v2878_v11 = vld [vmem:[%s3715_s1 + $0xe8] sm:$0xff] }
   0x5   :  { %1758 = vmatpush.bf16.msra.mxu3 %v2880_v3  ;;  %v2853_v12 = vld [vmem:[%s3715_s1 + $0x20] sm:$0xff]  ;;  %v2852_v16 = vld [vmem:[%s3715_s1 + $0x18] sm:$0xff]  ;;  %v2851_v20 = vld [vmem:[%s3715_s1 + $0x10] sm:$0xff] }
   0x6   :  { %1720 = vmatpush.bf16.msra.mxu0 %v2855_v4  ;;  %v2869_v13 = vld [vmem:[%s3715_s1 + $0xa0] sm:$0xff]  ;;  %v2868_v17 = vld [vmem:[%s3715_s1 + $0x98] sm:$0xff]  ;;  %v2867_v21 = vld [vmem:[%s3715_s1 + $0x90] sm:$0xff] }
   0x7   :  { %1746 = vmatpush.bf16.msra.mxu2 %v2871_v5  ;;  %v2861_v14 = vld [vmem:[%s3715_s1 + $0x60] sm:$0xff]  ;;  %v2860_v18 = vld [vmem:[%s3715_s1 + $0x58] sm:$0xff]  ;;  %v2859_v22 = vld [vmem:[%s3715_s1 + $0x50] sm:$0xff] }
   0x8   :  { %1733 = vmatpush.bf16.msra.mxu1 %v2863_v6  ;;  %v2877_v15 = vld [vmem:[%s3715_s1 + $0xe0] sm:$0xff]  ;;  %v2876_v19 = vld [vmem:[%s3715_s1 + $0xd8] sm:$0xff]  ;;  %v2875_v23 = vld [vmem:[%s3715_s1 + $0xd0] sm:$0xff] }
   0x9   :  { %1759 = vmatpush.bf16.msra.mxu3 %v2879_v7  ;;  %v2850_v24 = vld [vmem:[%s3715_s1 + $0x8] sm:$0xff]  ;;  %v14_v29 = vld [vmem:[%s3716_s0] sm:$0xff]  ;;  %v2888_v34 = vld [vmem:[%s3715_s1 + $0x138] sm:$0xff] }
   0xa   :  { %1721 = vmatpush.bf16.msra.mxu0 %v2854_v8  ;;  %v2866_v25 = vld [vmem:[%s3715_s1 + $0x88] sm:$0xff]  ;;  %v2849_v30 = vld [vmem:[%s3715_s1] sm:$0xff]  ;;  %v444_v33 = vunpack.c.l.b16 %v14_v29  ;;  %v2904_v35 = vld [vmem:[%s3715_s1 + $0x1b8] sm:$0xff]  ;;  %v445_v39 = vunpack.c.h.b16 %v14_v29 }
   0xb   :  { %1747 = vmatpush.bf16.msra.mxu2 %v2870_v9  ;;  %v2858_v26 = vld [vmem:[%s3715_s1 + $0x48] sm:$0xff]  ;;  %v2865_v31 = vld [vmem:[%s3715_s1 + $0x80] sm:$0xff]  ;;  %v2896_v40 = vld [vmem:[%s3715_s1 + $0x178] sm:$0xff] }
   0xc   :  { %1734 = vmatpush.bf16.msra.mxu1 %v2862_v10  ;;  %v2874_v27 = vld [vmem:[%s3715_s1 + $0xc8] sm:$0xff]  ;;  %v2857_v36 = vld [vmem:[%s3715_s1 + $0x40] sm:$0xff]  ;;  %v2912_v41 = vld [vmem:[%s3715_s1 + $0x1f8] sm:$0xff]  ;;  %v469_v43 = vpack.c.b16 %v444_v33, %v444_v33  ;;  %v470_v47 = vpack.c.b16 %v445_v39, %v445_v39 }
   0xd   :  { %1760 = vmatpush.bf16.msra.mxu3 %v2878_v11  ;;  %v15_v28 = vld [vmem:[%s3716_s0 + $0x8] sm:$0xff]  ;;  %v2873_v37 = vld [vmem:[%s3715_s1 + $0xc0] sm:$0xff]  ;;  %v2887_v44 = vld [vmem:[%s3715_s1 + $0x130] sm:$0xff] }
   0xe   :  { %1722 = vmatpush.bf16.msra.mxu0 %v2853_v12  ;;  %v446_v32 = vunpack.c.l.b16 %v15_v28  ;;  %v447_v38 = vunpack.c.h.b16 %v15_v28  ;;  %v2903_v45 = vld [vmem:[%s3715_s1 + $0x1b0] sm:$0xff]  ;;  %v2886_v50 = vld [vmem:[%s3715_s1 + $0x128] sm:$0xff]  ;;  %v2885_v54 = vld [vmem:[%s3715_s1 + $0x120] sm:$0xff] }
   0xf   :  { %1748 = vmatpush.bf16.msra.mxu2 %v2869_v13  ;;  %v2895_v48 = vld [vmem:[%s3715_s1 + $0x170] sm:$0xff]  ;;  %v2902_v51 = vld [vmem:[%s3715_s1 + $0x1a8] sm:$0xff]  ;;  %v2901_v55 = vld [vmem:[%s3715_s1 + $0x1a0] sm:$0xff] }
  0x10   :  { %1735 = vmatpush.bf16.msra.mxu1 %v2861_v14  ;;  %v471_v42 = vpack.c.b16 %v446_v32, %v446_v32  ;;  %v472_v46 = vpack.c.b16 %v447_v38, %v447_v38  ;;  %v2911_v49 = vld [vmem:[%s3715_s1 + $0x1f0] sm:$0xff]  ;;  %v2894_v52 = vld [vmem:[%s3715_s1 + $0x168] sm:$0xff]  ;;  %v2893_v56 = vld [vmem:[%s3715_s1 + $0x160] sm:$0xff] }
  0x11   :  { %1761 = vmatpush.bf16.msra.mxu3 %v2877_v15  ;;  %v2910_v53 = vld [vmem:[%s3715_s1 + $0x1e8] sm:$0xff]  ;;  %v2909_v57 = vld [vmem:[%s3715_s1 + $0x1e0] sm:$0xff]  ;;  %v2884_v58 = vld [vmem:[%s3715_s1 + $0x118] sm:$0xff] }
  0x12   :  { %1723 = vmatpush.bf16.msra.mxu0 %v2852_v16  ;;  %v2900_v59 = vld [vmem:[%s3715_s1 + $0x198] sm:$0xff]  ;;  %v2883_v62 = vld [vmem:[%s3715_s1 + $0x110] sm:$0xff]  ;;  %v2882_v2 = vld [vmem:[%s3715_s1 + $0x108] sm:$0xff] }
  0x13   :  { %1749 = vmatpush.bf16.msra.mxu2 %v2868_v17  ;;  %v2892_v60 = vld [vmem:[%s3715_s1 + $0x158] sm:$0xff]  ;;  %v2899_v63 = vld [vmem:[%s3715_s1 + $0x190] sm:$0xff]  ;;  %v2898_v3 = vld [vmem:[%s3715_s1 + $0x188] sm:$0xff] }
  0x14   :  { %1736 = vmatpush.bf16.msra.mxu1 %v2860_v18  ;;  %v2908_v61 = vld [vmem:[%s3715_s1 + $0x1d8] sm:$0xff]  ;;  %v2891_v0 = vld [vmem:[%s3715_s1 + $0x150] sm:$0xff]  ;;  %v2890_v6 = vld [vmem:[%s3715_s1 + $0x148] sm:$0xff] }
  0x15   :  { %1762 = vmatpush.bf16.msra.mxu3 %v2876_v19  ;;  %v2907_v1 = vld [vmem:[%s3715_s1 + $0x1d0] sm:$0xff]  ;;  %v17_v4 = vld [vmem:[%s3716_s0 + $0x18] sm:$0xff]  ;;  %v2906_v7 = vld [vmem:[%s3715_s1 + $0x1c8] sm:$0xff] }
  0x16   :  { %1724 = vmatpush.bf16.msra.mxu0 %v2851_v20  ;;  %v16_v5 = vld [vmem:[%s3716_s0 + $0x10] sm:$0xff]  ;;  %v2881_v8 = vld [vmem:[%s3715_s1 + $0x100] sm:$0xff]  ;;  %v450_v10 = vunpack.c.l.b16 %v17_v4  ;;  %v2920_v12 = vld [vmem:[%s3715_s1 + $0x238] sm:$0xff]  ;;  %v451_v16 = vunpack.c.h.b16 %v17_v4 }
  0x17   :  { %1750 = vmatpush.bf16.msra.mxu2 %v2867_v21  ;;  %v2897_v9 = vld [vmem:[%s3715_s1 + $0x180] sm:$0xff]  ;;  %v448_v11 = vunpack.c.l.b16 %v16_v5  ;;  %v2936_v13 = vld [vmem:[%s3715_s1 + $0x2b8] sm:$0xff]  ;;  %v449_v17 = vunpack.c.h.b16 %v16_v5  ;;  %v2918_v28 = vld [vmem:[%s3715_s1 + $0x228] sm:$0xff] }
  0x18   :  { %1737 = vmatpush.bf16.msra.mxu1 %v2859_v22  ;;  %v2889_v14 = vld [vmem:[%s3715_s1 + $0x140] sm:$0xff]  ;;  %v2928_v18 = vld [vmem:[%s3715_s1 + $0x278] sm:$0xff]  ;;  %v475_v20 = vpack.c.b16 %v450_v10, %v450_v10  ;;  %v2919_v22 = vld [vmem:[%s3715_s1 + $0x230] sm:$0xff] }
  0x19   :  { %1763 = vmatpush.bf16.msra.mxu3 %v2875_v23  ;;  %v2905_v15 = vld [vmem:[%s3715_s1 + $0x1c0] sm:$0xff]  ;;  %v2944_v19 = vld [vmem:[%s3715_s1 + $0x2f8] sm:$0xff]  ;;  %v473_v21 = vpack.c.b16 %v448_v11, %v448_v11  ;;  %v2935_v23 = vld [vmem:[%s3715_s1 + $0x2b0] sm:$0xff] }
  0x1a   :  { %1725 = vmatpush.bf16.msra.mxu0 %v2850_v24  ;;  %v476_v24 = vpack.c.b16 %v451_v16, %v451_v16  ;;  %v2934_v29 = vld [vmem:[%s3715_s1 + $0x2a8] sm:$0xff]  ;;  %v2917_v32 = vld [vmem:[%s3715_s1 + $0x220] sm:$0xff]  ;;  %v2924_v38 = vld [vmem:[%s3715_s1 + $0x258] sm:$0xff] }
  0x1b   :  { %1751 = vmatpush.bf16.msra.mxu2 %v2866_v25  ;;  %v474_v25 = vpack.c.b16 %v449_v17, %v449_v17  ;;  %v2933_v33 = vld [vmem:[%s3715_s1 + $0x2a0] sm:$0xff]  ;;  %v2940_v39 = vld [vmem:[%s3715_s1 + $0x2d8] sm:$0xff]  ;;  %v2959_v4 = vld [vmem:[%s3715_s1 + $0x370] sm:$0xff] }
  0x1c   :  { %1738 = vmatpush.bf16.msra.mxu1 %v2858_v26  ;;  %v2927_v26 = vld [vmem:[%s3715_s1 + $0x270] sm:$0xff]  ;;  %v2949_v10 = vld [vmem:[%s3715_s1 + $0x320] sm:$0xff]  ;;  %v2956_v16 = vld [vmem:[%s3715_s1 + $0x358] sm:$0xff] }
  0x1d   :  { %1764 = vmatpush.bf16.msra.mxu3 %v2874_v27  ;;  %v2943_v27 = vld [vmem:[%s3715_s1 + $0x2f0] sm:$0xff]  ;;  %v2965_v11 = vld [vmem:[%s3715_s1 + $0x3a0] sm:$0xff]  ;;  %v2972_v17 = vld [vmem:[%s3715_s1 + $0x3d8] sm:$0xff] }
  0x1e   :  { %1726 = vmatpush.bf16.msra.mxu0 %v2849_v30  ;;  %v2926_v30 = vld [vmem:[%s3715_s1 + $0x268] sm:$0xff]  ;;  %v2975_v5 = vld [vmem:[%s3715_s1 + $0x3f0] sm:$0xff] }
  0x1f   :  { %1752 = vmatpush.bf16.msra.mxu2 %v2865_v31  ;;  %v2942_v31 = vld [vmem:[%s3715_s1 + $0x2e8] sm:$0xff] }
  0x20   :  { %1739 = vmatpush.bf16.msra.mxu1 %v2857_v36  ;;  %v2916_v36 = vld [vmem:[%s3715_s1 + $0x218] sm:$0xff] }
  0x21   :  { %1765 = vmatpush.bf16.msra.mxu3 %v2873_v37  ;;  %1727 = vmatmul.bf16.vlgmr.msra.gmra.mxu0 %v469_v43  ;;  %v2932_v37 = vld [vmem:[%s3715_s1 + $0x298] sm:$0xff]  ;;  %v2939_v43 = vld [vmem:[%s3715_s1 + $0x2d0] sm:$0xff] }
  0x22   :  { %1771 = vmatpush.bf16.msrb.mxu0 %v2888_v34  ;;  %1753 = vmatmul.bf16.vlgmr.msra.gmra.mxu2 %v471_v42  ;;  %v2925_v34 = vld [vmem:[%s3715_s1 + $0x260] sm:$0xff]  ;;  %v2923_v42 = vld [vmem:[%s3715_s1 + $0x250] sm:$0xff] }
  0x23   :  { %1797 = vmatpush.bf16.msrb.mxu2 %v2904_v35  ;;  %1740 = vmatmul.bf16.vlgmr.msra.gmra.mxu1 %v470_v47  ;;  %v2941_v35 = vld [vmem:[%s3715_s1 + $0x2e0] sm:$0xff]  ;;  %v19_v47 = vld [vmem:[%s3716_s0 + $0x28] sm:$0xff] }
  0x24   :  { %1784 = vmatpush.bf16.msrb.mxu1 %v2896_v40  ;;  %1766 = vmatmul.bf16.vlgmr.msra.gmra.mxu3 %v472_v46  ;;  %v2915_v40 = vld [vmem:[%s3715_s1 + $0x210] sm:$0xff]  ;;  %v18_v46 = vld [vmem:[%s3716_s0 + $0x20] sm:$0xff] }
  0x25   :  { %1810 = vmatpush.bf16.msrb.mxu3 %v2912_v41  ;;  %v2931_v41 = vld [vmem:[%s3715_s1 + $0x290] sm:$0xff] }
  0x26   :  { %1772 = vmatpush.bf16.msrb.mxu0 %v2887_v44  ;;  %v2914_v44 = vld [vmem:[%s3715_s1 + $0x208] sm:$0xff] }
  0x27   :  { %1798 = vmatpush.bf16.msrb.mxu2 %v2903_v45  ;;  %v2930_v45 = vld [vmem:[%s3715_s1 + $0x288] sm:$0xff] }
  0x28   :  { %1785 = vmatpush.bf16.msrb.mxu1 %v2895_v48  ;;  %v2922_v48 = vld [vmem:[%s3715_s1 + $0x248] sm:$0xff] }
  0x29   :  { %1811 = vmatpush.bf16.msrb.mxu3 %v2911_v49  ;;  %v2938_v49 = vld [vmem:[%s3715_s1 + $0x2c8] sm:$0xff] }
  0x2a   :  { %1773 = vmatpush.bf16.msrb.mxu0 %v2886_v50  ;;  %v452_v50 = vunpack.c.l.b16 %v18_v46 }
  0x2b   :  { %1799 = vmatpush.bf16.msrb.mxu2 %v2902_v51  ;;  %v454_v51 = vunpack.c.l.b16 %v19_v47 }
  0x2c   :  { %1786 = vmatpush.bf16.msrb.mxu1 %v2894_v52  ;;  %v2913_v52 = vld [vmem:[%s3715_s1 + $0x200] sm:$0xff] }
  0x2d   :  { %1812 = vmatpush.bf16.msrb.mxu3 %v2910_v53  ;;  %v2929_v53 = vld [vmem:[%s3715_s1 + $0x280] sm:$0xff] }
  0x2e   :  { %1774 = vmatpush.bf16.msrb.mxu0 %v2885_v54  ;;  %v2952_v54 = vld [vmem:[%s3715_s1 + $0x338] sm:$0xff] }
  0x2f   :  { %1800 = vmatpush.bf16.msrb.mxu2 %v2901_v55  ;;  %v2968_v55 = vld [vmem:[%s3715_s1 + $0x3b8] sm:$0xff] }
  0x30   :  { %1787 = vmatpush.bf16.msrb.mxu1 %v2893_v56  ;;  %v453_v56 = vunpack.c.h.b16 %v18_v46  ;;  %v2991_v46 = vld [vmem:[%s3715_s1 + $0x470] sm:$0xff] }
  0x31   :  { %1813 = vmatpush.bf16.msrb.mxu3 %v2909_v57  ;;  %v455_v57 = vunpack.c.h.b16 %v19_v47  ;;  %v3007_v47 = vld [vmem:[%s3715_s1 + $0x4f0] sm:$0xff] }
  0x32   :  { %1775 = vmatpush.bf16.msrb.mxu0 %v2884_v58  ;;  %v2921_v58 = vld [vmem:[%s3715_s1 + $0x240] sm:$0xff] }
  0x33   :  { %1801 = vmatpush.bf16.msrb.mxu2 %v2900_v59  ;;  %v2937_v59 = vld [vmem:[%s3715_s1 + $0x2c0] sm:$0xff] }
  0x34   :  { %1788 = vmatpush.bf16.msrb.mxu1 %v2892_v60  ;;  %v477_v60 = vpack.c.b16 %v452_v50, %v452_v50  ;;  %v2990_v50 = vld [vmem:[%s3715_s1 + $0x468] sm:$0xff] }
  0x35   :  { %1814 = vmatpush.bf16.msrb.mxu3 %v2908_v61  ;;  %v479_v61 = vpack.c.b16 %v454_v51, %v454_v51  ;;  %v3006_v51 = vld [vmem:[%s3715_s1 + $0x4e8] sm:$0xff] }
  0x36   :  { %1776 = vmatpush.bf16.msrb.mxu0 %v2883_v62  ;;  %v2960_v62 = vld [vmem:[%s3715_s1 + $0x378] sm:$0xff] }
  0x37   :  { %1802 = vmatpush.bf16.msrb.mxu2 %v2899_v63  ;;  %v2976_v63 = vld [vmem:[%s3715_s1 + $0x3f8] sm:$0xff] }
  0x38   :  { %1789 = vmatpush.bf16.msrb.mxu1 %v2891_v0  ;;  %v478_v0 = vpack.c.b16 %v453_v56, %v453_v56  ;;  %v2980_v56 = vld [vmem:[%s3715_s1 + $0x418] sm:$0xff] }
  0x39   :  { %1815 = vmatpush.bf16.msrb.mxu3 %v2907_v1  ;;  %v480_v1 = vpack.c.b16 %v455_v57, %v455_v57  ;;  %v2996_v57 = vld [vmem:[%s3715_s1 + $0x498] sm:$0xff] }
  0x3a   :  { %1777 = vmatpush.bf16.msrb.mxu0 %v2882_v2  ;;  %v2951_v2 = vld [vmem:[%s3715_s1 + $0x330] sm:$0xff] }
  0x3b   :  { %1803 = vmatpush.bf16.msrb.mxu2 %v2898_v3  ;;  %v2967_v3 = vld [vmem:[%s3715_s1 + $0x3b0] sm:$0xff] }
  0x3c   :  { %1790 = vmatpush.bf16.msrb.mxu1 %v2890_v6  ;;  %v2950_v6 = vld [vmem:[%s3715_s1 + $0x328] sm:$0xff] }
  0x3d   :  { %1816 = vmatpush.bf16.msrb.mxu3 %v2906_v7  ;;  %v2966_v7 = vld [vmem:[%s3715_s1 + $0x3a8] sm:$0xff] }
  0x3e   :  { %1778 = vmatpush.bf16.msrb.mxu0 %v2881_v8  ;;  %v2958_v8 = vld [vmem:[%s3715_s1 + $0x368] sm:$0xff] }
  0x3f   :  { %1804 = vmatpush.bf16.msrb.mxu2 %v2897_v9  ;;  %v2974_v9 = vld [vmem:[%s3715_s1 + $0x3e8] sm:$0xff] }
  0x40   :  { %1791 = vmatpush.bf16.msrb.mxu1 %v2889_v14  ;;  %v2948_v14 = vld [vmem:[%s3715_s1 + $0x318] sm:$0xff] }
  0x41   :  { %1817 = vmatpush.bf16.msrb.mxu3 %v2905_v15  ;;  %1779 = vmatmul.bf16.vlgmr.msrb.gmra.mxu0 %v473_v21  ;;  %v2964_v15 = vld [vmem:[%s3715_s1 + $0x398] sm:$0xff]  ;;  %v2971_v21 = vld [vmem:[%s3715_s1 + $0x3d0] sm:$0xff] }
  0x42   :  { %1823 = vmatpush.bf16.msra.mxu0 %v2920_v12  ;;  %1805 = vmatmul.bf16.vlgmr.msrb.gmra.mxu2 %v475_v20  ;;  %v2957_v12 = vld [vmem:[%s3715_s1 + $0x360] sm:$0xff]  ;;  %v2955_v20 = vld [vmem:[%s3715_s1 + $0x350] sm:$0xff] }
  0x43   :  { %1849 = vmatpush.bf16.msra.mxu2 %v2936_v13  ;;  %1792 = vmatmul.bf16.vlgmr.msrb.gmra.mxu1 %v474_v25  ;;  %v2973_v13 = vld [vmem:[%s3715_s1 + $0x3e0] sm:$0xff]  ;;  %v21_v25 = vld [vmem:[%s3716_s0 + $0x38] sm:$0xff] }
  0x44   :  { %1836 = vmatpush.bf16.msra.mxu1 %v2928_v18  ;;  %1818 = vmatmul.bf16.vlgmr.msrb.gmra.mxu3 %v476_v24  ;;  %v2947_v18 = vld [vmem:[%s3715_s1 + $0x310] sm:$0xff] }
  0x45   :  { %1862 = vmatpush.bf16.msra.mxu3 %v2944_v19  ;;  %v2963_v19 = vld [vmem:[%s3715_s1 + $0x390] sm:$0xff] }
  0x46   :  { %1824 = vmatpush.bf16.msra.mxu0 %v2919_v22  ;;  %v2946_v22 = vld [vmem:[%s3715_s1 + $0x308] sm:$0xff]  ;;  %v20_v24 = vld [vmem:[%s3716_s0 + $0x30] sm:$0xff] }
  0x47   :  { %1850 = vmatpush.bf16.msra.mxu2 %v2935_v23  ;;  %v2962_v23 = vld [vmem:[%s3715_s1 + $0x388] sm:$0xff] }
  0x48   :  { %1837 = vmatpush.bf16.msra.mxu1 %v2927_v26  ;;  %v2954_v26 = vld [vmem:[%s3715_s1 + $0x348] sm:$0xff] }
  0x49   :  { %1863 = vmatpush.bf16.msra.mxu3 %v2943_v27  ;;  %v2970_v27 = vld [vmem:[%s3715_s1 + $0x3c8] sm:$0xff] }
  0x4a   :  { %1825 = vmatpush.bf16.msra.mxu0 %v2918_v28  ;;  %v456_v28 = vunpack.c.l.b16 %v20_v24 }
  0x4b   :  { %1851 = vmatpush.bf16.msra.mxu2 %v2934_v29  ;;  %v458_v29 = vunpack.c.l.b16 %v21_v25 }
  0x4c   :  { %1838 = vmatpush.bf16.msra.mxu1 %v2926_v30  ;;  %v2945_v30 = vld [vmem:[%s3715_s1 + $0x300] sm:$0xff] }
  0x4d   :  { %1864 = vmatpush.bf16.msra.mxu3 %v2942_v31  ;;  %v2961_v31 = vld [vmem:[%s3715_s1 + $0x380] sm:$0xff] }
  0x4e   :  { %1826 = vmatpush.bf16.msra.mxu0 %v2917_v32  ;;  %v2984_v32 = vld [vmem:[%s3715_s1 + $0x438] sm:$0xff] }
  0x4f   :  { %1852 = vmatpush.bf16.msra.mxu2 %v2933_v33  ;;  %v3000_v33 = vld [vmem:[%s3715_s1 + $0x4b8] sm:$0xff] }
  0x50   :  { %1839 = vmatpush.bf16.msra.mxu1 %v2925_v34  ;;  %v457_v34 = vunpack.c.h.b16 %v20_v24  ;;  %v3023_v24 = vld [vmem:[%s3715_s1 + $0x570] sm:$0xff] }
  0x51   :  { %1865 = vmatpush.bf16.msra.mxu3 %v2941_v35  ;;  %v459_v35 = vunpack.c.h.b16 %v21_v25  ;;  %v3039_v25 = vld [vmem:[%s3715_s1 + $0x5f0] sm:$0xff] }
  0x52   :  { %1827 = vmatpush.bf16.msra.mxu0 %v2916_v36  ;;  %v2953_v36 = vld [vmem:[%s3715_s1 + $0x340] sm:$0xff] }
  0x53   :  { %1853 = vmatpush.bf16.msra.mxu2 %v2932_v37  ;;  %v2969_v37 = vld [vmem:[%s3715_s1 + $0x3c0] sm:$0xff] }
  0x54   :  { %1840 = vmatpush.bf16.msra.mxu1 %v2924_v38  ;;  %v481_v38 = vpack.c.b16 %v456_v28, %v456_v28  ;;  %v3022_v28 = vld [vmem:[%s3715_s1 + $0x568] sm:$0xff] }
  0x55   :  { %1866 = vmatpush.bf16.msra.mxu3 %v2940_v39  ;;  %v483_v39 = vpack.c.b16 %v458_v29, %v458_v29  ;;  %v3038_v29 = vld [vmem:[%s3715_s1 + $0x5e8] sm:$0xff] }
  0x56   :  { %1828 = vmatpush.bf16.msra.mxu0 %v2915_v40  ;;  %v2992_v40 = vld [vmem:[%s3715_s1 + $0x478] sm:$0xff] }
  0x57   :  { %1854 = vmatpush.bf16.msra.mxu2 %v2931_v41  ;;  %v3008_v41 = vld [vmem:[%s3715_s1 + $0x4f8] sm:$0xff] }
  0x58   :  { %1841 = vmatpush.bf16.msra.mxu1 %v2923_v42  ;;  %v482_v42 = vpack.c.b16 %v457_v34, %v457_v34  ;;  %v3021_v34 = vld [vmem:[%s3715_s1 + $0x560] sm:$0xff] }
  0x59   :  { %1867 = vmatpush.bf16.msra.mxu3 %v2939_v43  ;;  %v484_v43 = vpack.c.b16 %v459_v35, %v459_v35  ;;  %v3037_v35 = vld [vmem:[%s3715_s1 + $0x5e0] sm:$0xff] }
  0x5a   :  { %1829 = vmatpush.bf16.msra.mxu0 %v2914_v44  ;;  %v2983_v44 = vld [vmem:[%s3715_s1 + $0x430] sm:$0xff] }
  0x5b   :  { %1855 = vmatpush.bf16.msra.mxu2 %v2930_v45  ;;  %v2999_v45 = vld [vmem:[%s3715_s1 + $0x4b0] sm:$0xff] }
  0x5c   :  { %1842 = vmatpush.bf16.msra.mxu1 %v2922_v48  ;;  %v2982_v48 = vld [vmem:[%s3715_s1 + $0x428] sm:$0xff] }
  0x5d   :  { %1868 = vmatpush.bf16.msra.mxu3 %v2938_v49  ;;  %v2998_v49 = vld [vmem:[%s3715_s1 + $0x4a8] sm:$0xff] }
  0x5e   :  { %1830 = vmatpush.bf16.msra.mxu0 %v2913_v52  ;;  %v2981_v52 = vld [vmem:[%s3715_s1 + $0x420] sm:$0xff] }
  0x5f   :  { %1856 = vmatpush.bf16.msra.mxu2 %v2929_v53  ;;  %v2997_v53 = vld [vmem:[%s3715_s1 + $0x4a0] sm:$0xff] }
  0x60   :  { %1843 = vmatpush.bf16.msra.mxu1 %v2921_v58  ;;  %v2988_v58 = vld [vmem:[%s3715_s1 + $0x458] sm:$0xff] }
  0x61   :  { %1869 = vmatpush.bf16.msra.mxu3 %v2937_v59  ;;  %1831 = vmatmul.bf16.vlgmr.msra.gmra.mxu0 %v477_v60  ;;  %v3004_v59 = vld [vmem:[%s3715_s1 + $0x4d8] sm:$0xff]  ;;  %v2979_v60 = vld [vmem:[%s3715_s1 + $0x410] sm:$0xff] }
  0x62   :  { %1875 = vmatpush.bf16.msrb.mxu0 %v2952_v54  ;;  %1857 = vmatmul.bf16.vlgmr.msra.gmra.mxu2 %v479_v61  ;;  %v2989_v54 = vld [vmem:[%s3715_s1 + $0x460] sm:$0xff]  ;;  %v2995_v61 = vld [vmem:[%s3715_s1 + $0x490] sm:$0xff] }
  0x63   :  { %1901 = vmatpush.bf16.msrb.mxu2 %v2968_v55  ;;  %1844 = vmatmul.bf16.vlgmr.msra.gmra.mxu1 %v478_v0  ;;  %v3005_v55 = vld [vmem:[%s3715_s1 + $0x4e0] sm:$0xff]  ;;  %v2978_v0 = vld [vmem:[%s3715_s1 + $0x408] sm:$0xff] }
  0x64   :  { %1888 = vmatpush.bf16.msrb.mxu1 %v2960_v62  ;;  %1870 = vmatmul.bf16.vlgmr.msra.gmra.mxu3 %v480_v1  ;;  %v2987_v62 = vld [vmem:[%s3715_s1 + $0x450] sm:$0xff]  ;;  %v2994_v1 = vld [vmem:[%s3715_s1 + $0x488] sm:$0xff] }
  0x65   :  { %1914 = vmatpush.bf16.msrb.mxu3 %v2976_v63  ;;  %v3003_v63 = vld [vmem:[%s3715_s1 + $0x4d0] sm:$0xff] }
  0x66   :  { %1876 = vmatpush.bf16.msrb.mxu0 %v2951_v2  ;;  %v22_v2 = vld [vmem:[%s3716_s0 + $0x40] sm:$0xff] }
  0x67   :  { %1902 = vmatpush.bf16.msrb.mxu2 %v2967_v3  ;;  %v23_v3 = vld [vmem:[%s3716_s0 + $0x48] sm:$0xff] }
  0x68   :  { %1889 = vmatpush.bf16.msrb.mxu1 %v2959_v4  ;;  %v2986_v4 = vld [vmem:[%s3715_s1 + $0x448] sm:$0xff] }
  0x69   :  { %1915 = vmatpush.bf16.msrb.mxu3 %v2975_v5  ;;  %v3002_v5 = vld [vmem:[%s3715_s1 + $0x4c8] sm:$0xff] }
  0x6a   :  { %1877 = vmatpush.bf16.msrb.mxu0 %v2950_v6  ;;  %v460_v6 = vunpack.c.l.b16 %v22_v2 }
  0x6b   :  { %1903 = vmatpush.bf16.msrb.mxu2 %v2966_v7  ;;  %v462_v7 = vunpack.c.l.b16 %v23_v3 }
  0x6c   :  { %1890 = vmatpush.bf16.msrb.mxu1 %v2958_v8  ;;  %v2977_v8 = vld [vmem:[%s3715_s1 + $0x400] sm:$0xff] }
  0x6d   :  { %1916 = vmatpush.bf16.msrb.mxu3 %v2974_v9  ;;  %v2993_v9 = vld [vmem:[%s3715_s1 + $0x480] sm:$0xff] }
  0x6e   :  { %1878 = vmatpush.bf16.msrb.mxu0 %v2949_v10  ;;  %v3016_v10 = vld [vmem:[%s3715_s1 + $0x538] sm:$0xff] }
  0x6f   :  { %1904 = vmatpush.bf16.msrb.mxu2 %v2965_v11  ;;  %v3032_v11 = vld [vmem:[%s3715_s1 + $0x5b8] sm:$0xff] }
  0x70   :  { %1891 = vmatpush.bf16.msrb.mxu1 %v2957_v12  ;;  %v461_v12 = vunpack.c.h.b16 %v22_v2 }
  0x71   :  { %1917 = vmatpush.bf16.msrb.mxu3 %v2973_v13  ;;  %v463_v13 = vunpack.c.h.b16 %v23_v3 }
  0x72   :  { %1879 = vmatpush.bf16.msrb.mxu0 %v2948_v14  ;;  %v2985_v14 = vld [vmem:[%s3715_s1 + $0x440] sm:$0xff] }
  0x73   :  { %1905 = vmatpush.bf16.msrb.mxu2 %v2964_v15  ;;  %v3001_v15 = vld [vmem:[%s3715_s1 + $0x4c0] sm:$0xff] }
  0x74   :  { %1892 = vmatpush.bf16.msrb.mxu1 %v2956_v16  ;;  %v485_v16 = vpack.c.b16 %v460_v6, %v460_v6 }
  0x75   :  { %1918 = vmatpush.bf16.msrb.mxu3 %v2972_v17  ;;  %v487_v17 = vpack.c.b16 %v462_v7, %v462_v7 }
  0x76   :  { %1880 = vmatpush.bf16.msrb.mxu0 %v2947_v18  ;;  %v3024_v18 = vld [vmem:[%s3715_s1 + $0x578] sm:$0xff] }
  0x77   :  { %1906 = vmatpush.bf16.msrb.mxu2 %v2963_v19  ;;  %v3040_v19 = vld [vmem:[%s3715_s1 + $0x5f8] sm:$0xff] }
  0x78   :  { %1893 = vmatpush.bf16.msrb.mxu1 %v2955_v20  ;;  %v486_v20 = vpack.c.b16 %v461_v12, %v461_v12  ;;  %v3045_v12 = vld [vmem:[%s3715_s1 + $0x620] sm:$0xff] }
  0x79   :  { %1919 = vmatpush.bf16.msrb.mxu3 %v2971_v21  ;;  %v488_v21 = vpack.c.b16 %v463_v13, %v463_v13 }
  0x7a   :  { %1881 = vmatpush.bf16.msrb.mxu0 %v2946_v22  ;;  %v3015_v22 = vld [vmem:[%s3715_s1 + $0x530] sm:$0xff] }
  0x7b   :  { %1907 = vmatpush.bf16.msrb.mxu2 %v2962_v23  ;;  %v3031_v23 = vld [vmem:[%s3715_s1 + $0x5b0] sm:$0xff] }
  0x7c   :  { %1894 = vmatpush.bf16.msrb.mxu1 %v2954_v26  ;;  %v3014_v26 = vld [vmem:[%s3715_s1 + $0x528] sm:$0xff] }
  0x7d   :  { %1920 = vmatpush.bf16.msrb.mxu3 %v2970_v27  ;;  %v3030_v27 = vld [vmem:[%s3715_s1 + $0x5a8] sm:$0xff] }
  0x7e   :  { %1882 = vmatpush.bf16.msrb.mxu0 %v2945_v30  ;;  %v3049_v30 = vld [vmem:[%s3717_s2] ss:$0 sm:$0xff] }
  0x7f   :  { %1908 = vmatpush.bf16.msrb.mxu2 %v2961_v31  ;;  %v3013_v31 = vld [vmem:[%s3715_s1 + $0x520] sm:$0xff] }
  0x80   :  { %1895 = vmatpush.bf16.msrb.mxu1 %v2953_v36 }
  0x81   :  { %1921 = vmatpush.bf16.msrb.mxu3 %v2969_v37  ;;  %1883 = vmatmul.bf16.vlgmr.msrb.gmra.mxu0 %v481_v38  ;;  %v3012_v38 = vld [vmem:[%s3715_s1 + $0x518] sm:$0xff] }
  0x82   :  { %1927 = vmatpush.bf16.msra.mxu0 %v2984_v32  ;;  %1909 = vmatmul.bf16.vlgmr.msrb.gmra.mxu2 %v483_v39  ;;  %v3029_v32 = vld [vmem:[%s3715_s1 + $0x5a0] sm:$0xff]  ;;  %v3028_v39 = vld [vmem:[%s3715_s1 + $0x598] sm:$0xff] }
  0x83   :  { %1953 = vmatpush.bf16.msra.mxu2 %v3000_v33  ;;  %1896 = vmatmul.bf16.vlgmr.msrb.gmra.mxu1 %v482_v42  ;;  %v3036_v42 = vld [vmem:[%s3715_s1 + $0x5d8] sm:$0xff] }
  0x84   :  { %1940 = vmatpush.bf16.msra.mxu1 %v2992_v40  ;;  %1922 = vmatmul.bf16.vlgmr.msrb.gmra.mxu3 %v484_v43 }
  0x85   :  { %1966 = vmatpush.bf16.msra.mxu3 %v3008_v41  ;;  %v3020_v41 = vld [vmem:[%s3715_s1 + $0x558] sm:$0xff] }
  0x86   :  { %1928 = vmatpush.bf16.msra.mxu0 %v2983_v44  ;;  %v3011_v44 = vld [vmem:[%s3715_s1 + $0x510] sm:$0xff] }
  0x87   :  { %1954 = vmatpush.bf16.msra.mxu2 %v2999_v45  ;;  %v3027_v45 = vld [vmem:[%s3715_s1 + $0x590] sm:$0xff] }
  0x88   :  { %1941 = vmatpush.bf16.msra.mxu1 %v2991_v46 }
  0x89   :  { %1967 = vmatpush.bf16.msra.mxu3 %v3007_v47 }
  0x8a   :  { %1929 = vmatpush.bf16.msra.mxu0 %v2982_v48 }
  0x8b   :  { %1955 = vmatpush.bf16.msra.mxu2 %v2998_v49  ;;  %v3019_v49 = vld [vmem:[%s3715_s1 + $0x550] sm:$0xff] }
  0x8c   :  { %1942 = vmatpush.bf16.msra.mxu1 %v2990_v50  ;;  %v3035_v50 = vld [vmem:[%s3715_s1 + $0x5d0] sm:$0xff] }
  0x8d   :  { %1968 = vmatpush.bf16.msra.mxu3 %v3006_v51 }
  0x8e   :  { %1930 = vmatpush.bf16.msra.mxu0 %v2981_v52  ;;  %v3010_v52 = vld [vmem:[%s3715_s1 + $0x508] sm:$0xff] }
  0x8f   :  { %1956 = vmatpush.bf16.msra.mxu2 %v2997_v53 }
  0x90   :  { %1943 = vmatpush.bf16.msra.mxu1 %v2989_v54  ;;  %v3026_v54 = vld [vmem:[%s3715_s1 + $0x588] sm:$0xff] }
  0x91   :  { %1969 = vmatpush.bf16.msra.mxu3 %v3005_v55  ;;  %v24_v55 = vld [vmem:[%s3716_s0 + $0x50] sm:$0xff] }
  0x92   :  { %1931 = vmatpush.bf16.msra.mxu0 %v2980_v56  ;;  %v25_v56 = vld [vmem:[%s3716_s0 + $0x58] sm:$0xff] }
  0x93   :  { %1957 = vmatpush.bf16.msra.mxu2 %v2996_v57  ;;  %v3018_v57 = vld [vmem:[%s3715_s1 + $0x548] sm:$0xff]  ;;  %v467_v2 = vunpack.c.h.b16 %v25_v56 }
  0x94   :  { %1944 = vmatpush.bf16.msra.mxu1 %v2988_v58  ;;  %v3034_v58 = vld [vmem:[%s3715_s1 + $0x5c8] sm:$0xff] }
  0x95   :  { %1970 = vmatpush.bf16.msra.mxu3 %v3004_v59  ;;  %v464_v59 = vunpack.c.l.b16 %v24_v55 }
  0x96   :  { %1932 = vmatpush.bf16.msra.mxu0 %v2979_v60  ;;  %v466_v60 = vunpack.c.l.b16 %v25_v56 }
  0x97   :  { %1958 = vmatpush.bf16.msra.mxu2 %v2995_v61  ;;  %v489_v6 = vpack.c.b16 %v464_v59, %v464_v59 }
  0x98   :  { %1945 = vmatpush.bf16.msra.mxu1 %v2987_v62  ;;  %v3009_v62 = vld [vmem:[%s3715_s1 + $0x500] sm:$0xff]  ;;  %v491_v7 = vpack.c.b16 %v466_v60, %v466_v60 }
  0x99   :  { %1971 = vmatpush.bf16.msra.mxu3 %v3003_v63  ;;  %v3025_v63 = vld [vmem:[%s3715_s1 + $0x580] sm:$0xff] }
  0x9a   :  { %1933 = vmatpush.bf16.msra.mxu0 %v2978_v0  ;;  %v3048_v0 = vld [vmem:[%s3715_s1 + $0x638] sm:$0xff] }
  0x9b   :  { %1959 = vmatpush.bf16.msra.mxu2 %v2994_v1  ;;  %v465_v1 = vunpack.c.h.b16 %v24_v55 }
  0x9c   :  { %1946 = vmatpush.bf16.msra.mxu1 %v2986_v4  ;;  %v3017_v4 = vld [vmem:[%s3715_s1 + $0x540] sm:$0xff] }
  0x9d   :  { %1972 = vmatpush.bf16.msra.mxu3 %v3002_v5  ;;  %v3033_v5 = vld [vmem:[%s3715_s1 + $0x5c0] sm:$0xff] }
  0x9e   :  { %1934 = vmatpush.bf16.msra.mxu0 %v2977_v8  ;;  %v1728_v33 = vpop.f32.mrf.mxu0  ;;  %v490_v8 = vpack.c.b16 %v465_v1, %v465_v1 }
  0x9f   :  { %1960 = vmatpush.bf16.msra.mxu2 %v2993_v9  ;;  %v1729_v36 = vadd.f32 %v3049_v30, %v1728_v33  ;;  %v492_v9 = vpack.c.b16 %v467_v2, %v467_v2 }
  0xa0   :  { %1947 = vmatpush.bf16.msra.mxu1 %v2985_v14  ;;  %v1741_v37 = vpop.f32.mrf.mxu1 }
  0xa1   :  { %1973 = vmatpush.bf16.msra.mxu3 %v3001_v15  ;;  %1935 = vmatmul.bf16.vlgmr.msra.gmra.mxu0 %v485_v16  ;;  %v1742_v40 = vadd.f32 %v1741_v37, %v1729_v36 }
  0xa2   :  { %1979 = vmatpush.bf16.msrb.mxu0 %v3016_v10  ;;  %1961 = vmatmul.bf16.vlgmr.msra.gmra.mxu2 %v487_v17  ;;  %v3047_v10 = vld [vmem:[%s3715_s1 + $0x630] sm:$0xff]  ;;  %v3044_v17 = vld [vmem:[%s3715_s1 + $0x618] sm:$0xff] }
  0xa3   :  { %2005 = vmatpush.bf16.msrb.mxu2 %v3032_v11  ;;  %1948 = vmatmul.bf16.vlgmr.msra.gmra.mxu1 %v486_v20  ;;  %v3046_v11 = vld [vmem:[%s3715_s1 + $0x628] sm:$0xff]  ;;  %v3043_v20 = vld [vmem:[%s3715_s1 + $0x610] sm:$0xff] }
  0xa4   :  { %1992 = vmatpush.bf16.msrb.mxu1 %v3024_v18  ;;  %1974 = vmatmul.bf16.vlgmr.msra.gmra.mxu3 %v488_v21 }
  0xa5   :  { %2018 = vmatpush.bf16.msrb.mxu3 %v3040_v19  ;;  %v1754_v43 = vpop.f32.mrf.mxu2 }
  0xa6   :  { %1980 = vmatpush.bf16.msrb.mxu0 %v3015_v22  ;;  %v1755_v46 = vadd.f32 %v1754_v43, %v1742_v40  ;;  %v1730_v48 = vpop.f32.mrf.mxu0 }
  0xa7   :  { %2006 = vmatpush.bf16.msrb.mxu2 %v3031_v23  ;;  %v1767_v47 = vpop.f32.mrf.mxu3 }
  0xa8   :  { %1993 = vmatpush.bf16.msrb.mxu1 %v3023_v24  ;;  %v1768_v51 = vadd.f32 %v1767_v47, %v1755_v46  ;;  %v1743_v53 = vpop.f32.mrf.mxu1 }
  0xa9   :  { %2019 = vmatpush.bf16.msrb.mxu3 %v3039_v25  ;;  %v3042_v25 = vld [vmem:[%s3715_s1 + $0x608] sm:$0xff] }
  0xaa   :  { %1981 = vmatpush.bf16.msrb.mxu0 %v3014_v26  ;;  %v26_v26 = vld [vmem:[%s3716_s0 + $0x60] sm:$0xf] }
  0xab   :  { %2007 = vmatpush.bf16.msrb.mxu2 %v3030_v27 }
  0xac   :  { %1994 = vmatpush.bf16.msrb.mxu1 %v3022_v28  ;;  %v468_v28 = vunpack.c.l.b16 %v26_v26 }
  0xad   :  { %2020 = vmatpush.bf16.msrb.mxu3 %v3038_v29  ;;  %v1756_v61 = vpop.f32.mrf.mxu2  ;;  %v3041_v29 = vld [vmem:[%s3715_s1 + $0x600] sm:$0xff] }
  0xae   :  { %1982 = vmatpush.bf16.msrb.mxu0 %v3013_v31  ;;  %v493_v31 = vpack.c.b16 %v468_v28, %v468_v28 }
  0xaf   :  { %2008 = vmatpush.bf16.msrb.mxu2 %v3029_v32  ;;  %v1769_v3 = vpop.f32.mrf.mxu3 }
  0xb0   :  { %1995 = vmatpush.bf16.msrb.mxu1 %v3021_v34 }
  0xb1   :  { %2021 = vmatpush.bf16.msrb.mxu3 %v3037_v35 }
  0xb2   :  { %1983 = vmatpush.bf16.msrb.mxu0 %v3012_v38 }
  0xb3   :  { %2009 = vmatpush.bf16.msrb.mxu2 %v3028_v39 }
  0xb4   :  { %1996 = vmatpush.bf16.msrb.mxu1 %v3020_v41 }
  0xb5   :  { %2022 = vmatpush.bf16.msrb.mxu3 %v3036_v42 }
  0xb6   :  { %1984 = vmatpush.bf16.msrb.mxu0 %v3011_v44 }
  0xb7   :  { %2010 = vmatpush.bf16.msrb.mxu2 %v3027_v45 }
  0xb8   :  { %1997 = vmatpush.bf16.msrb.mxu1 %v3019_v49 }
  0xb9   :  { %2023 = vmatpush.bf16.msrb.mxu3 %v3035_v50 }
  0xba   :  { %1985 = vmatpush.bf16.msrb.mxu0 %v3010_v52 }
  0xbb   :  { %2011 = vmatpush.bf16.msrb.mxu2 %v3026_v54 }
  0xbc   :  { %1998 = vmatpush.bf16.msrb.mxu1 %v3018_v57 }
  0xbd   :  { %2024 = vmatpush.bf16.msrb.mxu3 %v3034_v58 }
  0xbe   :  { %1986 = vmatpush.bf16.msrb.mxu0 %v3009_v62  ;;  %v1780_v13 = vpop.f32.mrf.mxu0 }
  0xbf   :  { %2012 = vmatpush.bf16.msrb.mxu2 %v3025_v63  ;;  %v1781_v14 = vadd.f32 %v1780_v13, %v1768_v51 }
  0xc0   :  { %1999 = vmatpush.bf16.msrb.mxu1 %v3017_v4  ;;  %v1793_v15 = vpop.f32.mrf.mxu1 }
  0xc1   :  { %2025 = vmatpush.bf16.msrb.mxu3 %v3033_v5  ;;  %1987 = vmatmul.bf16.vlgmr.msrb.gmra.mxu0 %v489_v6  ;;  %v1794_v16 = vadd.f32 %v1793_v15, %v1781_v14 }
  0xc2   :  { %2031 = vmatpush.bf16.msra.mxu0 %v3048_v0  ;;  %2013 = vmatmul.bf16.vlgmr.msrb.gmra.mxu2 %v491_v7 }
  0xc3   :  { %2000 = vmatmul.bf16.vlgmr.msrb.gmra.mxu1 %v490_v8 }
  0xc4   :  { %2026 = vmatmul.bf16.vlgmr.msrb.gmra.mxu3 %v492_v9 }
  0xc5   :  { %v1806_v18 = vpop.f32.mrf.mxu2 }
  0xc6   :  { %2032 = vmatpush.bf16.msra.mxu0 %v3047_v10  ;;  %v1807_v19 = vadd.f32 %v1806_v18, %v1794_v16  ;;  %v1782_v22 = vpop.f32.mrf.mxu0 }
  0xc7   :  { %v1819_v21 = vpop.f32.mrf.mxu3 }
  0xc8   :  { %v1820_v23 = vadd.f32 %v1819_v21, %v1807_v19  ;;  %v1795_v24 = vpop.f32.mrf.mxu1 }
  0xca   :  { %2033 = vmatpush.bf16.msra.mxu0 %v3046_v11 }
  0xcd   :  { %v1808_v27 = vpop.f32.mrf.mxu2 }
  0xce   :  { %2034 = vmatpush.bf16.msra.mxu0 %v3045_v12 }
  0xcf   :  { %v1821_v30 = vpop.f32.mrf.mxu3 }
  0xd2   :  { %2035 = vmatpush.bf16.msra.mxu0 %v3044_v17 }
  0xd6   :  { %2036 = vmatpush.bf16.msra.mxu0 %v3043_v20 }
  0xda   :  { %2037 = vmatpush.bf16.msra.mxu0 %v3042_v25 }
  0xde   :  { %2038 = vmatpush.bf16.msra.mxu0 %v3041_v29  ;;  %v1832_v32 = vpop.f32.mrf.mxu0 }
  0xdf   :  { %v1833_v33 = vadd.f32 %v1832_v32, %v1820_v23 }
  0xe0   :  { %v1845_v34 = vpop.f32.mrf.mxu1 }
  0xe1   :  { %2039 = vmatmul.bf16.vlgmr.msra.gmra.mxu0 %v493_v31  ;;  %v1846_v35 = vadd.f32 %v1845_v34, %v1833_v33 }
  0xe5   :  { %v1858_v36 = vpop.f32.mrf.mxu2 }
  0xe6   :  { %v1859_v37 = vadd.f32 %v1858_v36, %v1846_v35  ;;  %v1834_v39 = vpop.f32.mrf.mxu0 }
  0xe7   :  { %v1871_v38 = vpop.f32.mrf.mxu3 }
  0xe8   :  { %v1872_v40 = vadd.f32 %v1871_v38, %v1859_v37  ;;  %v1847_v41 = vpop.f32.mrf.mxu1 }
  0xed   :  { %v1860_v42 = vpop.f32.mrf.mxu2 }
  0xef   :  { %v1873_v43 = vpop.f32.mrf.mxu3 }
  0xfe   :  { %v1884_v44 = vpop.f32.mrf.mxu0 }
  0xff   :  { %v1885_v45 = vadd.f32 %v1884_v44, %v1872_v40 }
 0x100   :  { %v1897_v46 = vpop.f32.mrf.mxu1 }
 0x101   :  { %v1898_v47 = vadd.f32 %v1897_v46, %v1885_v45 }
 0x105   :  { %v1910_v48 = vpop.f32.mrf.mxu2 }
 0x106   :  { %v1911_v49 = vadd.f32 %v1910_v48, %v1898_v47  ;;  %v1886_v51 = vpop.f32.mrf.mxu0 }
 0x107   :  { %v1923_v50 = vpop.f32.mrf.mxu3 }
 0x108   :  { %v1924_v52 = vadd.f32 %v1923_v50, %v1911_v49  ;;  %v1899_v53 = vpop.f32.mrf.mxu1 }
 0x10d   :  { %v1912_v54 = vpop.f32.mrf.mxu2 }
 0x10f   :  { %v1925_v55 = vpop.f32.mrf.mxu3 }
 0x11e   :  { %v1936_v56 = vpop.f32.mrf.mxu0 }
 0x11f   :  { %v1937_v3 = vadd.f32 %v1936_v56, %v1924_v52 }
 0x120   :  { %v1949_v57 = vpop.f32.mrf.mxu1 }
 0x121   :  { %v1950_v7 = vadd.f32 %v1949_v57, %v1937_v3 }
 0x125   :  { %v1962_v58 = vpop.f32.mrf.mxu2 }
 0x126   :  { %v1938_v60 = vpop.f32.mrf.mxu0  ;;  %v1963_v8 = vadd.f32 %v1962_v58, %v1950_v7 }
 0x127   :  { %v1975_v59 = vpop.f32.mrf.mxu3 }
 0x128   :  { %v1951_v61 = vpop.f32.mrf.mxu1  ;;  %v1976_v11 = vadd.f32 %v1975_v59, %v1963_v8 }
 0x12d   :  { %v1964_v62 = vpop.f32.mrf.mxu2 }
 0x12f   :  { %v1977_v63 = vpop.f32.mrf.mxu3 }
 0x13e   :  { %v1988_v0 = vpop.f32.mrf.mxu0 }
 0x13f   :  { %v1989_v12 = vadd.f32 %v1988_v0, %v1976_v11 }
 0x140   :  { %v2001_v1 = vpop.f32.mrf.mxu1 }
 0x141   :  { %v2002_v13 = vadd.f32 %v2001_v1, %v1989_v12 }
 0x145   :  { %v2014_v2 = vpop.f32.mrf.mxu2 }
 0x146   :  { %v1990_v5 = vpop.f32.mrf.mxu0  ;;  %v2015_v14 = vadd.f32 %v2014_v2, %v2002_v13 }
 0x147   :  { %v2027_v4 = vpop.f32.mrf.mxu3 }
 0x148   :  { %v2003_v6 = vpop.f32.mrf.mxu1  ;;  %v2028_v15 = vadd.f32 %v2027_v4, %v2015_v14 }
 0x14d   :  { %v2016_v9 = vpop.f32.mrf.mxu2 }
 0x14f   :  { %v2029_v10 = vpop.f32.mrf.mxu3 }
 0x15e   :  { %v2040_v16 = vpop.f32.mrf.mxu0 }
 0x15f   :  { %v2041_v17 = vadd.f32 %v2040_v16, %v2028_v15 }
 0x161   :  { %2044 = vst [vmem:[%s3718_s3] sm:$0xff] %v2041_v17 }
 0x166   :  { %v2042_v18 = vpop.f32.mrf.mxu0 }

</bundles_post_ra>
